<compile_context>
chip_gen: v7x
topology: tpu7x:2x2x1
jax: 0.10.0
libtpu: 0.0.40
codegen_flags: <defaults>
</compile_context>

<pallas_src>
import functools

import jax
import jax.numpy as jnp
from jax import lax
from jax.experimental import pallas as pl
from jax.experimental.pallas import tpu as pltpu


def _round_up(x, m):
    return ((x + m - 1) // m) * m


# ----------------------------------------------------------------------------
# Kernel 1: RoIPool (max per bin, empty bin -> 0) fused with the bin average.
# One ROI per grid step; 8 ROIs share one resident (8, C) output block.
# ----------------------------------------------------------------------------
def _roi_pool_avg_kernel(idx_ref, rois_ref, x_ref, out_ref, *,
                         pooled, spatial_scale, H, W, tr):
    rb = pl.program_id(0)
    ri = pl.program_id(1)
    r = rb * tr + ri

    # torchvision RoIPool uses C round(): half-away-from-zero.
    def _rnd(v):
        return jnp.where(v >= 0, jnp.floor(v + 0.5), jnp.ceil(v - 0.5)).astype(jnp.int32)

    roi_start_w = _rnd(rois_ref[4 * r + 0] * spatial_scale)
    roi_start_h = _rnd(rois_ref[4 * r + 1] * spatial_scale)
    roi_end_w = _rnd(rois_ref[4 * r + 2] * spatial_scale)
    roi_end_h = _rnd(rois_ref[4 * r + 3] * spatial_scale)

    roi_w = jnp.maximum(roi_end_w - roi_start_w + 1, 1).astype(jnp.float32)
    roi_h = jnp.maximum(roi_end_h - roi_start_h + 1, 1).astype(jnp.float32)
    bin_h = roi_h / pooled
    bin_w = roi_w / pooled

    C = out_ref.shape[-1]
    h_iota = lax.broadcasted_iota(jnp.int32, (H, 1, 1), 0)
    w_iota = lax.broadcasted_iota(jnp.int32, (W, 1), 0)
    neg_inf = jnp.array(-jnp.inf, dtype=x_ref.dtype)

    # W-direction bin masks do not depend on ph: hoist them out of the ph loop
    # (computed P times total instead of P*P).
    wmasks, wempties = [], []
    for pw in range(pooled):
        wstart = jnp.clip(jnp.floor(pw * bin_w).astype(jnp.int32) + roi_start_w, 0, W)
        wend = jnp.clip(jnp.ceil((pw + 1) * bin_w).astype(jnp.int32) + roi_start_w, 0, W)
        wmasks.append((w_iota >= wstart) & (w_iota < wend))          # (W, 1)
        wempties.append(wend <= wstart)                              # scalar bool

    acc = jnp.zeros((1, C), jnp.float32)
    for ph in range(pooled):                         # static unroll (pooled small)
        hstart = jnp.clip(jnp.floor(ph * bin_h).astype(jnp.int32) + roi_start_h, 0, H)
        hend = jnp.clip(jnp.ceil((ph + 1) * bin_h).astype(jnp.int32) + roi_start_h, 0, H)
        hmask = (h_iota >= hstart) & (h_iota < hend)                 # (H, 1, 1)
        h_empty = hend <= hstart
        # separable step 1: row-band max over H  ->  (W, C)
        band = jnp.max(jnp.where(hmask, x_ref[0], neg_inf), axis=0)
        for pw in range(pooled):
            # separable step 2: bin max over W  ->  (1, C)
            bin_max = jnp.max(jnp.where(wmasks[pw], band, neg_inf),
                              axis=0, keepdims=True).astype(jnp.float32)
            is_empty = h_empty | wempties[pw]
            acc = acc + jnp.where(is_empty, 0.0, bin_max)

    pooled_row = acc * (1.0 / (pooled * pooled))                     # (1, C) bin average
    # Blend the row into the resident (tr, C) output block (written back to
    # HBM once per outer grid step -> sublane-dense stores).
    row_ids = lax.broadcasted_iota(jnp.int32, (tr, 1), 0)
    out_ref[...] = jnp.where(row_ids == ri, pooled_row, out_ref[...])


def roi_pool_avg(x_nhwc, rois_fm_flat, roi_idx, R_pad, pooled, spatial_scale):
    N, H, W, C = x_nhwc.shape
    TR = 8
    kernel = functools.partial(_roi_pool_avg_kernel, pooled=pooled,
                               spatial_scale=spatial_scale, H=H, W=W, tr=TR)
    grid_spec = pltpu.PrefetchScalarGridSpec(
        num_scalar_prefetch=2,
        grid=(R_pad // TR, TR),
        in_specs=[pl.BlockSpec(
            (1, H, W, C),
            lambda rb, ri, idx, rois: (idx[rb * TR + ri], 0, 0, 0))],
        out_specs=pl.BlockSpec((TR, C), lambda rb, ri, idx, rois: (rb, 0)),
    )
    return pl.pallas_call(
        kernel,
        grid_spec=grid_spec,
        out_shape=jax.ShapeDtypeStruct((R_pad, C), jnp.float32),
        compiler_params=pltpu.CompilerParams(
            dimension_semantics=("parallel", "arbitrary")),
    )(roi_idx, rois_fm_flat, x_nhwc)


# ----------------------------------------------------------------------------
# Kernel 2: classifier head + fused cls_loc/score linear.
#   classifier: Linear(C -> 2048) + ReLU on the averaged ROI features.
#   TODO(synk): the real classifier is ResNet50 layer4 + avgpool; the bottleneck
#   conv stack is replaced by a single projection to 2048 features.
#   cls_loc & score are fused into one lane-dense (2048, n_pad) matmul.
# ----------------------------------------------------------------------------
def _head_kernel(feat_ref, w1_ref, b1_ref, w2_ref, b2_ref, out_ref):
    feat = feat_ref[...].astype(jnp.bfloat16)                        # (TR, C)
    fc7 = jnp.dot(feat, w1_ref[...], preferred_element_type=jnp.float32) + b1_ref[...]
    fc7 = jnp.maximum(fc7, 0.0).astype(jnp.bfloat16)                 # (TR, hidden)
    out_ref[...] = (jnp.dot(fc7, w2_ref[...], preferred_element_type=jnp.float32)
                    + b2_ref[...])


def resnet50_roi_head_forward(params, x_nchw, rois, roi_indices, img_size,
                              roi_size, spatial_scale):
    n, C, H, W = x_nchw.shape
    x_nhwc = jnp.transpose(x_nchw, (0, 2, 3, 1)).astype(jnp.bfloat16)  # NCHW -> NHWC

    rois_flat = rois.reshape(-1, 4).astype(jnp.float32)              # flatten(rois, 0, 1)
    idx_flat = roi_indices.reshape(-1).astype(jnp.int32)             # flatten(roi_indices)
    R_total = rois_flat.shape[0]

    # image-space -> feature-map-space rescale (exactly as the torch module);
    # RoIPool's spatial_scale is then applied on top, same as nn.RoIPool does.
    sx = jnp.float32(W) / jnp.float32(img_size[1])
    sy = jnp.float32(H) / jnp.float32(img_size[0])
    rois_fm = jnp.stack([rois_flat[:, 0] * sx, rois_flat[:, 1] * sy,
                         rois_flat[:, 2] * sx, rois_flat[:, 3] * sy], axis=1)

    TR_HEAD = min(128, _round_up(R_total, 8))   # head row tile (multiple of 8)
    R_pad = _round_up(R_total, TR_HEAD)         # pad ROI count for both kernels

    rois_fm_pad = jnp.zeros((R_pad, 4), jnp.float32).at[:R_total].set(rois_fm)
    idx_pad = jnp.zeros((R_pad,), jnp.int32).at[:R_total].set(idx_flat)
    rois_fm_flat = rois_fm_pad.reshape(-1)      # 1-D SMEM layout (avoid [R,4] padding)

    feat = roi_pool_avg(x_nhwc, rois_fm_flat, idx_pad, R_pad, roi_size, spatial_scale)

    hidden = params["w1"].shape[1]
    n_loc = params["w_loc"].shape[1]
    n_score = params["w_score"].shape[1]
    n_out = n_loc + n_score
    n_pad = _round_up(n_out, 128)               # lane-dense fused output width

    w1 = params["w1"].astype(jnp.bfloat16)
    b1 = params["b1"].astype(jnp.float32)
    w2 = jnp.pad(jnp.concatenate([params["w_loc"], params["w_score"]], axis=1),
                 ((0, 0), (0, n_pad - n_out))).astype(jnp.bfloat16)
    b2 = jnp.pad(jnp.concatenate([params["b_loc"], params["b_score"]], axis=1),
                 ((0, 0), (0, n_pad - n_out))).astype(jnp.float32)

    out = pl.pallas_call(
        _head_kernel,
        grid=(R_pad // TR_HEAD,),
        in_specs=[
            pl.BlockSpec((TR_HEAD, C), lambda i: (i, 0)),
            pl.BlockSpec((C, hidden), lambda i: (0, 0)),
            pl.BlockSpec((1, hidden), lambda i: (0, 0)),
            pl.BlockSpec((hidden, n_pad), lambda i: (0, 0)),
            pl.BlockSpec((1, n_pad), lambda i: (0, 0)),
        ],
        out_specs=pl.BlockSpec((TR_HEAD, n_pad), lambda i: (i, 0)),
        out_shape=jax.ShapeDtypeStruct((R_pad, n_pad), jnp.float32),
        compiler_params=pltpu.CompilerParams(dimension_semantics=("parallel",)),
    )(feat, w1, b1, w2, b2)

    roi_cls_locs = out[:R_total, :n_loc].reshape(n, -1, n_loc)
    roi_scores = out[:R_total, n_loc:n_out].reshape(n, -1, n_score)
    return roi_cls_locs, roi_scores


if __name__ == "__main__":
    key = jax.random.PRNGKey(0)
    N, C, H, W = 2, 32, 16, 16       # feature map (small synthetic shapes)
    R = 8                            # rois per image (600 in the real model)
    roi_size = 4
    spatial_scale = 1.0
    n_class = 5
    img_size = (128, 128)

    k1, k2, k3, k4, k5, k6 = jax.random.split(key, 6)
    x = jax.random.normal(k1, (N, C, H, W), jnp.float32)

    # ROI boxes in image coordinates: [x1, y1, x2, y2], x1<x2, y1<y2
    xy1 = jax.random.uniform(k2, (N, R, 2), minval=0.0, maxval=img_size[1] * 0.5)
    wh = jax.random.uniform(k3, (N, R, 2), minval=8.0, maxval=img_size[1] * 0.45)
    rois = jnp.concatenate([xy1, xy1 + wh], axis=-1)
    roi_indices = jnp.tile(jnp.arange(N, dtype=jnp.int32)[:, None], (1, R))

    # Deterministic parameter init (mirrors normal_init std values for the heads)
    params = {
        "w1": jax.random.normal(k4, (C, 2048), jnp.float32) * 0.01,
        "b1": jnp.zeros((1, 2048), jnp.float32),
        "w_loc": jax.random.normal(k5, (2048, n_class * 4), jnp.float32) * 0.001,
        "b_loc": jnp.zeros((1, n_class * 4), jnp.float32),
        "w_score": jax.random.normal(k6, (2048, n_class), jnp.float32) * 0.01,
        "b_score": jnp.zeros((1, n_class), jnp.float32),
    }

    locs, scores = resnet50_roi_head_forward(params, x, rois, roi_indices,
                                             img_size, roi_size, spatial_scale)
    jax.block_until_ready((locs, scores))
    assert locs.shape == (N, R, n_class * 4)
    assert scores.shape == (N, R, n_class)
    print("KERNEL_OK")
</pallas_src>

<mosaic_0001>
module attributes {stable_mosaic.version = 11 : i64} {
  func.func @_roi_pool_avg_kernel(%arg0: i32, %arg1: i32, %arg2: memref<16xi32, #tpu.memory_space<smem>>, %arg3: memref<64xf32, #tpu.memory_space<smem>>, %arg4: memref<1x16x16x32xbf16, #tpu.memory_space<vmem>>, %arg5: memref<8x32xf32, #tpu.memory_space<vmem>>) attributes {dimension_semantics = [#tpu.dimension_semantics<parallel>, #tpu.dimension_semantics<arbitrary>], iteration_bounds = array<i64: 2, 8>, scalar_prefetch = 2 : i64, scratch_operands = 0 : i64, tpu.core_type = #tpu.core_type<tc>, window_params = [{transform_indices = @transform_0, window_bounds = array<i64: 1, 16, 16, 32>}, {transform_indices = @transform_1, window_bounds = array<i64: 8, 32>}]} {
    %c8_i32 = arith.constant 8 : i32
    %0 = arith.muli %arg0, %c8_i32 : i32
    %1 = arith.addi %0, %arg1 : i32
    %c4_i32 = arith.constant 4 : i32
    %2 = arith.muli %c4_i32, %1 : i32
    %c0_i32 = arith.constant 0 : i32
    %3 = arith.addi %2, %c0_i32 : i32
    %4 = arith.index_cast %3 : i32 to index
    %5 = memref.load %arg3[%4] : memref<64xf32, #tpu.memory_space<smem>>
    %cst = arith.constant 1.000000e+00 : f32
    %6 = arith.mulf %5, %cst : f32
    %cst_0 = arith.constant 0.000000e+00 : f32
    %7 = arith.cmpf oge, %6, %cst_0 : f32
    %cst_1 = arith.constant 5.000000e-01 : f32
    %8 = arith.addf %6, %cst_1 : f32
    %9 = math.floor %8 : f32
    %cst_2 = arith.constant 5.000000e-01 : f32
    %10 = arith.subf %6, %cst_2 : f32
    %11 = math.ceil %10 : f32
    %12 = arith.select %7, %9, %11 : f32
    %13 = arith.fptosi %12 : f32 to i32
    %c4_i32_3 = arith.constant 4 : i32
    %14 = arith.muli %c4_i32_3, %1 : i32
    %c1_i32 = arith.constant 1 : i32
    %15 = arith.addi %14, %c1_i32 : i32
    %16 = arith.index_cast %15 : i32 to index
    %17 = memref.load %arg3[%16] : memref<64xf32, #tpu.memory_space<smem>>
    %cst_4 = arith.constant 1.000000e+00 : f32
    %18 = arith.mulf %17, %cst_4 : f32
    %cst_5 = arith.constant 0.000000e+00 : f32
    %19 = arith.cmpf oge, %18, %cst_5 : f32
    %cst_6 = arith.constant 5.000000e-01 : f32
    %20 = arith.addf %18, %cst_6 : f32
    %21 = math.floor %20 : f32
    %cst_7 = arith.constant 5.000000e-01 : f32
    %22 = arith.subf %18, %cst_7 : f32
    %23 = math.ceil %22 : f32
    %24 = arith.select %19, %21, %23 : f32
    %25 = arith.fptosi %24 : f32 to i32
    %c4_i32_8 = arith.constant 4 : i32
    %26 = arith.muli %c4_i32_8, %1 : i32
    %c2_i32 = arith.constant 2 : i32
    %27 = arith.addi %26, %c2_i32 : i32
    %28 = arith.index_cast %27 : i32 to index
    %29 = memref.load %arg3[%28] : memref<64xf32, #tpu.memory_space<smem>>
    %cst_9 = arith.constant 1.000000e+00 : f32
    %30 = arith.mulf %29, %cst_9 : f32
    %cst_10 = arith.constant 0.000000e+00 : f32
    %31 = arith.cmpf oge, %30, %cst_10 : f32
    %cst_11 = arith.constant 5.000000e-01 : f32
    %32 = arith.addf %30, %cst_11 : f32
    %33 = math.floor %32 : f32
    %cst_12 = arith.constant 5.000000e-01 : f32
    %34 = arith.subf %30, %cst_12 : f32
    %35 = math.ceil %34 : f32
    %36 = arith.select %31, %33, %35 : f32
    %37 = arith.fptosi %36 : f32 to i32
    %c4_i32_13 = arith.constant 4 : i32
    %38 = arith.muli %c4_i32_13, %1 : i32
    %c3_i32 = arith.constant 3 : i32
    %39 = arith.addi %38, %c3_i32 : i32
    %40 = arith.index_cast %39 : i32 to index
    %41 = memref.load %arg3[%40] : memref<64xf32, #tpu.memory_space<smem>>
    %cst_14 = arith.constant 1.000000e+00 : f32
    %42 = arith.mulf %41, %cst_14 : f32
    %cst_15 = arith.constant 0.000000e+00 : f32
    %43 = arith.cmpf oge, %42, %cst_15 : f32
    %cst_16 = arith.constant 5.000000e-01 : f32
    %44 = arith.addf %42, %cst_16 : f32
    %45 = math.floor %44 : f32
    %cst_17 = arith.constant 5.000000e-01 : f32
    %46 = arith.subf %42, %cst_17 : f32
    %47 = math.ceil %46 : f32
    %48 = arith.select %43, %45, %47 : f32
    %49 = arith.fptosi %48 : f32 to i32
    %50 = arith.subi %37, %13 : i32
    %c1_i32_18 = arith.constant 1 : i32
    %51 = arith.addi %50, %c1_i32_18 : i32
    %c1_i32_19 = arith.constant 1 : i32
    %52 = arith.maxsi %51, %c1_i32_19 : i32
    %53 = arith.sitofp %52 : i32 to f32
    %54 = arith.subi %49, %25 : i32
    %c1_i32_20 = arith.constant 1 : i32
    %55 = arith.addi %54, %c1_i32_20 : i32
    %c1_i32_21 = arith.constant 1 : i32
    %56 = arith.maxsi %55, %c1_i32_21 : i32
    %57 = arith.sitofp %56 : i32 to f32
    %cst_22 = arith.constant 4.000000e+00 : f32
    %58 = arith.divf %57, %cst_22 : f32
    %cst_23 = arith.constant 4.000000e+00 : f32
    %59 = arith.divf %53, %cst_23 : f32
    %60 = tpu.iota {dimensions = array<i32: 0>} : vector<16x1x1xi32>
    %61 = tpu.iota {dimensions = array<i32: 0>} : vector<16x1xi32>
    %cst_24 = arith.constant 0.000000e+00 : f32
    %62 = arith.mulf %cst_24, %59 : f32
    %63 = math.floor %62 : f32
    %64 = arith.fptosi %63 : f32 to i32
    %65 = arith.addi %64, %13 : i32
    %c0_i32_25 = arith.constant 0 : i32
    %c16_i32 = arith.constant 16 : i32
    %66 = arith.maxsi %c0_i32_25, %65 : i32
    %67 = arith.minsi %c16_i32, %66 : i32
    %cst_26 = arith.constant 1.000000e+00 : f32
    %68 = arith.mulf %cst_26, %59 : f32
    %69 = math.ceil %68 : f32
    %70 = arith.fptosi %69 : f32 to i32
    %71 = arith.addi %70, %13 : i32
    %c0_i32_27 = arith.constant 0 : i32
    %c16_i32_28 = arith.constant 16 : i32
    %72 = arith.maxsi %c0_i32_27, %71 : i32
    %73 = arith.minsi %c16_i32_28, %72 : i32
    %74 = vector.broadcast %67 : i32 to vector<16x1xi32>
    %75 = arith.cmpi sge, %61, %74 : vector<16x1xi32>
    %76 = vector.broadcast %73 : i32 to vector<16x1xi32>
    %77 = arith.cmpi slt, %61, %76 : vector<16x1xi32>
    %78 = arith.andi %75, %77 : vector<16x1xi1>
    %79 = arith.cmpi sle, %73, %67 : i32
    %cst_29 = arith.constant 1.000000e+00 : f32
    %80 = arith.mulf %cst_29, %59 : f32
    %81 = math.floor %80 : f32
    %82 = arith.fptosi %81 : f32 to i32
    %83 = arith.addi %82, %13 : i32
    %c0_i32_30 = arith.constant 0 : i32
    %c16_i32_31 = arith.constant 16 : i32
    %84 = arith.maxsi %c0_i32_30, %83 : i32
    %85 = arith.minsi %c16_i32_31, %84 : i32
    %cst_32 = arith.constant 2.000000e+00 : f32
    %86 = arith.mulf %cst_32, %59 : f32
    %87 = math.ceil %86 : f32
    %88 = arith.fptosi %87 : f32 to i32
    %89 = arith.addi %88, %13 : i32
    %c0_i32_33 = arith.constant 0 : i32
    %c16_i32_34 = arith.constant 16 : i32
    %90 = arith.maxsi %c0_i32_33, %89 : i32
    %91 = arith.minsi %c16_i32_34, %90 : i32
    %92 = vector.broadcast %85 : i32 to vector<16x1xi32>
    %93 = arith.cmpi sge, %61, %92 : vector<16x1xi32>
    %94 = vector.broadcast %91 : i32 to vector<16x1xi32>
    %95 = arith.cmpi slt, %61, %94 : vector<16x1xi32>
    %96 = arith.andi %93, %95 : vector<16x1xi1>
    %97 = arith.cmpi sle, %91, %85 : i32
    %cst_35 = arith.constant 2.000000e+00 : f32
    %98 = arith.mulf %cst_35, %59 : f32
    %99 = math.floor %98 : f32
    %100 = arith.fptosi %99 : f32 to i32
    %101 = arith.addi %100, %13 : i32
    %c0_i32_36 = arith.constant 0 : i32
    %c16_i32_37 = arith.constant 16 : i32
    %102 = arith.maxsi %c0_i32_36, %101 : i32
    %103 = arith.minsi %c16_i32_37, %102 : i32
    %cst_38 = arith.constant 3.000000e+00 : f32
    %104 = arith.mulf %cst_38, %59 : f32
    %105 = math.ceil %104 : f32
    %106 = arith.fptosi %105 : f32 to i32
    %107 = arith.addi %106, %13 : i32
    %c0_i32_39 = arith.constant 0 : i32
    %c16_i32_40 = arith.constant 16 : i32
    %108 = arith.maxsi %c0_i32_39, %107 : i32
    %109 = arith.minsi %c16_i32_40, %108 : i32
    %110 = vector.broadcast %103 : i32 to vector<16x1xi32>
    %111 = arith.cmpi sge, %61, %110 : vector<16x1xi32>
    %112 = vector.broadcast %109 : i32 to vector<16x1xi32>
    %113 = arith.cmpi slt, %61, %112 : vector<16x1xi32>
    %114 = arith.andi %111, %113 : vector<16x1xi1>
    %115 = arith.cmpi sle, %109, %103 : i32
    %cst_41 = arith.constant 3.000000e+00 : f32
    %116 = arith.mulf %cst_41, %59 : f32
    %117 = math.floor %116 : f32
    %118 = arith.fptosi %117 : f32 to i32
    %119 = arith.addi %118, %13 : i32
    %c0_i32_42 = arith.constant 0 : i32
    %c16_i32_43 = arith.constant 16 : i32
    %120 = arith.maxsi %c0_i32_42, %119 : i32
    %121 = arith.minsi %c16_i32_43, %120 : i32
    %cst_44 = arith.constant 4.000000e+00 : f32
    %122 = arith.mulf %cst_44, %59 : f32
    %123 = math.ceil %122 : f32
    %124 = arith.fptosi %123 : f32 to i32
    %125 = arith.addi %124, %13 : i32
    %c0_i32_45 = arith.constant 0 : i32
    %c16_i32_46 = arith.constant 16 : i32
    %126 = arith.maxsi %c0_i32_45, %125 : i32
    %127 = arith.minsi %c16_i32_46, %126 : i32
    %128 = vector.broadcast %121 : i32 to vector<16x1xi32>
    %129 = arith.cmpi sge, %61, %128 : vector<16x1xi32>
    %130 = vector.broadcast %127 : i32 to vector<16x1xi32>
    %131 = arith.cmpi slt, %61, %130 : vector<16x1xi32>
    %132 = arith.andi %129, %131 : vector<16x1xi1>
    %133 = arith.cmpi sle, %127, %121 : i32
    %cst_47 = arith.constant 0.000000e+00 : f32
    %134 = vector.broadcast %cst_47 : f32 to vector<1x32xf32>
    %cst_48 = arith.constant 0.000000e+00 : f32
    %135 = arith.mulf %cst_48, %58 : f32
    %136 = math.floor %135 : f32
    %137 = arith.fptosi %136 : f32 to i32
    %138 = arith.addi %137, %25 : i32
    %c0_i32_49 = arith.constant 0 : i32
    %c16_i32_50 = arith.constant 16 : i32
    %139 = arith.maxsi %c0_i32_49, %138 : i32
    %140 = arith.minsi %c16_i32_50, %139 : i32
    %cst_51 = arith.constant 1.000000e+00 : f32
    %141 = arith.mulf %cst_51, %58 : f32
    %142 = math.ceil %141 : f32
    %143 = arith.fptosi %142 : f32 to i32
    %144 = arith.addi %143, %25 : i32
    %c0_i32_52 = arith.constant 0 : i32
    %c16_i32_53 = arith.constant 16 : i32
    %145 = arith.maxsi %c0_i32_52, %144 : i32
    %146 = arith.minsi %c16_i32_53, %145 : i32
    %147 = vector.broadcast %140 : i32 to vector<16x1x1xi32>
    %148 = arith.cmpi sge, %60, %147 : vector<16x1x1xi32>
    %149 = vector.broadcast %146 : i32 to vector<16x1x1xi32>
    %150 = arith.cmpi slt, %60, %149 : vector<16x1x1xi32>
    %151 = arith.andi %148, %150 : vector<16x1x1xi1>
    %152 = arith.cmpi sle, %146, %140 : i32
    %c0 = arith.constant 0 : index
    %c0_54 = arith.constant 0 : index
    %c0_55 = arith.constant 0 : index
    %c0_56 = arith.constant 0 : index
    %153 = vector.load %arg4[%c0, %c0_54, %c0_55, %c0_56] : memref<1x16x16x32xbf16, #tpu.memory_space<vmem>>, vector<1x16x16x32xbf16>
    %154 = vector.shape_cast %153 : vector<1x16x16x32xbf16> to vector<16x16x32xbf16>
    %cst_57 = arith.constant 0xFF80 : bf16
    %155 = vector.shape_cast %151 : vector<16x1x1xi1> to vector<16x1x1xi1>
    %156 = vector.broadcast %155 : vector<16x1x1xi1> to vector<16x16x32xi1>
    %157 = vector.broadcast %cst_57 : bf16 to vector<16x16x32xbf16>
    %158 = arith.select %156, %154, %157 : vector<16x16x32xi1>, vector<16x16x32xbf16>
    %cst_58 = arith.constant dense<0xFF80> : vector<16x32xbf16>
    %159 = vector.multi_reduction <maximumf>, %158, %cst_58 [0] : vector<16x16x32xbf16> to vector<16x32xbf16>
    %cst_59 = arith.constant 0xFF80 : bf16
    %160 = vector.shape_cast %78 : vector<16x1xi1> to vector<16x1xi1>
    %161 = vector.broadcast %160 : vector<16x1xi1> to vector<16x32xi1>
    %162 = vector.broadcast %cst_59 : bf16 to vector<16x32xbf16>
    %163 = arith.select %161, %159, %162 : vector<16x32xi1>, vector<16x32xbf16>
    %cst_60 = arith.constant dense<0xFF80> : vector<32xbf16>
    %164 = vector.multi_reduction <maximumf>, %163, %cst_60 [0] : vector<16x32xbf16> to vector<32xbf16>
    %165 = vector.shape_cast %164 : vector<32xbf16> to vector<1x32xbf16>
    %166 = arith.extf %165 : vector<1x32xbf16> to vector<1x32xf32>
    %167 = arith.ori %152, %79 : i1
    %cst_61 = arith.constant 0.000000e+00 : f32
    %168 = vector.broadcast %cst_61 : f32 to vector<1x32xf32>
    %169 = arith.select %167, %168, %166 : vector<1x32xf32>
    %170 = arith.addf %134, %169 : vector<1x32xf32>
    %cst_62 = arith.constant 0xFF80 : bf16
    %171 = vector.shape_cast %96 : vector<16x1xi1> to vector<16x1xi1>
    %172 = vector.broadcast %171 : vector<16x1xi1> to vector<16x32xi1>
    %173 = vector.broadcast %cst_62 : bf16 to vector<16x32xbf16>
    %174 = arith.select %172, %159, %173 : vector<16x32xi1>, vector<16x32xbf16>
    %cst_63 = arith.constant dense<0xFF80> : vector<32xbf16>
    %175 = vector.multi_reduction <maximumf>, %174, %cst_63 [0] : vector<16x32xbf16> to vector<32xbf16>
    %176 = vector.shape_cast %175 : vector<32xbf16> to vector<1x32xbf16>
    %177 = arith.extf %176 : vector<1x32xbf16> to vector<1x32xf32>
    %178 = arith.ori %152, %97 : i1
    %cst_64 = arith.constant 0.000000e+00 : f32
    %179 = vector.broadcast %cst_64 : f32 to vector<1x32xf32>
    %180 = arith.select %178, %179, %177 : vector<1x32xf32>
    %181 = arith.addf %170, %180 : vector<1x32xf32>
    %cst_65 = arith.constant 0xFF80 : bf16
    %182 = vector.shape_cast %114 : vector<16x1xi1> to vector<16x1xi1>
    %183 = vector.broadcast %182 : vector<16x1xi1> to vector<16x32xi1>
    %184 = vector.broadcast %cst_65 : bf16 to vector<16x32xbf16>
    %185 = arith.select %183, %159, %184 : vector<16x32xi1>, vector<16x32xbf16>
    %cst_66 = arith.constant dense<0xFF80> : vector<32xbf16>
    %186 = vector.multi_reduction <maximumf>, %185, %cst_66 [0] : vector<16x32xbf16> to vector<32xbf16>
    %187 = vector.shape_cast %186 : vector<32xbf16> to vector<1x32xbf16>
    %188 = arith.extf %187 : vector<1x32xbf16> to vector<1x32xf32>
    %189 = arith.ori %152, %115 : i1
    %cst_67 = arith.constant 0.000000e+00 : f32
    %190 = vector.broadcast %cst_67 : f32 to vector<1x32xf32>
    %191 = arith.select %189, %190, %188 : vector<1x32xf32>
    %192 = arith.addf %181, %191 : vector<1x32xf32>
    %cst_68 = arith.constant 0xFF80 : bf16
    %193 = vector.shape_cast %132 : vector<16x1xi1> to vector<16x1xi1>
    %194 = vector.broadcast %193 : vector<16x1xi1> to vector<16x32xi1>
    %195 = vector.broadcast %cst_68 : bf16 to vector<16x32xbf16>
    %196 = arith.select %194, %159, %195 : vector<16x32xi1>, vector<16x32xbf16>
    %cst_69 = arith.constant dense<0xFF80> : vector<32xbf16>
    %197 = vector.multi_reduction <maximumf>, %196, %cst_69 [0] : vector<16x32xbf16> to vector<32xbf16>
    %198 = vector.shape_cast %197 : vector<32xbf16> to vector<1x32xbf16>
    %199 = arith.extf %198 : vector<1x32xbf16> to vector<1x32xf32>
    %200 = arith.ori %152, %133 : i1
    %cst_70 = arith.constant 0.000000e+00 : f32
    %201 = vector.broadcast %cst_70 : f32 to vector<1x32xf32>
    %202 = arith.select %200, %201, %199 : vector<1x32xf32>
    %203 = arith.addf %192, %202 : vector<1x32xf32>
    %cst_71 = arith.constant 1.000000e+00 : f32
    %204 = arith.mulf %cst_71, %58 : f32
    %205 = math.floor %204 : f32
    %206 = arith.fptosi %205 : f32 to i32
    %207 = arith.addi %206, %25 : i32
    %c0_i32_72 = arith.constant 0 : i32
    %c16_i32_73 = arith.constant 16 : i32
    %208 = arith.maxsi %c0_i32_72, %207 : i32
    %209 = arith.minsi %c16_i32_73, %208 : i32
    %cst_74 = arith.constant 2.000000e+00 : f32
    %210 = arith.mulf %cst_74, %58 : f32
    %211 = math.ceil %210 : f32
    %212 = arith.fptosi %211 : f32 to i32
    %213 = arith.addi %212, %25 : i32
    %c0_i32_75 = arith.constant 0 : i32
    %c16_i32_76 = arith.constant 16 : i32
    %214 = arith.maxsi %c0_i32_75, %213 : i32
    %215 = arith.minsi %c16_i32_76, %214 : i32
    %216 = vector.broadcast %209 : i32 to vector<16x1x1xi32>
    %217 = arith.cmpi sge, %60, %216 : vector<16x1x1xi32>
    %218 = vector.broadcast %215 : i32 to vector<16x1x1xi32>
    %219 = arith.cmpi slt, %60, %218 : vector<16x1x1xi32>
    %220 = arith.andi %217, %219 : vector<16x1x1xi1>
    %221 = arith.cmpi sle, %215, %209 : i32
    %c0_77 = arith.constant 0 : index
    %c0_78 = arith.constant 0 : index
    %c0_79 = arith.constant 0 : index
    %c0_80 = arith.constant 0 : index
    %222 = vector.load %arg4[%c0_77, %c0_78, %c0_79, %c0_80] : memref<1x16x16x32xbf16, #tpu.memory_space<vmem>>, vector<1x16x16x32xbf16>
    %223 = vector.shape_cast %222 : vector<1x16x16x32xbf16> to vector<16x16x32xbf16>
    %cst_81 = arith.constant 0xFF80 : bf16
    %224 = vector.shape_cast %220 : vector<16x1x1xi1> to vector<16x1x1xi1>
    %225 = vector.broadcast %224 : vector<16x1x1xi1> to vector<16x16x32xi1>
    %226 = vector.broadcast %cst_81 : bf16 to vector<16x16x32xbf16>
    %227 = arith.select %225, %223, %226 : vector<16x16x32xi1>, vector<16x16x32xbf16>
    %cst_82 = arith.constant dense<0xFF80> : vector<16x32xbf16>
    %228 = vector.multi_reduction <maximumf>, %227, %cst_82 [0] : vector<16x16x32xbf16> to vector<16x32xbf16>
    %cst_83 = arith.constant 0xFF80 : bf16
    %229 = vector.shape_cast %78 : vector<16x1xi1> to vector<16x1xi1>
    %230 = vector.broadcast %229 : vector<16x1xi1> to vector<16x32xi1>
    %231 = vector.broadcast %cst_83 : bf16 to vector<16x32xbf16>
    %232 = arith.select %230, %228, %231 : vector<16x32xi1>, vector<16x32xbf16>
    %cst_84 = arith.constant dense<0xFF80> : vector<32xbf16>
    %233 = vector.multi_reduction <maximumf>, %232, %cst_84 [0] : vector<16x32xbf16> to vector<32xbf16>
    %234 = vector.shape_cast %233 : vector<32xbf16> to vector<1x32xbf16>
    %235 = arith.extf %234 : vector<1x32xbf16> to vector<1x32xf32>
    %236 = arith.ori %221, %79 : i1
    %cst_85 = arith.constant 0.000000e+00 : f32
    %237 = vector.broadcast %cst_85 : f32 to vector<1x32xf32>
    %238 = arith.select %236, %237, %235 : vector<1x32xf32>
    %239 = arith.addf %203, %238 : vector<1x32xf32>
    %cst_86 = arith.constant 0xFF80 : bf16
    %240 = vector.shape_cast %96 : vector<16x1xi1> to vector<16x1xi1>
    %241 = vector.broadcast %240 : vector<16x1xi1> to vector<16x32xi1>
    %242 = vector.broadcast %cst_86 : bf16 to vector<16x32xbf16>
    %243 = arith.select %241, %228, %242 : vector<16x32xi1>, vector<16x32xbf16>
    %cst_87 = arith.constant dense<0xFF80> : vector<32xbf16>
    %244 = vector.multi_reduction <maximumf>, %243, %cst_87 [0] : vector<16x32xbf16> to vector<32xbf16>
    %245 = vector.shape_cast %244 : vector<32xbf16> to vector<1x32xbf16>
    %246 = arith.extf %245 : vector<1x32xbf16> to vector<1x32xf32>
    %247 = arith.ori %221, %97 : i1
    %cst_88 = arith.constant 0.000000e+00 : f32
    %248 = vector.broadcast %cst_88 : f32 to vector<1x32xf32>
    %249 = arith.select %247, %248, %246 : vector<1x32xf32>
    %250 = arith.addf %239, %249 : vector<1x32xf32>
    %cst_89 = arith.constant 0xFF80 : bf16
    %251 = vector.shape_cast %114 : vector<16x1xi1> to vector<16x1xi1>
    %252 = vector.broadcast %251 : vector<16x1xi1> to vector<16x32xi1>
    %253 = vector.broadcast %cst_89 : bf16 to vector<16x32xbf16>
    %254 = arith.select %252, %228, %253 : vector<16x32xi1>, vector<16x32xbf16>
    %cst_90 = arith.constant dense<0xFF80> : vector<32xbf16>
    %255 = vector.multi_reduction <maximumf>, %254, %cst_90 [0] : vector<16x32xbf16> to vector<32xbf16>
    %256 = vector.shape_cast %255 : vector<32xbf16> to vector<1x32xbf16>
    %257 = arith.extf %256 : vector<1x32xbf16> to vector<1x32xf32>
    %258 = arith.ori %221, %115 : i1
    %cst_91 = arith.constant 0.000000e+00 : f32
    %259 = vector.broadcast %cst_91 : f32 to vector<1x32xf32>
    %260 = arith.select %258, %259, %257 : vector<1x32xf32>
    %261 = arith.addf %250, %260 : vector<1x32xf32>
    %cst_92 = arith.constant 0xFF80 : bf16
    %262 = vector.shape_cast %132 : vector<16x1xi1> to vector<16x1xi1>
    %263 = vector.broadcast %262 : vector<16x1xi1> to vector<16x32xi1>
    %264 = vector.broadcast %cst_92 : bf16 to vector<16x32xbf16>
    %265 = arith.select %263, %228, %264 : vector<16x32xi1>, vector<16x32xbf16>
    %cst_93 = arith.constant dense<0xFF80> : vector<32xbf16>
    %266 = vector.multi_reduction <maximumf>, %265, %cst_93 [0] : vector<16x32xbf16> to vector<32xbf16>
    %267 = vector.shape_cast %266 : vector<32xbf16> to vector<1x32xbf16>
    %268 = arith.extf %267 : vector<1x32xbf16> to vector<1x32xf32>
    %269 = arith.ori %221, %133 : i1
    %cst_94 = arith.constant 0.000000e+00 : f32
    %270 = vector.broadcast %cst_94 : f32 to vector<1x32xf32>
    %271 = arith.select %269, %270, %268 : vector<1x32xf32>
    %272 = arith.addf %261, %271 : vector<1x32xf32>
    %cst_95 = arith.constant 2.000000e+00 : f32
    %273 = arith.mulf %cst_95, %58 : f32
    %274 = math.floor %273 : f32
    %275 = arith.fptosi %274 : f32 to i32
    %276 = arith.addi %275, %25 : i32
    %c0_i32_96 = arith.constant 0 : i32
    %c16_i32_97 = arith.constant 16 : i32
    %277 = arith.maxsi %c0_i32_96, %276 : i32
    %278 = arith.minsi %c16_i32_97, %277 : i32
    %cst_98 = arith.constant 3.000000e+00 : f32
    %279 = arith.mulf %cst_98, %58 : f32
    %280 = math.ceil %279 : f32
    %281 = arith.fptosi %280 : f32 to i32
    %282 = arith.addi %281, %25 : i32
    %c0_i32_99 = arith.constant 0 : i32
    %c16_i32_100 = arith.constant 16 : i32
    %283 = arith.maxsi %c0_i32_99, %282 : i32
    %284 = arith.minsi %c16_i32_100, %283 : i32
    %285 = vector.broadcast %278 : i32 to vector<16x1x1xi32>
    %286 = arith.cmpi sge, %60, %285 : vector<16x1x1xi32>
    %287 = vector.broadcast %284 : i32 to vector<16x1x1xi32>
    %288 = arith.cmpi slt, %60, %287 : vector<16x1x1xi32>
    %289 = arith.andi %286, %288 : vector<16x1x1xi1>
    %290 = arith.cmpi sle, %284, %278 : i32
    %c0_101 = arith.constant 0 : index
    %c0_102 = arith.constant 0 : index
    %c0_103 = arith.constant 0 : index
    %c0_104 = arith.constant 0 : index
    %291 = vector.load %arg4[%c0_101, %c0_102, %c0_103, %c0_104] : memref<1x16x16x32xbf16, #tpu.memory_space<vmem>>, vector<1x16x16x32xbf16>
    %292 = vector.shape_cast %291 : vector<1x16x16x32xbf16> to vector<16x16x32xbf16>
    %cst_105 = arith.constant 0xFF80 : bf16
    %293 = vector.shape_cast %289 : vector<16x1x1xi1> to vector<16x1x1xi1>
    %294 = vector.broadcast %293 : vector<16x1x1xi1> to vector<16x16x32xi1>
    %295 = vector.broadcast %cst_105 : bf16 to vector<16x16x32xbf16>
    %296 = arith.select %294, %292, %295 : vector<16x16x32xi1>, vector<16x16x32xbf16>
    %cst_106 = arith.constant dense<0xFF80> : vector<16x32xbf16>
    %297 = vector.multi_reduction <maximumf>, %296, %cst_106 [0] : vector<16x16x32xbf16> to vector<16x32xbf16>
    %cst_107 = arith.constant 0xFF80 : bf16
    %298 = vector.shape_cast %78 : vector<16x1xi1> to vector<16x1xi1>
    %299 = vector.broadcast %298 : vector<16x1xi1> to vector<16x32xi1>
    %300 = vector.broadcast %cst_107 : bf16 to vector<16x32xbf16>
    %301 = arith.select %299, %297, %300 : vector<16x32xi1>, vector<16x32xbf16>
    %cst_108 = arith.constant dense<0xFF80> : vector<32xbf16>
    %302 = vector.multi_reduction <maximumf>, %301, %cst_108 [0] : vector<16x32xbf16> to vector<32xbf16>
    %303 = vector.shape_cast %302 : vector<32xbf16> to vector<1x32xbf16>
    %304 = arith.extf %303 : vector<1x32xbf16> to vector<1x32xf32>
    %305 = arith.ori %290, %79 : i1
    %cst_109 = arith.constant 0.000000e+00 : f32
    %306 = vector.broadcast %cst_109 : f32 to vector<1x32xf32>
    %307 = arith.select %305, %306, %304 : vector<1x32xf32>
    %308 = arith.addf %272, %307 : vector<1x32xf32>
    %cst_110 = arith.constant 0xFF80 : bf16
    %309 = vector.shape_cast %96 : vector<16x1xi1> to vector<16x1xi1>
    %310 = vector.broadcast %309 : vector<16x1xi1> to vector<16x32xi1>
    %311 = vector.broadcast %cst_110 : bf16 to vector<16x32xbf16>
    %312 = arith.select %310, %297, %311 : vector<16x32xi1>, vector<16x32xbf16>
    %cst_111 = arith.constant dense<0xFF80> : vector<32xbf16>
    %313 = vector.multi_reduction <maximumf>, %312, %cst_111 [0] : vector<16x32xbf16> to vector<32xbf16>
    %314 = vector.shape_cast %313 : vector<32xbf16> to vector<1x32xbf16>
    %315 = arith.extf %314 : vector<1x32xbf16> to vector<1x32xf32>
    %316 = arith.ori %290, %97 : i1
    %cst_112 = arith.constant 0.000000e+00 : f32
    %317 = vector.broadcast %cst_112 : f32 to vector<1x32xf32>
    %318 = arith.select %316, %317, %315 : vector<1x32xf32>
    %319 = arith.addf %308, %318 : vector<1x32xf32>
    %cst_113 = arith.constant 0xFF80 : bf16
    %320 = vector.shape_cast %114 : vector<16x1xi1> to vector<16x1xi1>
    %321 = vector.broadcast %320 : vector<16x1xi1> to vector<16x32xi1>
    %322 = vector.broadcast %cst_113 : bf16 to vector<16x32xbf16>
    %323 = arith.select %321, %297, %322 : vector<16x32xi1>, vector<16x32xbf16>
    %cst_114 = arith.constant dense<0xFF80> : vector<32xbf16>
    %324 = vector.multi_reduction <maximumf>, %323, %cst_114 [0] : vector<16x32xbf16> to vector<32xbf16>
    %325 = vector.shape_cast %324 : vector<32xbf16> to vector<1x32xbf16>
    %326 = arith.extf %325 : vector<1x32xbf16> to vector<1x32xf32>
    %327 = arith.ori %290, %115 : i1
    %cst_115 = arith.constant 0.000000e+00 : f32
    %328 = vector.broadcast %cst_115 : f32 to vector<1x32xf32>
    %329 = arith.select %327, %328, %326 : vector<1x32xf32>
    %330 = arith.addf %319, %329 : vector<1x32xf32>
    %cst_116 = arith.constant 0xFF80 : bf16
    %331 = vector.shape_cast %132 : vector<16x1xi1> to vector<16x1xi1>
    %332 = vector.broadcast %331 : vector<16x1xi1> to vector<16x32xi1>
    %333 = vector.broadcast %cst_116 : bf16 to vector<16x32xbf16>
    %334 = arith.select %332, %297, %333 : vector<16x32xi1>, vector<16x32xbf16>
    %cst_117 = arith.constant dense<0xFF80> : vector<32xbf16>
    %335 = vector.multi_reduction <maximumf>, %334, %cst_117 [0] : vector<16x32xbf16> to vector<32xbf16>
    %336 = vector.shape_cast %335 : vector<32xbf16> to vector<1x32xbf16>
    %337 = arith.extf %336 : vector<1x32xbf16> to vector<1x32xf32>
    %338 = arith.ori %290, %133 : i1
    %cst_118 = arith.constant 0.000000e+00 : f32
    %339 = vector.broadcast %cst_118 : f32 to vector<1x32xf32>
    %340 = arith.select %338, %339, %337 : vector<1x32xf32>
    %341 = arith.addf %330, %340 : vector<1x32xf32>
    %cst_119 = arith.constant 3.000000e+00 : f32
    %342 = arith.mulf %cst_119, %58 : f32
    %343 = math.floor %342 : f32
    %344 = arith.fptosi %343 : f32 to i32
    %345 = arith.addi %344, %25 : i32
    %c0_i32_120 = arith.constant 0 : i32
    %c16_i32_121 = arith.constant 16 : i32
    %346 = arith.maxsi %c0_i32_120, %345 : i32
    %347 = arith.minsi %c16_i32_121, %346 : i32
    %cst_122 = arith.constant 4.000000e+00 : f32
    %348 = arith.mulf %cst_122, %58 : f32
    %349 = math.ceil %348 : f32
    %350 = arith.fptosi %349 : f32 to i32
    %351 = arith.addi %350, %25 : i32
    %c0_i32_123 = arith.constant 0 : i32
    %c16_i32_124 = arith.constant 16 : i32
    %352 = arith.maxsi %c0_i32_123, %351 : i32
    %353 = arith.minsi %c16_i32_124, %352 : i32
    %354 = vector.broadcast %347 : i32 to vector<16x1x1xi32>
    %355 = arith.cmpi sge, %60, %354 : vector<16x1x1xi32>
    %356 = vector.broadcast %353 : i32 to vector<16x1x1xi32>
    %357 = arith.cmpi slt, %60, %356 : vector<16x1x1xi32>
    %358 = arith.andi %355, %357 : vector<16x1x1xi1>
    %359 = arith.cmpi sle, %353, %347 : i32
    %c0_125 = arith.constant 0 : index
    %c0_126 = arith.constant 0 : index
    %c0_127 = arith.constant 0 : index
    %c0_128 = arith.constant 0 : index
    %360 = vector.load %arg4[%c0_125, %c0_126, %c0_127, %c0_128] : memref<1x16x16x32xbf16, #tpu.memory_space<vmem>>, vector<1x16x16x32xbf16>
    %361 = vector.shape_cast %360 : vector<1x16x16x32xbf16> to vector<16x16x32xbf16>
    %cst_129 = arith.constant 0xFF80 : bf16
    %362 = vector.shape_cast %358 : vector<16x1x1xi1> to vector<16x1x1xi1>
    %363 = vector.broadcast %362 : vector<16x1x1xi1> to vector<16x16x32xi1>
    %364 = vector.broadcast %cst_129 : bf16 to vector<16x16x32xbf16>
    %365 = arith.select %363, %361, %364 : vector<16x16x32xi1>, vector<16x16x32xbf16>
    %cst_130 = arith.constant dense<0xFF80> : vector<16x32xbf16>
    %366 = vector.multi_reduction <maximumf>, %365, %cst_130 [0] : vector<16x16x32xbf16> to vector<16x32xbf16>
    %cst_131 = arith.constant 0xFF80 : bf16
    %367 = vector.shape_cast %78 : vector<16x1xi1> to vector<16x1xi1>
    %368 = vector.broadcast %367 : vector<16x1xi1> to vector<16x32xi1>
    %369 = vector.broadcast %cst_131 : bf16 to vector<16x32xbf16>
    %370 = arith.select %368, %366, %369 : vector<16x32xi1>, vector<16x32xbf16>
    %cst_132 = arith.constant dense<0xFF80> : vector<32xbf16>
    %371 = vector.multi_reduction <maximumf>, %370, %cst_132 [0] : vector<16x32xbf16> to vector<32xbf16>
    %372 = vector.shape_cast %371 : vector<32xbf16> to vector<1x32xbf16>
    %373 = arith.extf %372 : vector<1x32xbf16> to vector<1x32xf32>
    %374 = arith.ori %359, %79 : i1
    %cst_133 = arith.constant 0.000000e+00 : f32
    %375 = vector.broadcast %cst_133 : f32 to vector<1x32xf32>
    %376 = arith.select %374, %375, %373 : vector<1x32xf32>
    %377 = arith.addf %341, %376 : vector<1x32xf32>
    %cst_134 = arith.constant 0xFF80 : bf16
    %378 = vector.shape_cast %96 : vector<16x1xi1> to vector<16x1xi1>
    %379 = vector.broadcast %378 : vector<16x1xi1> to vector<16x32xi1>
    %380 = vector.broadcast %cst_134 : bf16 to vector<16x32xbf16>
    %381 = arith.select %379, %366, %380 : vector<16x32xi1>, vector<16x32xbf16>
    %cst_135 = arith.constant dense<0xFF80> : vector<32xbf16>
    %382 = vector.multi_reduction <maximumf>, %381, %cst_135 [0] : vector<16x32xbf16> to vector<32xbf16>
    %383 = vector.shape_cast %382 : vector<32xbf16> to vector<1x32xbf16>
    %384 = arith.extf %383 : vector<1x32xbf16> to vector<1x32xf32>
    %385 = arith.ori %359, %97 : i1
    %cst_136 = arith.constant 0.000000e+00 : f32
    %386 = vector.broadcast %cst_136 : f32 to vector<1x32xf32>
    %387 = arith.select %385, %386, %384 : vector<1x32xf32>
    %388 = arith.addf %377, %387 : vector<1x32xf32>
    %cst_137 = arith.constant 0xFF80 : bf16
    %389 = vector.shape_cast %114 : vector<16x1xi1> to vector<16x1xi1>
    %390 = vector.broadcast %389 : vector<16x1xi1> to vector<16x32xi1>
    %391 = vector.broadcast %cst_137 : bf16 to vector<16x32xbf16>
    %392 = arith.select %390, %366, %391 : vector<16x32xi1>, vector<16x32xbf16>
    %cst_138 = arith.constant dense<0xFF80> : vector<32xbf16>
    %393 = vector.multi_reduction <maximumf>, %392, %cst_138 [0] : vector<16x32xbf16> to vector<32xbf16>
    %394 = vector.shape_cast %393 : vector<32xbf16> to vector<1x32xbf16>
    %395 = arith.extf %394 : vector<1x32xbf16> to vector<1x32xf32>
    %396 = arith.ori %359, %115 : i1
    %cst_139 = arith.constant 0.000000e+00 : f32
    %397 = vector.broadcast %cst_139 : f32 to vector<1x32xf32>
    %398 = arith.select %396, %397, %395 : vector<1x32xf32>
    %399 = arith.addf %388, %398 : vector<1x32xf32>
    %cst_140 = arith.constant 0xFF80 : bf16
    %400 = vector.shape_cast %132 : vector<16x1xi1> to vector<16x1xi1>
    %401 = vector.broadcast %400 : vector<16x1xi1> to vector<16x32xi1>
    %402 = vector.broadcast %cst_140 : bf16 to vector<16x32xbf16>
    %403 = arith.select %401, %366, %402 : vector<16x32xi1>, vector<16x32xbf16>
    %cst_141 = arith.constant dense<0xFF80> : vector<32xbf16>
    %404 = vector.multi_reduction <maximumf>, %403, %cst_141 [0] : vector<16x32xbf16> to vector<32xbf16>
    %405 = vector.shape_cast %404 : vector<32xbf16> to vector<1x32xbf16>
    %406 = arith.extf %405 : vector<1x32xbf16> to vector<1x32xf32>
    %407 = arith.ori %359, %133 : i1
    %cst_142 = arith.constant 0.000000e+00 : f32
    %408 = vector.broadcast %cst_142 : f32 to vector<1x32xf32>
    %409 = arith.select %407, %408, %406 : vector<1x32xf32>
    %410 = arith.addf %399, %409 : vector<1x32xf32>
    %cst_143 = arith.constant 6.250000e-02 : f32
    %411 = vector.broadcast %cst_143 : f32 to vector<1x32xf32>
    %412 = arith.mulf %410, %411 : vector<1x32xf32>
    %413 = tpu.iota {dimensions = array<i32: 0>} : vector<8x1xi32>
    %414 = vector.broadcast %arg1 : i32 to vector<8x1xi32>
    %415 = arith.cmpi eq, %413, %414 : vector<8x1xi32>
    %c0_144 = arith.constant 0 : index
    %c0_145 = arith.constant 0 : index
    %416 = vector.load %arg5[%c0_144, %c0_145] : memref<8x32xf32, #tpu.memory_space<vmem>>, vector<8x32xf32>
    %417 = vector.shape_cast %415 : vector<8x1xi1> to vector<8x1xi1>
    %418 = vector.broadcast %417 : vector<8x1xi1> to vector<8x32xi1>
    %419 = vector.shape_cast %412 : vector<1x32xf32> to vector<1x32xf32>
    %420 = vector.broadcast %419 : vector<1x32xf32> to vector<8x32xf32>
    %421 = arith.select %418, %420, %416 : vector<8x32xi1>, vector<8x32xf32>
    %c0_146 = arith.constant 0 : index
    %c0_147 = arith.constant 0 : index
    %422 = vector.load %arg5[%c0_146, %c0_147] : memref<8x32xf32, #tpu.memory_space<vmem>>, vector<8x32xf32>
    tpu.vector_store %arg5[%c0_146, %c0_147], %421 {strides = array<i32>} : memref<8x32xf32, #tpu.memory_space<vmem>>, vector<8x32xf32>,
    return
  }
  func.func @transform_0(%arg0: i32, %arg1: i32, %arg2: memref<16xi32, #tpu.memory_space<smem>>, %arg3: memref<64xf32, #tpu.memory_space<smem>>) -> (i32, i32, i32, i32) {
    %c8_i32 = arith.constant 8 : i32
    %0 = arith.muli %arg0, %c8_i32 : i32
    %1 = arith.addi %0, %arg1 : i32
    %2 = arith.index_cast %1 : i32 to index
    %3 = memref.load %arg2[%2] : memref<16xi32, #tpu.memory_space<smem>>
    %c0_i32 = arith.constant 0 : i32
    %c0_i32_0 = arith.constant 0 : i32
    %c0_i32_1 = arith.constant 0 : i32
    %c0_i32_2 = arith.constant 0 : i32
    return %3, %c0_i32, %c0_i32_0, %c0_i32_1 : i32, i32, i32, i32
  }
  func.func @transform_1(%arg0: i32, %arg1: i32, %arg2: memref<16xi32, #tpu.memory_space<smem>>, %arg3: memref<64xf32, #tpu.memory_space<smem>>) -> (i32, i32) {
    %c0_i32 = arith.constant 0 : i32
    %c0_i32_0 = arith.constant 0 : i32
    return %arg0, %c0_i32 : i32, i32
  }
}

</mosaic_0001>

<bundles_post_ra>
// kernel: tpu_custom_call.1
= control target key start
LH: loop header
LB: loop body
LE: loop exit
PB: predicated region body
PF: predicated region fallthrough
CT: control target
= control target key end

     0   :  { %s5168_s0 = inlined_call_operand.hbm [shape: s32[16], index: 0, kind: input, shape index: {}]   ;;  %s5169_s2 = inlined_call_operand.hbm [shape: bf16[2,16,16,32], index: 2, kind: input, shape index: {}]   ;;  %s5170_s3 = inlined_call_operand.hbm [shape: f32[16,32], index: 3, kind: output, shape index: {}]   ;;  %s5171_s1 = inlined_call_operand.vmem [shape: f32[64], index: 1, kind: input, shape index: {}]  }
   0x1   :  { %5292 = sst [smem:[#allocation55_spill]] %s5169_s2  ;;  %s2275_s14 = scalar_lea.hbm %s5168_s0, 16 }
   0x2   :  { %p2276_p0 = scmp.ne.s32.totalorder %s5168_s0, %s2275_s14  ;;  %p2279_p1 = scmp.lt.u32.totalorder %s2275_s14, %s5168_s0 }
   0x4   :  { %p2281_p2 = pnand %p2279_p1, %p2276_p0 }
   0x6   :  { %2284 = shalt.err (!%p2281_p2)  }
   0x7   :  { %s2453_s19 = smov [#allocation3]   ;;  %s10_s24 = sshll.u32 %s5171_s1, 4  ;;  %s11_s24 = int_to_ptr.vmem [resolvable:$true] %s10_s24 }
   0x8   :  { %9 = dma.hbm_to_smem %s5168_s0, 16, %s2453_s19, [#allocation2] }
   0x9   :  { %s2285_s25 = scalar_lea.vmem %s11_s24, 16  ;;  %p2290_p4 = scmp.lt.s32.totalorder %s11_s24, %s11_s24 }
   0xa   :  { %p2286_p3 = scmp.ne.s32.totalorder %s11_s24, %s2285_s25  ;;  %p2291_p5 = scmp.lt.s32.totalorder %s2285_s25, %s2285_s25 }
   0xc   :  { %p2292_p6 = por %p2291_p5, %p2290_p4 }
   0xe   :  { %p2293_p7 = pnand %p2292_p6, %p2286_p3 }
  0x10   :  { %2296 = shalt.err (!%p2293_p7)  }
  0x11   :  { %s2454_s26 = smov [#allocation4]  }
  0x12   :  { %13 = dma.vmem_to_smem %s11_s24, 16, %s2454_s26, [#allocation2] }
  0x13   :  { %2399 = dma.done.wait [#allocation2], 32 }
  0x14   :  { %2400 = vsyncadd [#allocation2], 4294967264 }
  0x15   :  { %15 = sfence }
  0x16   :  { %16 = vsyncpa [#allocation6], 0 }
  0x17   :  { %18 = vsyncpa [#allocation6 + $0x1], 0 }
  0x18   :  { %19 = vsyncpa [#allocation7], 0 }
  0x19   :  { %21 = vsyncpa [#allocation7 + $0x1], 0  ;;  %s2494_s0 = smov 0   ;;  %s2496_s1 = smov 0  }
  0x1a   :  { %s2498_s27 = smov 0   ;;  %s2500_s28 = smov 0  }
  0x1b   :  { %s2502_s29 = smov 0   ;;  %s2504_s30 = smov 0  }
  0x1c   :  { %s2506_s4 = smov 0   ;;  %s2508_s5 = smov 0  }
  0x1d   :  { %s2510_s6 = smov 0   ;;  %s2512_s7 = smov 0  }
  0x1e   :  { %s2514_s8 = smov 0  }
  0x1f LB: > { %5293 = sst [smem:[#allocation14_spill]] %s2411_s0  ;;  %s1941_s9 = sadd.s32 4294967295, %s2451_s8   ;;  %s2451_s8 = sphi %s2514_s8, %s27_s8   ;;  %s2447_s7 = sphi %s2512_s7, %s5969_s7   ;;  %s2443_s6 = sphi %s2510_s6, %s5968_s6   ;;  %s2439_s5 = sphi %s2508_s5, %s5967_s5   ;;  %s2435_s4 = sphi %s2506_s4, %s5966_s4   ;;  %s2431_s30 = sphi %s2504_s30, %s5965_s30   ;;  %s2427_s29 = sphi %s2502_s29, %s5964_s29   ;;  %s2423_s28 = sphi %s2500_s28, %s5963_s28   ;;  %s2419_s27 = sphi %s2498_s27, %s5962_s27   ;;  %s2415_s1 = sphi %s2496_s1, %s5971_s1   ;;  %s2411_s0 = sphi %s2494_s0, %s5970_s0  }
  0x20   : > { %5294 = sst [smem:[#allocation15_spill]] %s2419_s27  ;;  %s36_s10 = sadd.s32 1, %s2443_s6 }
  0x21   : > { %5295 = sst [smem:[#allocation16_spill]] %s2427_s29  ;;  %s39_s11 = sadd.s32 1, %s2447_s7 }
  0x22   : > { %5296 = sst [smem:[#allocation17_spill]] %s2431_s30  ;;  %p37_p8 = scmp.ge.s32.totalorder %s36_s10, 8 }
  0x23   : > { %5297 = sst [smem:[#allocation18_spill]] %s2443_s6  ;;  %s1943_s12 = sshll.u32 %s2447_s7, 3 }
  0x24   : > { %5298 = sst [smem:[#allocation19_spill]] %s2447_s7  ;;  %s1942_s13 = sadd.s32 4294967294, %s2451_s8  }
  0x25   : > { %5299 = sst [smem:[#allocation20_spill]] %s2451_s8  ;;  %s2553_s14 = sadd.s32 %s2443_s6, %s1943_s12 }
  0x26   : > { %s5973_s10 = smov (%p37_p8, %s36_s10), 0  ;;  %s5975_s11 = smov (!%p37_p8, %s39_s11), %s2447_s7 }
  0x27   : > { %5300 = sst [smem:[#allocation21_spill]] %s5973_s10  ;;  %s52_s16 = sadd.s32 1, %s2431_s30 }
  0x28   : > { %s45_s15 = sld [smem:[#allocation3 + %s2553_s14]]  ;;  %p41_p9 = scmp.ge.s32.totalorder %s5975_s11, 2 }
  0x29   : > { %p59_p10 = scmp.ne.s32.totalorder %s2431_s30, %s2427_s29  ;;  %p65_p11 = scmp.ne.s32.totalorder %s2427_s29, %s2423_s28 }
  0x2a   : > { %p66_p12 = scmp.eq.s32.totalorder %s1941_s9, 0  ;;  %s5977_s11 = smov (%p41_p9, %s5975_s11), 0 }
  0x2b   : > { %5301 = sst [smem:[#allocation22_spill]] %s5977_s11  ;;  %p60_p13 = scmp.eq.s32.totalorder %s2451_s8, 0 }
  0x2c   : > { %p2566_p0 = por %p66_p12, %p65_p11  ;;  %s1944_s18 = sshll.u32 %s5977_s11, 3 }
  0x2d   : > { %s75_s19 = ssub.s32 %s2447_s7, %s5977_s11  ;;  %s47_s20 = sadd.s32 %s1944_s18, %s5973_s10 }
  0x2e   : > { %s5302_s17 = scalar_select %p2566_p0, 1, 0 }
  0x2f   : > { %p76_p1 = scmp.eq.s32.totalorder %s75_s19, 0  ;;  %s48_s21 = sld [smem:[#allocation3 + %s47_s20]] }
  0x30   : > { %s78_s22 = sadd.s32 1, %s2419_s27  ;;  %p88_p2 = scmp.ne.s32.totalorder %s2419_s27, %s2415_s1 }
  0x31   : > { %s2576_s23 = scalar_select %p76_p1, %s2419_s27, %s78_s22  }
  0x32   : > { %p89_p3 = scmp.eq.s32.totalorder %s1941_s9, 15  ;;  %p94_p4 = scmp.ne.s32.totalorder %s2415_s1, %s2411_s0 }
  0x33   : > { %5303 = sst [smem:[#allocation23_spill]] %s2576_s23  ;;  %p95_p5 = scmp.eq.s32.totalorder %s1942_s13, 15 }
  0x34   : > { %p2582_p6 = por %p89_p3, %p88_p2  ;;  %p61_p7 = por %p60_p13, %p59_p10 }
  0x35   : > { %p2591_p8 = por %p95_p5, %p94_p4  ;;  %s49_s26 = ssub.s32 %s45_s15, %s48_s21 }
  0x36   : > { %s5304_s24 = scalar_select %p2582_p6, 1, 0 }
  0x37   : > { %s5305_s25 = scalar_select %p2591_p8, 1, 0 }
  0x38   : > { %p2149_p9 = scmp.lt.s32.totalorder %s2451_s8, 16  ;;  %p50_p11 = scmp.eq.s32.totalorder %s49_s26, 0 }
  0x39   : > { %5306 = sst [smem:[#allocation24_spill]] %s5305_s25  ;;  %s115_s28 = sand.u32 1, %s2431_s30  }
  0x3a   : > { %p2597_p12 = pnand %p2149_p9, %p61_p7  ;;  %s1947_s13 = sshll.u32 %s115_s28, 7 }
  0x3b   : > { %s2602_s12 = scalar_select %p50_p11, %s2431_s30, %s52_s16  }
  0x3c   : > { %s2133_s18 = scalar_select %p61_p7, [#allocation3], [#allocation9] }
  0x3d   : > { %5308 = sst [smem:[#allocation25_spill]] %s2602_s12  ;;  %s5979_s14 = smov (!%p61_p7, %s2553_s14), 0 }
  0x3e   : > { %s5981_s18 = smov (!%p2149_p9, %s2133_s18), [#allocation10]  ;;  %s5983_s14 = smov (!%p2149_p9, %s5979_s14), 0 }
  0x3f   : > { %s122_s19 = sld [smem:[%s5981_s18 + %s5983_s14]]  ;;  %p1951_p10 = scmp.ge.s32.totalorder %s2451_s8, 1 }
  0x40   : > { %s119_s20 = scalar_lea.vmem [#allocation5], %s1947_s13  ;;  %p137_p13 = scmp.lt.s32.totalorder %s2451_s8, 17 }
  0x41   : > { %s129_s15 = sshll.u32 %s119_s20, 4  ;;  %s5310_s2 = sld [smem:[#allocation55_spill]]  ;;  %s2611_s15 = int_to_ptr.vmem [resolvable:$true] %s129_s15 }
  0x42   : > { %p2607_p1 = pnand %p1951_p10, %p137_p13  ;;  %s2618_s14 = scalar_lea.sflag [#allocation6], %s115_s28 }
  0x43   : > { %p2299_p3 = pneg %p2597_p12 }
  0x45   : > { %s2060_s16 = sshll.u32 %s122_s19, 11 }
  0x47   : > { %s2616_s11 = scalar_lea.hbm %s5310_s2, %s2060_s16  ;;  %s2302_s20 = scalar_lea.hbm %s5310_s2, 4096 }
  0x48   : > { %s2297_s13 = scalar_lea.hbm %s2616_s11, 2048  ;;  %p2303_p7 = scmp.lt.u32.totalorder %s2616_s11, %s5310_s2 }
  0x49   : > { %p2298_p2 = scmp.ne.s32.totalorder %s2616_s11, %s2297_s13  ;;  %p2304_p9 = scmp.lt.u32.totalorder %s2302_s20, %s2297_s13 }
  0x4a   : > { %p2306_p10 = scmp.lt.u32.totalorder %s2297_s13, %s2616_s11 }
  0x4b   : > { %p2300_p4 = pnand %p2299_p3, %p2298_p2  ;;  %p2305_p11 = por %p2304_p9, %p2303_p7 }
  0x4d   : > { %p2301_p5 = pneg %p2300_p4  ;;  %p2307_p13 = por %p2306_p10, %p2305_p11 }
  0x4f   : > { %p2308_p8 = pnand %p2307_p13, %p2301_p5 }
  0x51   : > { %2311 = shalt.err (!%p2308_p8)
}
  0x52   : > { %s2312_s28 = scalar_lea.vmem %s2611_s15, 2048  ;;  %s2455_s26 = smov [#allocation5]  }
  0x53   : > { %p2313_p2 = scmp.ne.s32.totalorder %s2611_s15, %s2312_s28  ;;  %s2317_s18 = sshll.u32 %s2455_s26, 4  ;;  %s2318_s18 = int_to_ptr.vmem [resolvable:$false] %s2317_s18 }
  0x54   : > { %s2319_s19 = scalar_lea.vmem %s2318_s18, 4096  ;;  %p2320_p0 = scmp.lt.s32.totalorder %s2611_s15, %s2318_s18 }
  0x55   : > { %p2315_p4 = pnand %p2313_p2, %p2299_p3  ;;  %p2321_p7 = scmp.lt.s32.totalorder %s2319_s19, %s2312_s28 }
  0x57   : > { %p2316_p6 = pneg %p2315_p4  ;;  %p2322_p9 = por %p2321_p7, %p2320_p0 }
  0x59   : > { %p2323_p11 = pnand %p2322_p9, %p2316_p6 }
  0x5b   : > { %2326 = shalt.err (!%p2323_p11)
}
  0x5c   : > { %s2456_s13 = smov 64   ;;  %s2457_s20 = smov 4  }
  0x5d   : > { %2144 = dma.hbm_to_vmem [thread:$0]  (!%p2597_p12), %s2616_s11, 2048, %s2611_s15, %s2618_s14, %s2456_s13, %s2456_s13, %s2457_s20  }
  0x5e   : > { %141 = sbr.rel (%p2607_p1) target bundleno = 462 (0x1ce), region = 24 }
  0x65   : > { %s143_s16 = sand.u32 1, %s2427_s29   ;;  %p5311_p0 = scmp.ne.s32.totalorder %s5302_s17, 0 }
  0x66   : > { %s1952_s22 = sshll.u32 %s143_s16, 7  ;;  %s144_s26 = scalar_lea.sflag [#allocation6], %s143_s16 }
  0x67   : > { %s2649_s28 = scalar_lea.vmem [#allocation5], %s1952_s22 }
  0x68   : > { %2402 = dma.done.wait (%p5311_p0), %s144_s26, 2048  }
  0x69   : > { %2404 = vsyncadd (%p5311_p0), %s144_s26, 4294965248  ;;  %s1954_s18 = sshll.u32 %s2439_s5, 3  ;;  %v224_v0 = vlaneseq  ;;  %v2756_v9 = vld [vmem:[%s2649_s28] sm:$0xf]  ;;  %v2771_v12 = vld [vmem:[%s2649_s28 + $0x8] sm:$0xf] }
  0x6a   : > { %s171_s9 = sadd.s32 %s2435_s4, %s1954_s18  ;;  %v2791_v14 = vld [vmem:[%s2649_s28 + $0x10] sm:$0xf]  ;;  %v2806_v16 = vld [vmem:[%s2649_s28 + $0x4] sm:$0xf]  ;;  %v2809_v17 = vld [vmem:[%s2649_s28 + $0x18] sm:$0xf] }
  0x6b   : > { %s1955_s11 = sshll.u32 %s171_s9, 2  ;;  %v2710_v1 = vshrl.u32 %v224_v0, 7  ;;  %v5319_v18 = vmov 0  ;;  %v2829_v19 = vld [vmem:[%s2649_s28 + $0xc] sm:$0xf]  ;;  %v5344_v54 = vmov 0 }
  0x6c   : > { %s173_s15 = sld [smem:[#allocation4 + %s1955_s11]]  ;;  %s181_s21 = sadd.s32 1, %s1955_s11  ;;  %v2832_v20 = vld [vmem:[%s2649_s28 + $0x20] sm:$0xf]  ;;  %v2851_v22 = vld [vmem:[%s2649_s28 + $0x14] sm:$0xf] }
  0x6d   : > { %s190_s14 = sadd.s32 2, %s1955_s11  ;;  %s2657_s19 = sld [smem:[#allocation4 + %s181_s21]]  ;;  %5312 = vst [vmem:[#allocation26_spill] sm:$0xff] %v2710_v1  ;;  %v2728_v3 = vadd.s32 8, %v2710_v1  ;;  %v2854_v23 = vld [vmem:[%s2649_s28 + $0x28] sm:$0xf] }
  0x6e   : > { %s191_s20 = sld [smem:[#allocation4 + %s190_s14]]  ;;  %s199_s22 = sadd.s32 3, %s1955_s11  ;;  %v2876_v26 = vld [vmem:[%s2649_s28 + $0x1c] sm:$0xf]  ;;  %v2879_v27 = vld [vmem:[%s2649_s28 + $0x30] sm:$0xf] }
  0x6f   : > { %s200_s2 = sld [smem:[#allocation4 + %s199_s22]]  ;;  %5325 = vst [vmem:[#allocation27_spill] sm:$0xff] %v2879_v27  ;;  %v2896_v30 = vld [vmem:[%s2649_s28 + $0x24] sm:$0xf]  ;;  %v2899_v31 = vld [vmem:[%s2649_s28 + $0x38] sm:$0xf] }
  0x70   : > { %5328 = vst [vmem:[#allocation28_spill] sm:$0xff] %v2899_v31  ;;  %v2917_v35 = vld [vmem:[%s2649_s28 + $0x2c] sm:$0xf]  ;;  %v2920_v36 = vld [vmem:[%s2649_s28 + $0x40] sm:$0xf]  ;;  %v5346_v55 = vmov 0 }
  0x71   : > { %5332 = vst [vmem:[#allocation29_spill] sm:$0xff] %v2920_v36  ;;  %v2939_v42 = vld [vmem:[%s2649_s28 + $0x34] sm:$0xf]  ;;  %v2942_v43 = vld [vmem:[%s2649_s28 + $0x48] sm:$0xf]  ;;  %v5355_v63 = vmov 0 }
  0x72   : > { %s175_s13 = sadd.f32 0.5, %s173_s15  ;;  %p174_p6 = scmp.ge.f32.partialorder %s173_s15, 0.0  ;;  %5336 = vst [vmem:[#allocation30_spill] sm:$0xff] %v2939_v42  ;;  %5337 = vst [vmem:[#allocation31_spill] sm:$0xff] %v2942_v43  ;;  %v2961_v49 = vld [vmem:[%s2649_s28 + $0x50] sm:$0xf] }
  0x73   : > { %s1956_s16 = sadd.f32 -0.5, %s173_s15  ;;  %p183_p12 = scmp.ge.f32.partialorder %s2657_s19, 0.0  ;;  %5341 = vst [vmem:[#allocation32_spill] sm:$0xff] %v2961_v49  ;;  %v2964_v50 = vld [vmem:[%s2649_s28 + $0x58] sm:$0xf]  ;;  %v5357_v0 = vmov 0 }
  0x74   : > { %s176_s17 = sfloor.f32 %s175_s13  ;;  %s184_s10 = sadd.f32 0.5, %s2657_s19  ;;  %5342 = vst [vmem:[#allocation33_spill] sm:$0xff] %v2964_v50  ;;  %v2996_v57 = vld [vmem:[%s2649_s28 + $0x3c] sm:$0xf]  ;;  %v2999_v58 = vld [vmem:[%s2649_s28 + $0x60] sm:$0xf] }
  0x75   : > { %s178_s26 = sceil.f32 %s1956_s16  ;;  %p192_p8 = scmp.ge.f32.partialorder %s191_s20, 0.0  ;;  %5352 = vst [vmem:[#allocation34_spill] sm:$0xff] %v2996_v57  ;;  %5353 = vst [vmem:[#allocation35_spill] sm:$0xff] %v2999_v58  ;;  %v5368_v47 = vmov 0  ;;  %v5375_v44 = vmov 0  ;;  %v5377_v37 = vmov 0 }
  0x76   : > { %s5985_s17 = smov (!%p174_p6, %s176_s17), %s178_s26  ;;  %s193_s18 = sadd.f32 0.5, %s191_s20  ;;  %v3090_v25 = vld [vmem:[%s2649_s28 + $0x54] sm:$0xf]  ;;  %v3093_v40 = vld [vmem:[%s2649_s28 + $0x70] sm:$0xf]  ;;  %v5454_v33 = vmov 0 }
  0x77   : > { %s1958_s9 = sadd.f32 -0.5, %s191_s20  ;;  %s2661_s21 = scvt.f32.s32 %s5985_s17  ;;  %5379 = vst [vmem:[#allocation39_spill] sm:$0xff] %v3093_v40  ;;  %v3157_v41 = vld [vmem:[%s2649_s28 + $0x5c] sm:$0xf]  ;;  %v3160_v48 = vld [vmem:[%s2649_s28 + $0x64] sm:$0xf] }
  0x78   : > { %s1957_s7 = sadd.f32 -0.5, %s2657_s19  ;;  %s194_s6 = sfloor.f32 %s193_s18 }
  0x79   : > { %s196_s12 = sceil.f32 %s1958_s9  ;;  %s202_s14 = sadd.f32 0.5, %s200_s2 }
  0x7a   : > { %s5987_s6 = smov (!%p192_p8, %s194_s6), %s196_s12  ;;  %s1959_s11 = sadd.f32 -0.5, %s200_s2 }
  0x7b   : > { %s2098_s30 = scvt.f32.s32 %s5987_s6  ;;  %s185_s15 = sfloor.f32 %s184_s10 }
  0x7c   : > { %s187_s13 = sceil.f32 %s1957_s7  ;;  %p201_p1 = scmp.ge.f32.partialorder %s200_s2, 0.0 }
  0x7d   : > { %s208_s16 = ssub.s32 %s2098_s30, %s2661_s21  ;;  %s203_s22 = sfloor.f32 %s202_s14 }
  0x7e   : > { %s209_s26 = sadd.s32 1, %s208_s16  ;;  %s205_s29 = sceil.f32 %s1959_s11 }
  0x7f   : > { %p210_p3 = scmp.gt.s32.totalorder %s209_s26, 1  ;;  %s5989_s15 = smov (!%p183_p12, %s185_s15), %s187_s13 }
  0x80   : > { %s5993_s22 = smov (!%p201_p1, %s203_s22), %s205_s29  ;;  %s2667_s6 = scvt.f32.s32 %s5989_s15 }
  0x81   : > { %s5991_s26 = smov (!%p210_p3, %s209_s26), 1  ;;  %s2100_s2 = scvt.f32.s32 %s5993_s22 }
  0x82   : > { %s212_s20 = scvt.s32.f32 %s5991_s26 }
  0x83   : > { %s213_s10 = ssub.s32 %s2100_s2, %s2667_s6 }
  0x84   : > { %s2665_s17 = smul.f32 0.25, %s212_s20  ;;  %s214_s18 = sadd.s32 1, %s213_s10 }
  0x85   : > { %p215_p5 = scmp.gt.s32.totalorder %s214_s18, 1 }
  0x86   : > { %s227_s30 = smul.f32 0.0, %s2665_s17  ;;  %s235_s7 = sceil.f32 %s2665_s17 }
  0x87   : > { %s2104_s19 = scvt.f32.s32 %s235_s7  ;;  %s251_s14 = sfloor.f32 %s2665_s17 }
  0x88   : > { %s228_s12 = sfloor.f32 %s227_s30  ;;  %s258_s11 = smul.f32 2.0, %s2665_s17 }
  0x89   : > { %s2102_s29 = scvt.f32.s32 %s228_s12  ;;  %s237_s9 = sadd.s32 %s2104_s19, %s2661_s21 }
  0x8a   : > { %p238_p10 = scmp.gt.s32.totalorder %s237_s9, 0  ;;  %s5995_s18 = smov (!%p215_p5, %s214_s18), 1 }
  0x8b   : > { %s230_s13 = sadd.s32 %s2102_s29, %s2661_s21  ;;  %s2106_s15 = scvt.f32.s32 %s251_s14 }
  0x8c   : > { %s259_s16 = sceil.f32 %s258_s11  ;;  %p231_p13 = scmp.gt.s32.totalorder %s230_s13, 0 }
  0x8d   : > { %s239_s22 = scalar_select %p238_p10, %s237_s9, 0 }
  0x8e   : > { %s217_s26 = scvt.s32.f32 %s5995_s18  ;;  %s2108_s20 = scvt.f32.s32 %s259_s16 }
  0x8f   : > { %p1965_p2 = scmp.lt.s32.totalorder %s237_s9, 16  ;;  %s253_s2 = sadd.s32 %s2106_s15, %s2661_s21 }
  0x90   : > { %s232_s30 = scalar_select %p231_p13, %s230_s13, 0 }
  0x91   : > { %p1960_p4 = scmp.lt.s32.totalorder %s230_s13, 16  ;;  %s275_s7 = sfloor.f32 %s258_s11 }
  0x92   : > { %p254_p7 = scmp.gt.s32.totalorder %s253_s2, 0  ;;  %s261_s10 = sadd.s32 %s2108_s20, %s2661_s21 }
  0x93   : > { %s5997_s22 = smov (!%p1965_p2, %s239_s22), 16  ;;  %s2680_s12 = smul.f32 0.25, %s217_s26 }
  0x94   : > { %s2110_s19 = scvt.f32.s32 %s275_s7  ;;  %p1970_p9 = scmp.lt.s32.totalorder %s253_s2, 16  ;;  %v245_v5 = vstv %s5997_s22 }
  0x95   : > { %p262_p11 = scmp.gt.s32.totalorder %s261_s10, 0  ;;  %s5999_s2 = smov (!%p254_p7, %s253_s2), 0 }
  0x96   : > { %s6001_s30 = smov (!%p1960_p4, %s232_s30), 16  ;;  %p1975_p0 = scmp.lt.s32.totalorder %s261_s10, 16 }
  0x97   : > { %s2685_s18 = sadd.s32 %s2110_s19, %s2661_s21  ;;  %s6003_s10 = smov (!%p262_p11, %s261_s10), 0  ;;  %v242_v4 = vstv %s6001_s30 }
  0x98   : > { %s6005_s2 = smov (!%p1970_p9, %s5999_s2), 16  ;;  %p278_p6 = scmp.gt.s32.totalorder %s2685_s18, 0 }
  0x99   : > { %s282_s29 = smul.f32 3.0, %s2665_s17  ;;  %s6007_s10 = smov (!%p1975_p0, %s6003_s10), 16  ;;  %v266_v6 = vstv %s6005_s2 }
  0x9a   : > { %s323_s9 = smul.f32 0.0, %s2680_s12  ;;  %s331_s19 = sceil.f32 %s2680_s12  ;;  %v269_v7 = vstv %s6007_s10 }
  0x9b   : > { %s2695_s14 = scalar_select %p278_p6, %s2685_s18, 0 }
  0x9c   : > { %s283_s11 = sceil.f32 %s282_s29  ;;  %s299_s13 = sfloor.f32 %s282_s29 }
  0x9d   : > { %s306_s15 = smul.f32 4.0, %s2665_s17  ;;  %s324_s16 = sfloor.f32 %s323_s9 }
  0x9e   : > { %s2112_s26 = scvt.f32.s32 %s283_s11  ;;  %s2114_s20 = scvt.f32.s32 %s299_s13 }
  0x9f   : > { %s2118_s7 = scvt.f32.s32 %s324_s16  ;;  %p1980_p8 = scmp.lt.s32.totalorder %s2685_s18, 16 }
  0xa0   : > { %s307_s23 = sceil.f32 %s306_s15  ;;  %s2120_s25 = scvt.f32.s32 %s331_s19 }
  0xa1   : > { %s326_s27 = sadd.s32 %s2118_s7, %s2667_s6  ;;  %s2702_s0 = sadd.s32 %s2112_s26, %s2661_s21 }
  0xa2   : > { %s2705_s8 = sadd.s32 %s2114_s20, %s2661_s21  ;;  %p327_p12 = scmp.gt.s32.totalorder %s326_s27, 0 }
  0xa3   : > { %p2000_p1 = scmp.lt.s32.totalorder %s326_s27, 16  ;;  %s2116_s17 = scvt.f32.s32 %s307_s23 }
  0xa4   : > { %s333_s29 = sadd.s32 %s2120_s25, %s2667_s6  ;;  %s6009_s27 = smov (!%p327_p12, %s326_s27), 0 }
  0xa5   : > { %p334_p3 = scmp.gt.s32.totalorder %s333_s29, 0  ;;  %p2005_p5 = scmp.lt.s32.totalorder %s333_s29, 16 }
  0xa6   : > { %s6011_s27 = smov (!%p2000_p1, %s6009_s27), 16  ;;  %p286_p10 = scmp.gt.s32.totalorder %s2702_s0, 0 }
  0xa7   : > { %s6013_s29 = smov (!%p334_p3, %s333_s29), 0  ;;  %s2714_s23 = sadd.s32 %s2116_s17, %s2661_s21  ;;  %v2719_v2 = vstv %s6011_s27 }
  0xa8   : > { %s6015_s29 = smov (!%p2005_p5, %s6013_s29), 16  ;;  %p302_p13 = scmp.gt.s32.totalorder %s2705_s8, 0  ;;  %vm339_vm1 = vcmp.le.s32.totalorder %v2719_v2, 0  ;;  %vm340_vm2 = vcmp.le.s32.totalorder %v2719_v2, 1  ;;  %vm341_vm3 = vcmp.le.s32.totalorder %v2719_v2, 2  ;;  %vm342_vm7 = vcmp.le.s32.totalorder %v2719_v2, 3 }
  0xa9   : > { %s6017_s14 = smov (!%p1980_p8, %s2695_s14), 16  ;;  %p1985_p2 = scmp.lt.s32.totalorder %s2702_s0, 16  ;;  %v2744_v8 = vstv %s6015_s29  ;;  %vm343_vm8 = vcmp.le.s32.totalorder %v2719_v2, 4  ;;  %vm344_vm11 = vcmp.le.s32.totalorder %v2719_v2, 5  ;;  %vm345_vm12 = vcmp.le.s32.totalorder %v2719_v2, 6 }
  0xaa   : > { %p310_p4 = scmp.gt.s32.totalorder %s2714_s23, 0  ;;  %vm356_vm4 = vcmp.gt.s32.totalorder %v2744_v8, 0  ;;  %vm357_vm5 = vcmp.gt.s32.totalorder %v2744_v8, 1  ;;  %vm358_vm6 = vcmp.gt.s32.totalorder %v2744_v8, 2  ;;  %p1990_p7 = scmp.lt.s32.totalorder %s2705_s8, 16  ;;  %vm359_vm9 = vcmp.gt.s32.totalorder %v2744_v8, 3 }
  0xab   : > { %s2740_s25 = scalar_select %p286_p10, %s2702_s0, 0  ;;  %vm2766_vm10 = vmand %vm339_vm1, %vm356_vm4  ;;  %vm360_vm14 = vcmp.gt.s32.totalorder %v2744_v8, 4  ;;  %vm347_vm1 = vcmp.le.s32.totalorder %v2719_v2, 8  ;;  %vm361_vm13 = vcmp.gt.s32.totalorder %v2744_v8, 5  ;;  %vm363_vm0 = vcmp.gt.s32.totalorder %v2744_v8, 7 }
  0xac   : > { %s2749_s21 = scalar_select %p302_p13, %s2705_s8, 0  ;;  %vm2786_vm15 = vmand %vm340_vm2, %vm357_vm5  ;;  %vm364_vm5 = vcmp.gt.s32.totalorder %v2744_v8, 8  ;;  %v453_v24 = vsel %vm2766_vm10, %v2756_v9, 4286644096  ;;  %v5414_v56 = vsel %vm2766_vm10, %v2806_v16, 4286644096 }
  0xad   : > { %p1995_p9 = scmp.lt.s32.totalorder %s2714_s23, 16  ;;  %vm2801_vm2 = vmand %vm341_vm3, %vm358_vm6  ;;  %s6019_s25 = smov (!%p1985_p2, %s2740_s25), 16  ;;  %vm362_vm6 = vcmp.gt.s32.totalorder %v2744_v8, 6  ;;  %v455_v28 = vsel %vm2786_vm15, %v2771_v12, 4286644096 }
  0xae   : > { %s2776_s18 = scalar_select %p310_p4, %s2714_s23, 0  ;;  %vm2824_vm4 = vmand %vm342_vm7, %vm359_vm9  ;;  %v457_v32 = vsel %vm2801_vm2, %v2791_v14, 4286644096 }
  0xaf   : > { %v5320_v18 = vsel %vm2824_vm4, 4294967295, %v5319_v18  ;;  %s6021_s21 = smov (!%p1990_p7, %s2749_s21), 16  ;;  %vm2846_vm7 = vmand %vm343_vm8, %vm360_vm14  ;;  %vm365_vm8 = vcmp.gt.s32.totalorder %v2744_v8, 9  ;;  %s753_s0 = smul.f32 2.0, %s2680_s12  ;;  %v459_v38 = vsel %vm2824_vm4, %v2809_v17, 4286644096 }
  0xb0   : > { %s6023_s18 = smov (!%p1995_p9, %s2776_s18), 16  ;;  %vm2871_vm3 = vmand %vm344_vm11, %vm361_vm13  ;;  %vm5333_vm11 = vcmask 257024   ;;  %v461_v45 = vsel %vm2846_vm7, %v2832_v20, 4286644096  ;;  %s746_s8 = sfloor.f32 %s2680_s12  ;;  %vm5421_vm10 = vnez %v5320_v18 }
  0xb1   : > { %vm2891_vm13 = vmand %vm345_vm12, %vm362_vm6  ;;  %vm5329_vm6 = vcmp.le.s32.totalorder %v2719_v2, 7  ;;  %v488_v39 = vsel %vm5333_vm11, %v453_v24, 4286644096  ;;  %v491_v46 = vsel %vm5333_vm11, %v455_v28, 4286644096  ;;  %vm5349_vm12 = vcmp.le.s32.totalorder %v2719_v2, 10  ;;  %s3199_s9 = sceil.f32 %s753_s0  ;;  %s2122_s11 = scvt.f32.s32 %s746_s8 }
  0xb2   : > { %vm2912_vm9 = vmand %vm5329_vm6, %vm363_vm0  ;;  %v463_v52 = vsel %vm2871_vm3, %v2854_v23, 4286644096  ;;  %v465_v60 = vsel %vm2891_vm13, %v2879_v27, 4286644096  ;;  %v3034_v28 = vld [vmem:[%s2649_s28 + $0x4c] sm:$0xf]  ;;  %s2124_s13 = scvt.f32.s32 %s3199_s9  ;;  %p250_p12 = scmp.le.s32.totalorder %s5997_s22, %s6001_s30 }
  0xb3   : > { %vm2934_vm0 = vmand %vm347_vm1, %vm364_vm5  ;;  %vm5338_vm1 = vcmp.le.s32.totalorder %v2719_v2, 9  ;;  %5364 = vst [vmem:[#allocation37_spill] sm:$0xff] %v3034_v28  ;;  %v468_v10 = vsel %vm2912_vm9, %v2996_v57, 4286644096  ;;  %v5405_v57 = vmov 0  ;;  %s3273_s15 = sadd.s32 %s2122_s11, %s2667_s6  ;;  %p388_p1 = scmp.le.s32.totalorder %s6015_s29, %s6011_s27 }
  0xb4   : > { %vm2956_vm5 = vmand %vm5338_vm1, %vm365_vm8  ;;  %vm2976_vm8 = vcmp.ge.s32.totalorder %v2710_v1, %v242_v4  ;;  %vm5348_vm1 = vcmp.gt.s32.totalorder %v2744_v8, 10  ;;  %s3297_s16 = sadd.s32 %s2124_s13, %s2667_s6  ;;  %p749_p11 = scmp.gt.s32.totalorder %s3273_s15, 0 }
  0xb5   : > { %vm5343_vm6 = vmmov %vm5333_vm11  ;;  %v5345_v54 = vsel %vm2976_vm8, 4294967295, %v5344_v54  ;;  %vm2983_vm11 = vcmp.lt.s32.totalorder %v2710_v1, %v245_v5  ;;  %vm5359_vm8 = vcmp.gt.s32.totalorder %v2744_v8, 11  ;;  %v472_v34 = vsel %vm2956_vm5, %v3034_v28, 4286644096  ;;  %p757_p0 = scmp.gt.s32.totalorder %s3297_s16, 0  ;;  %p2014_p6 = scmp.lt.s32.totalorder %s3273_s15, 16 }
  0xb6   : > { %v494_v53 = vsel %vm5343_vm6, %v457_v32, 4286644096  ;;  %v5347_v55 = vsel %vm2983_vm11, 4294967295, %v5346_v55  ;;  %vm2991_vm14 = vmand %vm5349_vm12, %vm5348_vm1  ;;  %vm3018_vm1 = vcmp.lt.s32.totalorder %v2728_v3, %v245_v5  ;;  %vm5360_vm11 = vcmp.le.s32.totalorder %v2719_v2, 11  ;;  %p2019_p8 = scmp.lt.s32.totalorder %s3297_s16, 16  ;;  %s1117_s7 = smul.f32 3.0, %s2680_s12 }
  0xb7   : > { %v496_v61 = vmax.bf16 %v494_v53, %v488_v39  ;;  %vm5354_vm12 = vmmov %vm5343_vm6  ;;  %vm3011_vm6 = vcmp.ge.s32.totalorder %v2728_v3, %v242_v4  ;;  %v5358_v0 = vsel %vm3018_vm1, 4294967295, %v5357_v0  ;;  %v3031_v4 = vld [vmem:[%s2649_s28 + $0x44] sm:$0xf]  ;;  %v462_v5 = vsel %vm2846_vm7, %v2896_v30, 4286644096  ;;  %s750_s26 = scalar_select %p749_p11, %s3273_s15, 0 }
  0xb8   : > { %v498_v62 = vsel %vm5354_vm12, %v459_v38, 4286644096  ;;  %v5356_v63 = vsel %vm3011_vm6, 4294967295, %v5355_v63  ;;  %vm3026_vm4 = vmand %vm5360_vm11, %vm5359_vm8  ;;  %5363 = vst [vmem:[#allocation36_spill] sm:$0xff] %v3031_v4  ;;  %v467_v32 = vsel %vm2912_vm9, %v2899_v31, 4286644096  ;;  %vm3046_vm11 = vcmp.ge.s32.totalorder %v2710_v1, %v266_v6  ;;  %p274_p3 = scmp.le.s32.totalorder %s6007_s10, %s6005_s2  ;;  %s3713_s19 = sfloor.f32 %s753_s0 }
  0xb9   : > { %v500_v38 = vmax.bf16 %v498_v62, %v491_v46  ;;  %vm5365_vm8 = vmmov %vm5354_vm12  ;;  %v5366_v53 = vmov 0  ;;  %vm3053_vm12 = vcmp.lt.s32.totalorder %v2710_v1, %v269_v7  ;;  %vm5370_vm7 = vcmp.gt.s32.totalorder %v2744_v8, 12  ;;  %s758_s20 = scalar_select %p757_p0, %s3297_s16, 0 }
  0xba   : > { %v502_v39 = vsel %vm5365_vm8, %v461_v45, 4286644096  ;;  %v5367_v53 = vsel %vm3046_vm11, 4294967295, %v5366_v53  ;;  %v5369_v47 = vsel %vm3053_vm12, 4294967295, %v5368_v47  ;;  %vm5371_vm6 = vcmp.le.s32.totalorder %v2719_v2, 12  ;;  %s6025_s26 = smov (!%p2014_p6, %s750_s26), 16  ;;  %p3721_p5 = por %p388_p1, %p250_p12 }
  0xbb   : > { %vm3061_vm1 = vmand %vm5371_vm6, %vm5370_vm7  ;;  %v3066_v45 = vld [vmem:[%s2649_s28 + $0x68] sm:$0xf]  ;;  %v464_v46 = vsel %vm2871_vm3, %v2917_v35, 4286644096  ;;  %v469_v62 = vsel %vm2934_vm0, %v2920_v36, 4286644096  ;;  %v504_v59 = vmax.bf16 %v502_v39, %v496_v61  ;;  %vm3078_vm11 = vcmp.ge.s32.totalorder %v2728_v3, %v266_v6  ;;  %s2126_s23 = scvt.f32.s32 %s3713_s19  ;;  %s3742_s0 = sceil.f32 %s1117_s7 }
  0xbc   : > { %5374 = vst [vmem:[#allocation38_spill] sm:$0xff] %v3066_v45  ;;  %v506_v51 = vsel %vm5365_vm8, %v463_v52, 4286644096  ;;  %v5376_v44 = vsel %vm3078_vm11, 4294967295, %v5375_v44  ;;  %vm3085_vm6 = vcmp.lt.s32.totalorder %v2728_v3, %v269_v7  ;;  %v466_v52 = vsel %vm2891_vm13, %v2939_v42, 4286644096  ;;  %vm5380_vm3 = vmmov %vm5365_vm8  ;;  %p298_p10 = scmp.le.s32.totalorder %s6019_s25, %s6017_s14  ;;  %p3757_p13 = por %p388_p1, %p274_p3 }
  0xbd   : > { %v5378_v37 = vsel %vm3085_vm6, 4294967295, %v5377_v37  ;;  %v471_v6 = vsel %vm2956_vm5, %v2942_v43, 4286644096  ;;  %v508_v61 = vmax.bf16 %v506_v51, %v500_v38  ;;  %v510_v39 = vsel %vm5380_vm3, %v465_v60, 4286644096  ;;  %vm5385_vm13 = vmmov %vm5380_vm3  ;;  %s6027_s20 = smov (!%p2019_p8, %s758_s20), 16  ;;  %s2128_s11 = scvt.f32.s32 %s3742_s0 }
  0xbe   : > { %vm5381_vm7 = vcmp.gt.s32.totalorder %v2744_v8, 13  ;;  %vm5382_vm8 = vcmp.le.s32.totalorder %v2719_v2, 13  ;;  %v473_v29 = vsel %vm2991_vm14, %v2961_v49, 4286644096  ;;  %v475_v51 = vsel %vm3026_vm4, %v2964_v50, 4286644096  ;;  %vm5390_vm6 = vmmov %vm5385_vm13  ;;  %s3801_s13 = sadd.s32 %s2126_s23, %s2667_s6  ;;  %p322_p2 = scmp.le.s32.totalorder %s6023_s18, %s6021_s21 }
  0xbf   : > { %vm3106_vm11 = vmand %vm5382_vm8, %vm5381_vm7  ;;  %v512_v60 = vmax.bf16 %v510_v39, %v504_v59  ;;  %v514_v38 = vsel %vm5385_vm13, %v467_v32, 4286644096  ;;  %vm5386_vm3 = vcmp.gt.s32.totalorder %v2744_v8, 14  ;;  %vm5387_vm7 = vcmp.le.s32.totalorder %v2719_v2, 14  ;;  %v3133_v39 = vld [vmem:[%s2649_s28 + $0x78] sm:$0xf]  ;;  %p3811_p4 = por %p388_p1, %p298_p10  ;;  %s3842_s19 = sadd.s32 %s2128_s11, %s2667_s6 }
  0xc0   : > { %vm3121_vm8 = vmand %vm5387_vm7, %vm5386_vm3  ;;  %v477_v50 = vsel %vm3061_vm1, %v2999_v58, 4286644096  ;;  %v516_v59 = vmax.bf16 %v514_v38, %v508_v61  ;;  %v518_v32 = vsel %vm5390_vm6, %v469_v62, 4286644096  ;;  %5391 = vst [vmem:[#allocation40_spill] sm:$0xff] %v3133_v39  ;;  %v5393_v58 = vstv %s6017_s14  ;;  %p1113_p7 = scmp.gt.s32.totalorder %s3801_s13, 0  ;;  %p3874_p11 = por %p388_p1, %p322_p2 }
  0xc1   : > { %v470_v49 = vsel %vm2934_vm0, %v3031_v4, 4286644096  ;;  %v520_v43 = vmax.bf16 %v518_v32, %v512_v60  ;;  %vm5392_vm9 = vmmov %vm5390_vm6  ;;  %vm3145_vm13 = vcmp.ge.s32.totalorder %v2710_v1, %v5393_v58  ;;  %v5394_v61 = vmov 0  ;;  %s642_s9 = scalar_select %p3721_p5, 1, 0 }
  0xc2   : > { %v522_v36 = vsel %vm5392_vm9, %v471_v6, 4286644096  ;;  %v5395_v61 = vsel %vm3145_vm13, 4294967295, %v5394_v61  ;;  %v5396_v62 = vstv %s6019_s25  ;;  %v5397_v38 = vmov 0  ;;  %vm5399_vm0 = vmmov %vm5392_vm9  ;;  %s675_s16 = scalar_select %p3757_p13, 1, 0 }
  0xc3   : > { %vm3152_vm6 = vcmp.lt.s32.totalorder %v2710_v1, %v5396_v62  ;;  %v479_v6 = vsel %vm3106_vm11, %v3066_v45, 4286644096  ;;  %v524_v58 = vmax.bf16 %v522_v36, %v516_v59  ;;  %v526_v60 = vsel %vm5399_vm0, %v473_v29, 4286644096  ;;  %vm5400_vm5 = vmmov %vm5399_vm0  ;;  %v3224_v45 = vld [vmem:[%s2649_s28 + $0x6c] sm:$0xf]  ;;  %p811_p8 = scmp.le.s32.totalorder %s6027_s20, %s6025_s26  ;;  %s4292_s15 = sfloor.f32 %s1117_s7 }
  0xc4   : > { %v5398_v38 = vsel %vm3152_vm6, 4294967295, %v5397_v38  ;;  %v530_v32 = vsel %vm5400_vm5, %v475_v51, 4286644096  ;;  %v5401_v62 = vstv %s6017_s14  ;;  %v5402_v28 = vmov 0  ;;  %s708_s23 = scalar_select %p3811_p4, 1, 0 }
  0xc5   : > { %vm3171_vm3 = vcmp.ge.s32.totalorder %v2728_v3, %v5401_v62  ;;  %v5404_v4 = vstv %s6019_s25  ;;  %vm5407_vm9 = vcmp.gt.s32.totalorder %v2744_v8, 15  ;;  %vm5408_vm0 = vcmp.le.s32.totalorder %v2719_v2, 15  ;;  %p1121_p9 = scmp.gt.s32.totalorder %s3842_s19, 0  ;;  %p2028_p0 = scmp.lt.s32.totalorder %s3801_s13, 16 }
  0xc6   : > { %v5403_v28 = vsel %vm3171_vm3, 4294967295, %v5402_v28  ;;  %vm3178_vm7 = vcmp.lt.s32.totalorder %v2728_v3, %v5404_v4  ;;  %vm3186_vm13 = vmand %vm5408_vm0, %vm5407_vm9  ;;  %v474_v29 = vsel %vm2991_vm14, %v3090_v25, 4286644096  ;;  %v481_v51 = vsel %vm3121_vm8, %v3093_v40, 4286644096  ;;  %s1114_s27 = scalar_select %p1113_p7, %s3801_s13, 0 }
  0xc7   : > { %v5406_v57 = vsel %vm3178_vm7, 4294967295, %v5405_v57  ;;  %v528_v4 = vmax.bf16 %v526_v60, %v520_v43  ;;  %v534_v59 = vsel %vm5400_vm5, %v477_v50, 4286644096  ;;  %v5411_v8 = vstv %s6021_s21  ;;  %vm5415_vm14 = vmmov %vm5400_vm5  ;;  %p2033_p6 = scmp.lt.s32.totalorder %s3842_s19, 16  ;;  %p3974_p1 = por %p811_p8, %p250_p12 }
  0xc8   : > { %vm3204_vm9 = vcmp.ge.s32.totalorder %v2710_v1, %v5411_v8  ;;  %v5412_v2 = vmov 0  ;;  %v532_v62 = vmax.bf16 %v530_v32, %v524_v58  ;;  %v551_v40 = vsel %vm5415_vm14, %v5414_v56, 4286644096  ;;  %vm5417_vm0 = vmmov %vm5400_vm5  ;;  %s1122_s29 = scalar_select %p1121_p9, %s3842_s19, 0 }
  0xc9   : > { %v5413_v2 = vsel %vm3204_vm9, 4294967295, %v5412_v2  ;;  %v5416_v43 = vsel %vm2786_vm15, %v2829_v19, 4286644096  ;;  %v5418_v60 = vsel %vm2801_vm2, %v2851_v22, 4286644096  ;;  %vm5419_vm5 = vmmov %vm5417_vm0  ;;  %vm5425_vm2 = vnez %v5347_v55  ;;  %s6029_s27 = smov (!%p2028_p0, %s1114_s27), 16  ;;  %p4249_p5 = por %p811_p8, %p274_p3 }
  0xca   : > { %v554_v50 = vsel %vm5417_vm0, %v5416_v43, 4286644096  ;;  %v557_v8 = vsel %vm5419_vm5, %v5418_v60, 4286644096  ;;  %vm5420_vm9 = vmmov %vm5417_vm0  ;;  %v5422_v32 = vsel %vm5421_vm10, %v2876_v26, 4286644096  ;;  %v536_v24 = vmax.bf16 %v534_v59, %v528_v4  ;;  %s2130_s19 = scvt.f32.s32 %s4292_s15  ;;  %p4546_p0 = por %p811_p8, %p322_p2 }
  0xcb   : > { %v538_v11 = vsel %vm5420_vm9, %v479_v6, 4286644096  ;;  %v559_v58 = vmax.bf16 %v557_v8, %v551_v40  ;;  %vm5423_vm14 = vmmov %vm5417_vm0  ;;  %v483_v15 = vsel %vm3186_vm13, %v3133_v39, 4286644096  ;;  %v478_v43 = vsel %vm3061_vm1, %v3160_v48, 4286644096 }
  0xcc   : > { %v561_v13 = vsel %vm5423_vm14, %v5422_v32, 4286644096  ;;  %vm5424_vm15 = vmmov %vm5417_vm0  ;;  %vm5426_vm0 = vnez %v5345_v54  ;;  %vm5429_vm14 = vnez %v5358_v0  ;;  %v3262_v60 = vld [vmem:[%s2649_s28 + $0x7c] sm:$0xf]  ;;  %v540_v8 = vmax.bf16 %v538_v11, %v532_v62  ;;  %s741_s11 = scalar_select %p3874_p11, 1, 0 }
  0xcd   : > { %v565_v56 = vsel %vm5424_vm15, %v462_v5, 4286644096  ;;  %v563_v40 = vmax.bf16 %v561_v13, %v554_v50  ;;  %vm5427_vm9 = vmmov %vm5419_vm5  ;;  %vm5430_vm15 = vnez %v5356_v63  ;;  %v476_v5 = vsel %vm3026_vm4, %v3157_v41, 4286644096  ;;  %s6031_s29 = smov (!%p2033_p6, %s1122_s29), 16  ;;  %p4526_p11 = por %p811_p8, %p298_p10 }
  0xce   : > { %v569_v18 = vsel %vm5427_vm9, %v464_v46, 4286644096  ;;  %vm5428_vm10 = vmmov %vm5419_vm5  ;;  %v567_v50 = vmax.bf16 %v565_v56, %v559_v58  ;;  %vm5434_vm1 = vnez %v5378_v37  ;;  %vm5435_vm3 = vnez %v5376_v44  ;;  %s1024_s8 = scalar_select %p3974_p1, 1, 0 }
  0xcf   : > { %v573_v6 = vsel %vm5428_vm10, %v466_v52, 4286644096  ;;  %vm5431_vm9 = vmmov %vm5419_vm5  ;;  %vm5432_vm10 = vnez %v5367_v53  ;;  %v3259_v52 = vld [vmem:[%s2649_s28 + $0x74] sm:$0xf]  ;;  %v571_v32 = vmax.bf16 %v569_v18, %v563_v40  ;;  %v5439_v39 = vstv %s6023_s18  ;;  %p1175_p6 = scmp.le.s32.totalorder %s6031_s29, %s6029_s27 }
  0xd0   : > { %v577_v46 = vsel %vm5431_vm9, %v468_v10, 4286644096  ;;  %vm5433_vm4 = vmmov %vm5419_vm5  ;;  %v575_v13 = vmax.bf16 %v573_v6, %v567_v50  ;;  %vm3278_vm12 = vcmp.lt.s32.totalorder %v2710_v1, %v5439_v39  ;;  %v482_v7 = vsel %vm3121_vm8, %v3259_v52, 4286644096  ;;  %v5546_v1 = vld [vmem:[#allocation33_spill] sm:$0xff] }
  0xd1   : > { %v581_v21 = vsel %vm5433_vm4, %v470_v49, 4286644096  ;;  %vm273_vm9 = vmand %vm5435_vm3, %vm5434_vm1  ;;  %v480_v49 = vsel %vm3106_vm11, %v3224_v45, 4286644096  ;;  %v579_v59 = vmax.bf16 %v577_v46, %v571_v32  ;;  %v484_v39 = vsel %vm3186_vm13, %v3262_v60, 4286644096  ;;  %p4942_p8 = por %p1175_p6, %p250_p12  ;;  %p4960_p1 = por %p1175_p6, %p274_p3 }
  0xd2   : > { %vm5436_vm7 = vmmov %vm5433_vm4  ;;  %v583_v54 = vmax.bf16 %v581_v21, %v575_v13  ;;  %vm5452_vm8 = vnez %v5369_v47  ;;  %v5457_v47 = vmov 0  ;;  %vm5463_vm3 = vnez %v5406_v57 }
  0xd3   : > { %v542_v10 = vsel %vm5436_vm7, %v481_v51, 4286644096  ;;  %vm5437_vm6 = vmmov %vm5433_vm4  ;;  %vm5464_vm1 = vnez %v5403_v28  ;;  %v5465_v37 = vstv %s6021_s21  ;;  %s1415_s15 = scalar_select %p4960_p1, 1, 0 }
  0xd4   : > { %v546_v58 = vsel %vm5437_vm6, %v483_v15, 4286644096  ;;  %vm5438_vm5 = vmmov %vm5433_vm4  ;;  %v544_v36 = vmax.bf16 %v542_v10, %v536_v24  ;;  %v5468_v15 = vstv %s6023_s18  ;;  %v5481_v24 = vmov 0  ;;  %s163_s18 = sand.u32 1, %s2415_s1  }
  0xd5   : > { %v585_v56 = vsel %vm5438_vm5, %v472_v34, 4286644096  ;;  %vm5442_vm7 = vmmov %vm5433_vm4  ;;  %v5444_v34 = vmov 0  ;;  %v548_v63 = vmax.bf16 %v546_v58, %v540_v8  ;;  %v5484_v10 = vmov 0 }
  0xd6   : > { %v589_v51 = vsel %vm5442_vm7, %v474_v29, 4286644096  ;;  %vm5443_vm6 = vmand %vm5426_vm0, %vm5425_vm2  ;;  %v5449_v29 = vmov 0  ;;  %v587_v62 = vmax.bf16 %v585_v56, %v579_v59  ;;  %v597_v0 = vsel %vm5442_vm7, %v478_v43, 4286644096 }
  0xd7   : > { %vm3292_vm5 = vmpackc.low %vm5443_vm6, %vm5443_vm6  ;;  %v591_v53 = vmax.bf16 %v589_v51, %v583_v54  ;;  %v549_v50 = vmax.bf16 %v548_v63, %v544_v36  ;;  %v3436_v54 = vstv %s6027_s20  ;;  %s1105_s20 = scalar_select %p4546_p0, 1, 0 }
  0xd8   : > { %v5445_v34 = vsel %vm3292_vm5, 4294967295, %v5444_v34  ;;  %vm5447_vm11 = vmmov %vm5433_vm4 }
  0xd9   : > { %5446 = vst [vmem:[#allocation41_spill] sm:$0xff] %v5445_v34  ;;  %v593_v55 = vsel %vm5447_vm11, %v476_v5, 4286644096  ;;  %vm5448_vm2 = vmand %vm5430_vm15, %vm5429_vm14  ;;  %vm5460_vm15 = vnez %v5398_v38  ;;  %v599_v5 = vmax.bf16 %v597_v0, %v591_v53  ;;  %v5477_v38 = vmov 0 }
  0xda   : > { %vm3312_vm0 = vmpackc.low %vm5448_vm2, %vm5448_vm2  ;;  %vm3351_vm2 = vcmp.ge.s32.totalorder %v2728_v3, %v5465_v37  ;;  %v595_v18 = vmax.bf16 %v593_v55, %v587_v62  ;;  %v619_v32 = vsel %vm3292_vm5, %v549_v50, 4286644096  ;;  %vm5537_vm5 = vcmp.gt.s32.totalorder %v3436_v54, 13 }
  0xdb   : > { %v5450_v29 = vsel %vm3312_vm0, 4294967295, %v5449_v29  ;;  %vm5453_vm13 = vmand %vm5432_vm10, %vm5452_vm8  ;;  %vm5461_vm10 = vnez %v5395_v61  ;;  %vm3358_vm8 = vcmp.lt.s32.totalorder %v2728_v3, %v5468_v15  ;;  %v5474_v3 = vmov 0 }
  0xdc   : > { %5451 = vst [vmem:[#allocation42_spill] sm:$0xff] %v5450_v29  ;;  %vm3322_vm4 = vmpackc.low %vm5453_vm13, %vm5453_vm13 }
  0xdd   : > { %v5455_v33 = vsel %vm3322_vm4, 4294967295, %v5454_v33  ;;  %vm3333_vm14 = vmpackc.low %vm273_vm9, %vm273_vm9  ;;  %v653_v21 = vsel %vm3322_vm4, %v549_v50, 4286644096 }
  0xde   : > { %5456 = vst [vmem:[#allocation43_spill] sm:$0xff] %v5455_v33  ;;  %v5458_v47 = vsel %vm3333_vm14, 4294967295, %v5457_v47  ;;  %vm296_vm6 = vmand %vm5461_vm10, %vm5460_vm15 }
  0xdf   : > { %5459 = vst [vmem:[#allocation44_spill] sm:$0xff] %v5458_v47  ;;  %vm5462_vm11 = vmmov %vm5442_vm7 }
  0xe0   : > { %v601_v44 = vsel %vm5462_vm11, %v480_v49, 4286644096  ;;  %vm5471_vm13 = vmmov %vm5442_vm7  ;;  %vm5472_vm7 = vnez %v5413_v2 }
  0xe1   : > { %v605_v6 = vsel %vm5471_vm13, %v482_v7, 4286644096  ;;  %vm320_vm11 = vmand %vm5472_vm7, %vm3278_vm12  ;;  %v603_v46 = vmax.bf16 %v601_v44, %v595_v18  ;;  %vm782_vm7 = vcmp.gt.s32.totalorder %v3436_v54, 3 }
  0xe2   : > { %vm5473_vm9 = vmmov %vm5471_vm13  ;;  %v607_v2 = vmax.bf16 %v605_v6, %v599_v5 }
  0xe3   : > { %v609_v43 = vsel %vm5473_vm9, %v484_v39, 4286644096  ;;  %vm3376_vm13 = vmpackc.low %vm296_vm6, %vm296_vm6  ;;  %v3433_v39 = vstv %s6025_s26  ;;  %s1078_s26 = scalar_select %p4526_p11, 1, 0 }
  0xe4   : > { %v5475_v3 = vsel %vm3376_vm13, 4294967295, %v5474_v3  ;;  %vm321_vm12 = vmand %vm3351_vm2, %vm3358_vm8  ;;  %v611_v61 = vmax.bf16 %v609_v43, %v603_v46  ;;  %v686_v57 = vsel %vm3376_vm13, %v549_v50, 4286644096  ;;  %vm5501_vm2 = vcmp.le.s32.totalorder %v3433_v39, 4 }
  0xe5   : > { %5476 = vst [vmem:[#allocation45_spill] sm:$0xff] %v5475_v3  ;;  %vm3390_vm9 = vmpackc.low %vm320_vm11, %vm320_vm11  ;;  %vm779_vm11 = vcmp.gt.s32.totalorder %v3436_v54, 0  ;;  %vm5505_vm13 = vcmp.le.s32.totalorder %v3433_v39, 5 }
  0xe6   : > { %v5478_v38 = vsel %vm3390_vm9, 4294967295, %v5477_v38  ;;  %vm5480_vm15 = vmand %vm5464_vm1, %vm5463_vm3  ;;  %v612_v8 = vmax.bf16 %v611_v61, %v607_v2  ;;  %v719_v28 = vsel %vm3390_vm9, %v549_v50, 4286644096  ;;  %vm5220_vm3 = vcmask 261120  }
  0xe7   : > { %5479 = vst [vmem:[#allocation46_spill] sm:$0xff] %v5478_v38  ;;  %vm3400_vm10 = vmpackc.low %vm5480_vm15, %vm5480_vm15  ;;  %vm762_vm1 = vcmp.le.s32.totalorder %v3433_v39, 0  ;;  %vm5493_vm15 = vcmp.gt.s32.totalorder %v3436_v54, 2 }
  0xe8   : > { %v5482_v24 = vsel %vm3400_vm10, 4294967295, %v5481_v24  ;;  %vm3408_vm6 = vmpackc.low %vm321_vm12, %vm321_vm12  ;;  %v620_v58 = vsel %vm3312_vm0, %v612_v8, 4286644096  ;;  %v654_v13 = vsel %vm3333_vm14, %v612_v8, 4286644096 }
  0xe9   : > { %5483 = vst [vmem:[#allocation47_spill] sm:$0xff] %v5482_v24  ;;  %v5485_v10 = vsel %vm3408_vm6, 4294967295, %v5484_v10  ;;  %v687_v56 = vsel %vm3400_vm10, %v612_v8, 4286644096  ;;  %v2010_v4 = vcombine.low %v619_v32, %v620_v58  ;;  %v2011_v49 = vcombine.low %v653_v21, %v654_v13  ;;  %vm3454_vm8 = vmand %vm762_vm1, %vm779_vm11  ;;  %v5541_v13 = vld [vmem:[#allocation29_spill] sm:$0xff] }
  0xea   : > { %5486 = vst [vmem:[#allocation48_spill] sm:$0xff] %v5485_v10  ;;  %v720_v59 = vsel %vm3408_vm6, %v612_v8, 4286644096  ;;  %v2012_v51 = vcombine.low %v686_v57, %v687_v56  ;;  %vm5489_vm10 = vcmp.gt.s32.totalorder %v3436_v54, 1  ;;  %vm5494_vm6 = vcmp.le.s32.totalorder %v3433_v39, 2 }
  0xeb   : > { %v2013_v7 = vcombine.low %v719_v28, %v720_v59  ;;  %v628_v55 = vsel %vm5220_vm3, %v2010_v4, 4286644096  ;;  %v661_v36 = vsel %vm5220_vm3, %v2011_v49, 4286644096  ;;  %vm3480_vm12 = vmand %vm5494_vm6, %vm5493_vm15  ;;  %vm5497_vm1 = vcmp.le.s32.totalorder %v3433_v39, 3  ;;  %v5545_v49 = vld [vmem:[#allocation32_spill] sm:$0xff] }
  0xec   : > { %v694_v63 = vsel %vm5220_vm3, %v2012_v51, 4286644096  ;;  %v630_v0 = vunpack.i.l.bf16 %v628_v55  ;;  %v631_v53 = vunpack.i.h.bf16 %v628_v55  ;;  %v663_v44 = vunpack.i.l.bf16 %v661_v36  ;;  %vm3493_vm11 = vmand %vm5497_vm1, %vm782_vm7 }
  0xed   : > { %v727_v62 = vsel %vm5220_vm3, %v2013_v7, 4286644096  ;;  %v664_v37 = vunpack.i.h.bf16 %v661_v36  ;;  %v696_v11 = vunpack.i.l.bf16 %v694_v63  ;;  %v697_v15 = vunpack.i.h.bf16 %v694_v63 }
  0xee   : > { %v729_v40 = vunpack.i.l.bf16 %v727_v62  ;;  %v730_v18 = vunpack.i.h.bf16 %v727_v62  ;;  %vm5490_vm3 = vcmp.le.s32.totalorder %v3433_v39, 1  ;;  %v3470_v43 = vmax.f32 %v630_v0, %v631_v53 }
  0xef   : > { %vm3466_vm14 = vmand %vm5490_vm3, %vm5489_vm10  ;;  %v3472_v50 = vmax.f32 %v663_v44, %v664_v37  ;;  %v3484_v2 = vmax.f32 %v696_v11, %v697_v15  ;;  %vm5500_vm3 = vcmp.gt.s32.totalorder %v3436_v54, 4  ;;  %vm5504_vm10 = vcmp.gt.s32.totalorder %v3436_v54, 5 }
  0xf0   : > { %v3497_v8 = vmax.f32 %v729_v40, %v730_v18  ;;  %vm3506_vm0 = vmand %vm5501_vm2, %vm5500_vm3  ;;  %v5506_v21 = vmov 0  ;;  %vm5508_vm15 = vcmp.gt.s32.totalorder %v3436_v54, 6  ;;  %vm5509_vm6 = vcmp.le.s32.totalorder %v3433_v39, 6  ;;  %v5536_v40 = vld [vmem:[#allocation34_spill] sm:$0xff] }
  0xf1   : > { %vm3519_vm4 = vmand %vm5505_vm13, %vm5504_vm10  ;;  %vm5512_vm10 = vcmp.gt.s32.totalorder %v3436_v54, 7  ;;  %vm5513_vm2 = vcmp.le.s32.totalorder %v3433_v39, 7  ;;  %v844_v4 = vsel %vm3454_vm8, %v2756_v9, 4286644096  ;;  %vm5517_vm13 = vcmp.le.s32.totalorder %v3433_v39, 8 }
  0xf2   : > { %v5507_v21 = vsel %vm3519_vm4, 4294967295, %v5506_v21  ;;  %vm3532_vm9 = vmand %vm5509_vm6, %vm5508_vm15  ;;  %vm5516_vm15 = vcmp.gt.s32.totalorder %v3436_v54, 8  ;;  %v5518_v51 = vmov 0  ;;  %v846_v9 = vsel %vm3466_vm14, %v2771_v12, 4286644096  ;;  %v5544_v12 = vld [vmem:[#allocation37_spill] sm:$0xff] }
  0xf3   : > { %vm3542_vm1 = vmand %vm5513_vm2, %vm5512_vm10  ;;  %vm5520_vm10 = vcmp.gt.s32.totalorder %v3436_v54, 9  ;;  %vm5521_vm6 = vcmp.le.s32.totalorder %v3433_v39, 9  ;;  %v5522_v55 = vmov 0  ;;  %v848_v36 = vsel %vm3480_vm12, %v2791_v14, 4286644096  ;;  %v5543_v14 = vld [vmem:[#allocation31_spill] sm:$0xff] }
  0xf4   : > { %vm3558_vm2 = vmand %vm5517_vm13, %vm5516_vm15  ;;  %v850_v63 = vsel %vm3493_vm11, %v2809_v17, 4286644096  ;;  %vm5524_vm13 = vcmp.gt.s32.totalorder %v3436_v54, 10  ;;  %vm5525_vm15 = vcmp.le.s32.totalorder %v3433_v39, 10  ;;  %v5526_v62 = vmov 0 }
  0xf5   : > { %v5519_v51 = vsel %vm3558_vm2, 4294967295, %v5518_v51  ;;  %vm3572_vm7 = vmand %vm5521_vm6, %vm5520_vm10  ;;  %v852_v0 = vsel %vm3506_vm0, %v2832_v20, 4286644096  ;;  %vm5528_vm10 = vcmp.gt.s32.totalorder %v3436_v54, 11  ;;  %vm5529_vm3 = vcmp.le.s32.totalorder %v3433_v39, 11  ;;  %v5542_v20 = vld [vmem:[#allocation36_spill] sm:$0xff] }
  0xf6   : > { %v5523_v55 = vsel %vm3572_vm7, 4294967295, %v5522_v55  ;;  %vm3589_vm6 = vmand %vm5525_vm15, %vm5524_vm13  ;;  %v5530_v53 = vmov 0  ;;  %v854_v44 = vsel %vm3519_vm4, %v2854_v23, 4286644096  ;;  %v856_v37 = vsel %vm3532_vm9, %v2879_v27, 4286644096 }
  0xf7   : > { %v5527_v62 = vsel %vm3589_vm6, 4294967295, %v5526_v62  ;;  %vm3606_vm13 = vmand %vm5529_vm3, %vm5528_vm10  ;;  %vm5532_vm15 = vcmp.gt.s32.totalorder %v3436_v54, 12  ;;  %vm5533_vm3 = vcmp.le.s32.totalorder %v3433_v39, 12  ;;  %v5534_v11 = vmov 0 }
  0xf8   : > { %v5531_v53 = vsel %vm3606_vm13, 4294967295, %v5530_v53  ;;  %vm3623_vm10 = vmand %vm5533_vm3, %vm5532_vm15  ;;  %v857_v23 = vsel %vm3532_vm9, %v2939_v42, 4286644096  ;;  %v858_v15 = vsel %vm3542_vm1, %v2899_v31, 4286644096  ;;  %vm5538_vm4 = vcmp.le.s32.totalorder %v3433_v39, 13 }
  0xf9   : > { %v5535_v11 = vsel %vm3623_vm10, 4294967295, %v5534_v11  ;;  %vm3640_vm15 = vmand %vm5538_vm4, %vm5537_vm5  ;;  %v5539_v59 = vmov 0  ;;  %v860_v58 = vsel %vm3558_vm2, %v5541_v13, 4286644096  ;;  %v862_v18 = vsel %vm3572_vm7, %v5543_v14, 4286644096 }
  0xfa   : > { %v5540_v59 = vsel %vm3640_vm15, 4294967295, %v5539_v59  ;;  %v864_v28 = vsel %vm3589_vm6, %v5545_v49, 4286644096  ;;  %v866_v17 = vsel %vm3606_vm13, %v5546_v1, 4286644096  ;;  %v5547_v13 = vld [vmem:[#allocation35_spill] sm:$0xff] }
  0xfb   : > { %v868_v7 = vsel %vm3623_vm10, %v5547_v13, 4286644096  ;;  %vm5548_vm5 = vcmp.gt.s32.totalorder %v3436_v54, 14  ;;  %vm5549_vm4 = vcmp.le.s32.totalorder %v3433_v39, 14  ;;  %v5552_v1 = vld [vmem:[#allocation38_spill] sm:$0xff]  ;;  %vm5553_vm3 = vcmask 257024  }
  0xfc   : > { %vm3679_vm9 = vmand %vm5549_vm4, %vm5548_vm5  ;;  %v870_v13 = vsel %vm3640_vm15, %v5552_v1, 4286644096  ;;  %v877_v49 = vsel %vm5553_vm3, %v844_v4, 4286644096  ;;  %vm5554_vm5 = vcmp.gt.s32.totalorder %v3436_v54, 15  ;;  %vm5555_vm4 = vcmp.le.s32.totalorder %v3433_v39, 15 }
  0xfd   : > { %vm3694_vm13 = vmand %vm5555_vm4, %vm5554_vm5  ;;  %v5563_v54 = vld [vmem:[#allocation39_spill] sm:$0xff]  ;;  %v5582_v46 = vsel %vm3493_vm11, %v2876_v26, 4286644096  ;;  %v5589_v32 = vsel %vm3542_vm1, %v5536_v40, 4286644096  ;;  %vm5594_vm1 = vnez %v5519_v51 }
  0xfe   : > { %vm5558_vm10 = vmmov %vm5553_vm3  ;;  %v872_v39 = vsel %vm3679_vm9, %v5563_v54, 4286644096 }
  0xff   : > { %v880_v14 = vsel %vm5558_vm10, %v846_v9, 4286644096  ;;  %vm5559_vm6 = vmmov %vm5553_vm3 }
 0x100   : > { %v883_v42 = vsel %vm5559_vm6, %v848_v36, 4286644096  ;;  %vm5560_vm7 = vmmov %vm5553_vm3 }
 0x101   : > { %v887_v1 = vsel %vm5560_vm7, %v850_v63, 4286644096  ;;  %v885_v27 = vmax.bf16 %v883_v42, %v877_v49  ;;  %vm5561_vm15 = vmmov %vm5553_vm3 }
 0x102   : > { %v889_v10 = vmax.bf16 %v887_v1, %v880_v14  ;;  %v891_v24 = vsel %vm5561_vm15, %v852_v0, 4286644096  ;;  %vm5562_vm2 = vmmov %vm5553_vm3  ;;  %v5567_v1 = vld [vmem:[#allocation40_spill] sm:$0xff]  ;;  %v5569_v14 = vrot.slane %v3470_v43, 4 }
 0x103   : > { %v895_v4 = vsel %vm5562_vm2, %v854_v44, 4286644096  ;;  %vm5564_vm3 = vmmov %vm5562_vm2  ;;  %v874_v42 = vsel %vm3694_vm13, %v5567_v1, 4286644096  ;;  %v893_v49 = vmax.bf16 %v891_v24, %v885_v27  ;;  %v911_v44 = vsel %vm5562_vm2, %v862_v18, 4286644096 }
 0x104   : > { %v899_v47 = vsel %vm5564_vm3, %v856_v37, 4286644096  ;;  %vm5565_vm5 = vmmov %vm5562_vm2  ;;  %v897_v36 = vmax.bf16 %v895_v4, %v889_v10  ;;  %v3732_v0 = vmax.f32 %v3470_v43, %v5569_v14  ;;  %v5574_v24 = vrot.slane %v3472_v50, 4 }
 0x105   : > { %v903_v9 = vsel %vm5565_vm5, %v858_v15, 4286644096  ;;  %vm5568_vm7 = vmmov %vm5562_vm2  ;;  %v901_v1 = vmax.bf16 %v899_v47, %v893_v49  ;;  %v5576_v47 = vsel %vm3454_vm8, %v2806_v16, 4286644096  ;;  %v5595_v14 = vsel %vm5594_vm1, %v5542_v20, 4286644096 }
 0x106   : > { %v907_v63 = vsel %vm5568_vm7, %v860_v58, 4286644096  ;;  %vm5570_vm6 = vmmov %vm5562_vm2  ;;  %v905_v54 = vmax.bf16 %v903_v9, %v897_v36  ;;  %v3749_v10 = vmax.f32 %v3472_v50, %v5574_v24  ;;  %v5580_v50 = vsel %vm3480_vm12, %v2851_v22, 4286644096 }
 0x107   : > { %v915_v37 = vsel %vm5570_vm6, %v864_v28, 4286644096  ;;  %vm5571_vm10 = vmmov %vm5562_vm2  ;;  %v5578_v28 = vsel %vm3466_vm14, %v2829_v19, 4286644096  ;;  %v909_v16 = vmax.bf16 %v907_v63, %v901_v1  ;;  %v5584_v58 = vsel %vm3506_vm0, %v2896_v30, 4286644096 }
 0x108   : > { %v919_v15 = vsel %vm5571_vm10, %v866_v17, 4286644096  ;;  %vm5572_vm15 = vmmov %vm5562_vm2  ;;  %v913_v6 = vmax.bf16 %v911_v44, %v905_v54  ;;  %vm5586_vm12 = vnez %v5507_v21  ;;  %vm5617_vm1 = vnez %v5475_v3 }
 0x109   : > { %v923_v29 = vsel %vm5572_vm15, %v868_v7, 4286644096  ;;  %vm5573_vm4 = vmmov %vm5562_vm2  ;;  %v5587_v9 = vsel %vm5586_vm12, %v2917_v35, 4286644096  ;;  %v917_v1 = vmax.bf16 %v915_v37, %v909_v16 }
 0x10a   : > { %v927_v27 = vsel %vm5573_vm4, %v870_v13, 4286644096  ;;  %vm5577_vm3 = vmmov %vm5562_vm2  ;;  %v958_v54 = vsel %vm5562_vm2, %v5587_v9, 4286644096  ;;  %v921_v49 = vmax.bf16 %v919_v15, %v913_v6  ;;  %vm5597_vm4 = vnez %v5523_v55 }
 0x10b   : > { %v940_v43 = vsel %vm5577_vm3, %v5576_v47, 4286644096  ;;  %vm5579_vm5 = vmmov %vm5562_vm2  ;;  %v925_v37 = vmax.bf16 %v923_v29, %v917_v1  ;;  %v5598_v47 = vsel %vm5597_vm4, %v5544_v12, 4286644096  ;;  %v635_v6 = vrot.slane %v3732_v0, 2 }
 0x10c   : > { %v943_v13 = vsel %vm5579_vm5, %v5578_v28, 4286644096  ;;  %vm5581_vm7 = vmmov %vm5562_vm2  ;;  %v929_v15 = vmax.bf16 %v927_v27, %v921_v49  ;;  %vm5601_vm5 = vnez %v5540_v59  ;;  %v875_v59 = vsel %vm3694_vm13, %v3262_v60, 4286644096 }
 0x10d   : > { %v946_v7 = vsel %vm5581_vm7, %v5580_v50, 4286644096  ;;  %vm5583_vm14 = vmmov %vm5562_vm2  ;;  %vm5602_vm7 = vnez %v5527_v62  ;;  %v3887_v1 = vmax.f32 %v3732_v0, %v635_v6  ;;  %v3905_v0 = vstv %s675_s16  ;;  %s1051_s16 = scalar_select %p4249_p5, 1, 0 }
 0x10e   : > { %v948_v5 = vmax.bf16 %v946_v7, %v940_v43  ;;  %v950_v17 = vsel %vm5583_vm14, %v5582_v46, 4286644096  ;;  %vm5585_vm8 = vmmov %vm5562_vm2  ;;  %v871_v43 = vsel %vm5601_vm5, %v3224_v45, 4286644096  ;;  %v5603_v29 = vsel %vm5602_vm7, %v3090_v25, 4286644096  ;;  %p5017_p5 = por %p1175_p6, %p298_p10 }
 0x10f   : > { %v952_v18 = vmax.bf16 %v950_v17, %v943_v13  ;;  %v954_v4 = vsel %vm5585_vm8, %v5584_v58, 4286644096  ;;  %vm5588_vm6 = vmmov %vm5562_vm2  ;;  %vm5605_vm8 = vnez %v5531_v53  ;;  %v5611_v53 = vrot.slane %v3497_v8, 4 }
 0x110   : > { %v962_v61 = vsel %vm5588_vm6, %v857_v23, 4286644096  ;;  %v956_v36 = vmax.bf16 %v954_v4, %v948_v5  ;;  %vm5590_vm0 = vmmov %vm5562_vm2  ;;  %v5606_v62 = vsel %vm5605_vm8, %v3157_v41, 4286644096 }
 0x111   : > { %v966_v63 = vsel %vm5590_vm0, %v5589_v32, 4286644096  ;;  %vm5592_vm11 = vmmov %vm5590_vm0  ;;  %v960_v56 = vmax.bf16 %v958_v54, %v952_v18  ;;  %v733_v5 = vmax.f32 %v3497_v8, %v5611_v53  ;;  %v668_v8 = vrot.slane %v3749_v10, 2 }
 0x112   : > { %v931_v21 = vsel %vm5592_vm11, %v872_v39, 4286644096  ;;  %vm5593_vm10 = vmmov %vm5590_vm0  ;;  %v964_v24 = vmax.bf16 %v962_v61, %v956_v36  ;;  %v998_v9 = vsel %vm5590_vm0, %v875_v59, 4286644096  ;;  %vm5615_vm11 = vnez %v5445_v34  ;;  %v5705_v34 = vld [vmem:[#allocation33_spill] sm:$0xff] }
 0x113   : > { %v935_v23 = vsel %vm5593_vm10, %v874_v42, 4286644096  ;;  %vm5596_vm15 = vmmov %vm5590_vm0  ;;  %v5600_v42 = vrot.slane %v3484_v2, 4  ;;  %v968_v28 = vmax.bf16 %v966_v63, %v960_v56  ;;  %v933_v50 = vmax.bf16 %v931_v21, %v925_v37 }
 0x114   : > { %v970_v44 = vsel %vm5596_vm15, %v5595_v14, 4286644096  ;;  %vm5599_vm3 = vmmov %vm5590_vm0  ;;  %v937_v7 = vmax.bf16 %v935_v23, %v929_v15  ;;  %v734_v49 = vrot.slane %v733_v5, 2  ;;  %v3897_v63 = vstv %s642_s9  ;;  %s1481_s9 = smul.f32 4.0, %s2680_s12 }
 0x115   : > { %v974_v39 = vsel %vm5599_vm3, %v5598_v47, 4286644096  ;;  %v700_v51 = vmax.f32 %v3484_v2, %v5600_v42  ;;  %vm5604_vm14 = vmmov %vm5590_vm0  ;;  %v873_v2 = vsel %vm3679_vm9, %v3259_v52, 4286644096  ;;  %v972_v55 = vmax.bf16 %v970_v44, %v964_v24  ;;  %v5620_v42 = vld [vmem:[#allocation42_spill] sm:$0xff] }
 0x116   : > { %v978_v27 = vsel %vm5604_vm14, %v5603_v29, 4286644096  ;;  %vm5607_vm12 = vmmov %vm5590_vm0  ;;  %v976_v57 = vmax.bf16 %v974_v39, %v968_v28  ;;  %vm5608_vm9 = vnez %v5535_v11  ;;  %v938_v54 = vmax.bf16 %v937_v7, %v933_v50  ;;  %v5624_v29 = vld [vmem:[#allocation47_spill] sm:$0xff]  ;;  %s4310_s7 = sceil.f32 %s1481_s9 }
 0x117   : > { %v982_v13 = vsel %vm5607_vm12, %v5606_v62, 4286644096  ;;  %v5609_v31 = vsel %vm5608_vm9, %v3160_v48, 4286644096  ;;  %vm5610_vm13 = vmmov %vm5590_vm0  ;;  %v980_v46 = vmax.bf16 %v978_v27, %v972_v55  ;;  %v701_v58 = vrot.slane %v700_v51, 2  ;;  %v5626_v62 = vld [vmem:[#allocation48_spill] sm:$0xff]  ;;  %s2132_s12 = scvt.f32.s32 %s4310_s7 }
 0x118   : > { %v986_v16 = vsel %vm5610_vm13, %v5609_v31, 4286644096  ;;  %vm5612_vm2 = vmmov %vm5590_vm0  ;;  %v984_v11 = vmax.bf16 %v982_v13, %v976_v57  ;;  %v3900_v21 = vmax.f32 %v3749_v10, %v668_v8  ;;  %v1002_v14 = vsel %vm5615_vm11, %v938_v54, 4286644096 }
 0x119   : > { %v990_v17 = vsel %vm5612_vm2, %v871_v43, 4286644096  ;;  %vm5614_vm6 = vmmov %vm5590_vm0  ;;  %v988_v4 = vmax.bf16 %v986_v16, %v980_v46  ;;  %v3907_v23 = vmax.f32 %v700_v51, %v701_v58  ;;  %vm5616_vm10 = vnez %v5455_v33  ;;  %v5622_v43 = vld [vmem:[#allocation44_spill] sm:$0xff]  ;;  %v4158_v16 = vld [vmem:[%s2649_s28 + $0x28] sm:$0xf]  ;;  %s4379_s0 = sadd.s32 %s2132_s12, %s2667_s6  ;;  %s1953_s12 = sshll.u32 %s163_s18, 3 }
 0x11a   : > { %v994_v18 = vsel %vm5614_vm6, %v873_v2, 4286644096  ;;  %v992_v61 = vmax.bf16 %v990_v17, %v984_v11  ;;  %v1029_v44 = vsel %vm5616_vm10, %v938_v54, 4286644096  ;;  %v1056_v10 = vsel %vm5617_vm1, %v938_v54, 4286644096 }
 0x11b   : > { %v996_v36 = vmax.bf16 %v994_v18, %v988_v4  ;;  %v637_v37 = vrot.slane %v3887_v1, 1  ;;  %v3923_v15 = vstv %s708_s23  ;;  %v3925_v24 = vmax.f32 %v733_v5, %v734_v49  ;;  %5682 = vst [vmem:[#allocation54_spill] sm:$0xff] %v4158_v16  ;;  %s4364_s23 = sadd.s32 %s2130_s19, %s2667_s6  ;;  %p1485_p4 = scmp.gt.s32.totalorder %s4379_s0, 0 }
 0x11c   : > { %v1000_v32 = vmax.bf16 %v998_v9, %v992_v61  ;;  %vm5618_vm15 = vnez %v5478_v38  ;;  %v3933_v39 = vstv %s741_s11  ;;  %vm5621_vm4 = vnez %v5620_v42  ;;  %v5702_v38 = vld [vmem:[#allocation32_spill] sm:$0xff]  ;;  %v5706_v42 = vld [vmem:[#allocation35_spill] sm:$0xff]  ;;  %p1477_p13 = scmp.gt.s32.totalorder %s4364_s23, 0  ;;  %p2042_p7 = scmp.lt.s32.totalorder %s4364_s23, 16 }
 0x11d   : > { %v1083_v47 = vsel %vm5618_vm15, %v938_v54, 4286644096  ;;  %5619 = vst [vmem:[#allocation34_spill] sm:$0xff] %v3933_v39  ;;  %vm5623_vm3 = vnez %v5622_v43  ;;  %vm5625_vm5 = vnez %v5624_v29  ;;  %vm5627_vm7 = vnez %v5626_v62  ;;  %v5701_v43 = vld [vmem:[#allocation31_spill] sm:$0xff]  ;;  %s1486_s11 = scalar_select %p1485_p4, %s4379_s0, 0 }
 0x11e   : > { %v1001_v56 = vmax.bf16 %v1000_v32, %v996_v36  ;;  %v670_v50 = vrot.slane %v3900_v21, 1  ;;  %v3946_v31 = vstv %s6029_s27  ;;  %vm5628_vm14 = vcmask 261120   ;;  %s1478_s6 = scalar_select %p1477_p13, %s4364_s23, 0 }
 0x11f   : > { %vm5629_vm8 = vmmov %vm5628_vm14  ;;  %v3952_v5 = vstv %s6031_s29  ;;  %vm1126_vm9 = vcmp.le.s32.totalorder %v3946_v31, 0  ;;  %vm5640_vm2 = vcmp.le.s32.totalorder %v3946_v31, 2  ;;  %vm5652_vm1 = vcmp.le.s32.totalorder %v3946_v31, 5  ;;  %p2047_p9 = scmp.lt.s32.totalorder %s4379_s0, 16  ;;  %p5035_p13 = por %p1175_p6, %p322_p2 }
 0x120   : > { %v1003_v51 = vsel %vm5621_vm4, %v1001_v56, 4286644096  ;;  %v1030_v28 = vsel %vm5623_vm3, %v1001_v56, 4286644096  ;;  %v1057_v27 = vsel %vm5625_vm5, %v1001_v56, 4286644096  ;;  %vm5630_vm12 = vmmov %vm5629_vm8 }
 0x121   : > { %v2024_v2 = vcombine.low %v1002_v14, %v1003_v51  ;;  %v2025_v59 = vcombine.low %v1029_v44, %v1030_v28  ;;  %v2026_v55 = vcombine.low %v1056_v10, %v1057_v27  ;;  %v1084_v13 = vsel %vm5627_vm7, %v1001_v56, 4286644096  ;;  %vm5631_vm6 = vmmov %vm5629_vm8  ;;  %s6033_s6 = smov (!%p2042_p7, %s1478_s6), 16  ;;  %s6035_s11 = smov (!%p2047_p9, %s1486_s11), 16 }
 0x122   : > { %v2027_v57 = vcombine.low %v1083_v47, %v1084_v13  ;;  %vm5639_vm13 = vcmp.gt.s32.totalorder %v3952_v5, 2  ;;  %vm5648_vm4 = vcmp.le.s32.totalorder %v3946_v31, 4  ;;  %vm5656_vm3 = vcmp.le.s32.totalorder %v3946_v31, 6  ;;  %p1539_p4 = scmp.le.s32.totalorder %s6035_s11, %s6033_s6  ;;  %s2057_s23 = sshll.u32 %s2439_s5, 7 }
 0x123   : > { %v1010_v6 = vsel %vm5628_vm14, %v2024_v2, 4286644096  ;;  %v1037_v53 = vsel %vm5629_vm8, %v2025_v59, 4286644096  ;;  %v1064_v8 = vsel %vm5630_vm12, %v2026_v55, 4286644096  ;;  %vm4009_vm7 = vmand %vm5640_vm2, %vm5639_vm13 }
 0x124   : > { %v1012_v46 = vunpack.i.l.bf16 %v1010_v6  ;;  %v1013_v17 = vunpack.i.h.bf16 %v1010_v6  ;;  %v1039_v11 = vunpack.i.l.bf16 %v1037_v53  ;;  %v1040_v18 = vunpack.i.h.bf16 %v1037_v53  ;;  %s1442_s19 = scalar_select %p5017_p5, 1, 0 }
 0x125   : > { %v1091_v9 = vsel %vm5631_vm6, %v2027_v57, 4286644096  ;;  %vm1143_vm12 = vcmp.gt.s32.totalorder %v3952_v5, 0  ;;  %v1066_v49 = vunpack.i.l.bf16 %v1064_v8  ;;  %v1067_v36 = vunpack.i.h.bf16 %v1064_v8  ;;  %v4149_v8 = vld [vmem:[%s2649_s28 + $0x20] sm:$0xf]  ;;  %p5054_p7 = por %p1539_p4, %p250_p12  ;;  %p5066_p12 = por %p1539_p4, %p274_p3 }
 0x126   : > { %v1014_v58 = vmax.f32 %v1012_v46, %v1013_v17  ;;  %v1041_v4 = vmax.f32 %v1039_v11, %v1040_v18  ;;  %v1093_v32 = vunpack.i.l.bf16 %v1091_v9  ;;  %v1094_v56 = vunpack.i.h.bf16 %v1091_v9  ;;  %vm3984_vm0 = vmand %vm1126_vm9, %vm1143_vm12  ;;  %v4064_v46 = vld [vmem:[%s2649_s28] sm:$0xf]  ;;  %5681 = vst [vmem:[#allocation53_spill] sm:$0xff] %v4149_v8  ;;  %s1469_s29 = scalar_select %p5035_p13, 1, 0 }
 0x127   : > { %vm5635_vm8 = vcmp.gt.s32.totalorder %v3952_v5, 1  ;;  %vm5636_vm14 = vcmp.le.s32.totalorder %v3946_v31, 1  ;;  %v4000_v51 = vmax.f32 %v1066_v49, %v1067_v36  ;;  %vm5644_vm12 = vcmp.le.s32.totalorder %v3946_v31, 3  ;;  %5659 = vst [vmem:[#allocation36_spill] sm:$0xff] %v4064_v46  ;;  %v4100_v49 = vld [vmem:[%s2649_s28 + $0x8] sm:$0xf]  ;;  %p5078_p3 = por %p1539_p4, %p298_p10  ;;  %p5090_p9 = por %p1539_p4, %p322_p2 }
 0x128   : > { %v1015_v54 = vrot.slane %v1014_v58, 4  ;;  %v1042_v61 = vrot.slane %v1041_v4, 4  ;;  %vm3996_vm5 = vmand %vm5636_vm14, %vm5635_vm8  ;;  %v4013_v59 = vmax.f32 %v1093_v32, %v1094_v56  ;;  %vm5643_vm8 = vcmp.gt.s32.totalorder %v3952_v5, 3  ;;  %5670 = vst [vmem:[#allocation50_spill] sm:$0xff] %v4100_v49  ;;  %v4109_v56 = vld [vmem:[%s2649_s28 + $0x10] sm:$0xf] }
 0x129   : > { %vm4020_vm9 = vmand %vm5644_vm12, %vm5643_vm8  ;;  %vm5647_vm14 = vcmp.gt.s32.totalorder %v3952_v5, 4  ;;  %vm5651_vm6 = vcmp.gt.s32.totalorder %v3952_v5, 5  ;;  %vm5655_vm13 = vcmp.gt.s32.totalorder %v3952_v5, 6  ;;  %v1208_v17 = vsel %vm3984_vm0, %v4064_v46, 4286644096  ;;  %5671 = vst [vmem:[#allocation51_spill] sm:$0xff] %v4109_v56 }
 0x12a   : > { %v1016_v14 = vmax.f32 %v1014_v58, %v1015_v54  ;;  %v1043_v44 = vmax.f32 %v1041_v4, %v1042_v61  ;;  %vm4034_vm15 = vmand %vm5648_vm4, %vm5647_vm14  ;;  %v5663_v58 = vmov 0  ;;  %v4083_v4 = vld [vmem:[%s2649_s28 + $0x4] sm:$0xf]  ;;  %v4089_v54 = vstv %s1024_s8  ;;  %v4129_v32 = vld [vmem:[%s2649_s28 + $0x18] sm:$0xf]  ;;  %s165_s0 = scalar_lea.vmem [#allocation8], %s1953_s12  ;;  %s5105_s8 = scalar_lea.hbm %s5170_s3, %s2057_s23 }
 0x12b   : > { %vm4047_vm4 = vmand %vm5652_vm1, %vm5651_vm6  ;;  %vm5661_vm1 = vcmp.gt.s32.totalorder %v3952_v5, 7  ;;  %5665 = vst [vmem:[#allocation49_spill] sm:$0xff] %v4089_v54  ;;  %vm5667_vm14 = vcmp.le.s32.totalorder %v3946_v31, 8  ;;  %v5668_v61 = vmov 0  ;;  %v1210_v36 = vsel %vm3996_vm5, %v4100_v49, 4286644096 }
 0x12c   : > { %v1017_v27 = vrot.slane %v1016_v14, 2  ;;  %v1044_v2 = vrot.slane %v1043_v44, 2  ;;  %vm4059_vm8 = vmand %vm5656_vm3, %vm5655_vm13  ;;  %vm5662_vm3 = vcmp.le.s32.totalorder %v3946_v31, 7  ;;  %vm5666_vm13 = vcmp.gt.s32.totalorder %v3952_v5, 8  ;;  %5676 = vst [vmem:[#allocation52_spill] sm:$0xff] %v4129_v32  ;;  %v5694_v49 = vld [vmem:[#allocation30_spill] sm:$0xff] }
 0x12d   : > { %vm4078_vm6 = vmand %vm5662_vm3, %vm5661_vm1  ;;  %vm5673_vm1 = vcmp.le.s32.totalorder %v3946_v31, 9  ;;  %v1214_v9 = vsel %vm4020_vm9, %v4129_v32, 4286644096  ;;  %v1216_v6 = vsel %vm4034_vm15, %v4149_v8, 4286644096  ;;  %v5685_v8 = vmov 0 }
 0x12e   : > { %v4069_v11 = vmax.f32 %v1016_v14, %v1017_v27  ;;  %v4071_v18 = vmax.f32 %v1043_v44, %v1044_v2  ;;  %v5664_v58 = vsel %vm4078_vm6, 4294967295, %v5663_v58  ;;  %vm4095_vm2 = vmand %vm5667_vm14, %vm5666_vm13  ;;  %v1212_v14 = vsel %vm4009_vm7, %v4109_v56, 4286644096  ;;  %v5687_v32 = vld [vmem:[#allocation27_spill] sm:$0xff]  ;;  %v5695_v46 = vld [vmem:[#allocation28_spill] sm:$0xff]  ;;  %p5956_p2 = scmp.ne.s32.totalorder %s5304_s24, 0 }
 0x12f   : > { %v5669_v61 = vsel %vm4095_vm2, 4294967295, %v5668_v61  ;;  %v638_v44 = vmax.f32 %v3887_v1, %v637_v37  ;;  %vm5672_vm14 = vcmp.gt.s32.totalorder %v3952_v5, 9  ;;  %v5674_v27 = vmov 0  ;;  %v5700_v1 = vld [vmem:[#allocation29_spill] sm:$0xff]  ;;  %s1752_s30 = scalar_select %p5054_p7, 1, 0 }
 0x130   : > { %5660 = vst [vmem:[#allocation37_spill] sm:$0xff] %v4071_v18  ;;  %vm4121_vm3 = vmand %vm5673_vm1, %vm5672_vm14  ;;  %v671_v37 = vmax.f32 %v3900_v21, %v670_v50  ;;  %vm5677_vm13 = vcmp.gt.s32.totalorder %v3952_v5, 10  ;;  %vm5678_vm14 = vcmp.le.s32.totalorder %v3946_v31, 10  ;;  %v5679_v2 = vmov 0  ;;  %s1779_s10 = scalar_select %p5066_p12, 1, 0 }
 0x131   : > { %v5675_v27 = vsel %vm4121_vm3, 4294967295, %v5674_v27  ;;  %vm4144_vm1 = vmand %vm5678_vm14, %vm5677_vm13  ;;  %v1218_v21 = vsel %vm4047_vm4, %v4158_v16, 4286644096  ;;  %vm5683_vm13 = vcmp.gt.s32.totalorder %v3952_v5, 11  ;;  %vm5684_vm14 = vcmp.le.s32.totalorder %v3946_v31, 11 }
 0x132   : > { %v5680_v2 = vsel %vm4144_vm1, 4294967295, %v5679_v2  ;;  %vm4169_vm12 = vmand %vm5684_vm14, %vm5683_vm13  ;;  %v1220_v16 = vsel %vm4059_vm8, %v5687_v32, 4286644096  ;;  %v5688_v50 = vrot.slane %v3907_v23, 1  ;;  %vm5690_vm10 = vcmp.gt.s32.totalorder %v3952_v5, 12 }
 0x133   : > { %v5686_v8 = vsel %vm4169_vm12, 4294967295, %v5685_v8  ;;  %vm5691_vm13 = vcmp.le.s32.totalorder %v3946_v31, 12  ;;  %v5692_v56 = vmov 0  ;;  %v1222_v32 = vsel %vm4078_vm6, %v5695_v46, 4286644096 }
 0x134   : > { %v4182_v7 = vmax.f32 %v3907_v23, %v5688_v50  ;;  %vm4188_vm14 = vmand %vm5691_vm13, %vm5690_vm10  ;;  %v639_v50 = vpack.i.bf16 %v638_v44, %v638_v44  ;;  %vm5696_vm10 = vcmp.gt.s32.totalorder %v3952_v5, 13  ;;  %vm5697_vm13 = vcmp.le.s32.totalorder %v3946_v31, 13  ;;  %s1806_s25 = scalar_select %p5078_p3, 1, 0 }
 0x135   : > { %v5693_v56 = vsel %vm4188_vm14, 4294967295, %v5692_v56  ;;  %vm4205_vm11 = vmand %vm5697_vm13, %vm5696_vm10  ;;  %v5698_v62 = vmov 0  ;;  %v1224_v46 = vsel %vm4095_vm2, %v5700_v1, 4286644096  ;;  %v1226_v44 = vsel %vm4121_vm3, %v5701_v43, 4286644096 }
 0x136   : > { %5689 = vst [vmem:[#allocation27_spill] sm:$0xff] %v4182_v7  ;;  %v5699_v62 = vsel %vm4205_vm11, 4294967295, %v5698_v62  ;;  %v672_v23 = vpack.i.bf16 %v671_v37, %v671_v37  ;;  %v1228_v3 = vsel %vm4144_vm1, %v5702_v38, 4286644096  ;;  %v5703_v33 = vrot.slane %v3925_v24, 1 }
 0x137   : > { %v1230_v43 = vsel %vm4169_vm12, %v5705_v34, 4286644096  ;;  %v1232_v38 = vsel %vm4188_vm14, %v5706_v42, 4286644096  ;;  %vm5708_vm10 = vcmp.gt.s32.totalorder %v3952_v5, 14  ;;  %vm5709_vm13 = vcmp.le.s32.totalorder %v3946_v31, 14 }
 0x138   : > { %v4230_v29 = vmax.f32 %v3925_v24, %v5703_v33  ;;  %vm4257_vm1 = vmand %vm5709_vm13, %vm5708_vm10  ;;  %v5712_v24 = vld [vmem:[#allocation38_spill] sm:$0xff]  ;;  %vm5713_vm12 = vcmask 257024   ;;  %v4268_v37 = vunpack.c.l.bf16 %v639_v50  ;;  %vm5715_vm3 = vcmp.gt.s32.totalorder %v3952_v5, 15  ;;  %s1833_s21 = scalar_select %p5090_p9, 1, 0 }
 0x139   : > { %v1234_v42 = vsel %vm4205_vm11, %v5712_v24, 4286644096  ;;  %v1241_v1 = vsel %vm5713_vm12, %v1208_v17, 4286644096  ;;  %vm5716_vm10 = vcmp.le.s32.totalorder %v3946_v31, 15  ;;  %vm5719_vm2 = vmmov %vm5713_vm12  ;;  %v4283_v5 = vunpack.c.l.bf16 %v672_v23  ;;  %v5724_v31 = vld [vmem:[#allocation39_spill] sm:$0xff] }
 0x13a   : > { %5704 = vst [vmem:[#allocation30_spill] sm:$0xff] %v4230_v29  ;;  %5714 = vst [vmem:[#allocation28_spill] sm:$0xff] %v4268_v37  ;;  %v1244_v33 = vsel %vm5719_vm2, %v1210_v36, 4286644096  ;;  %v1236_v37 = vsel %vm4257_vm1, %v5724_v31, 4286644096 }
 0x13b   : > { %vm4274_vm13 = vmand %vm5716_vm10, %vm5715_vm3  ;;  %v1267_v36 = vsel %vm5719_vm2, %v1222_v32, 4286644096 }
 0x13c   : > { %vm5720_vm14 = vmmov %vm5719_vm2 }
 0x13d   : > { %v1247_v39 = vsel %vm5720_vm14, %v1212_v14, 4286644096  ;;  %vm5721_vm6 = vmmov %vm5719_vm2 }
 0x13e   : > { %v1251_v7 = vsel %vm5721_vm6, %v1214_v9, 4286644096  ;;  %v1249_v24 = vmax.bf16 %v1247_v39, %v1241_v1  ;;  %vm5722_vm11 = vmmov %vm5719_vm2  ;;  %v5726_v39 = vld [vmem:[#allocation40_spill] sm:$0xff] }
 0x13f   : > { %v1253_v18 = vmax.bf16 %v1251_v7, %v1244_v33  ;;  %v1255_v17 = vsel %vm5722_vm11, %v1216_v6, 4286644096  ;;  %vm5723_vm12 = vmmov %vm5719_vm2  ;;  %v1238_v7 = vsel %vm4274_vm13, %v5726_v39, 4286644096 }
 0x140   : > { %v1259_v50 = vsel %vm5723_vm12, %v1218_v21, 4286644096  ;;  %vm5725_vm3 = vmmov %vm5719_vm2  ;;  %v1257_v6 = vmax.bf16 %v1255_v17, %v1249_v24  ;;  %v5728_v21 = vrot.slane %v4000_v51, 4 }
 0x141   : > { %v1263_v29 = vsel %vm5725_vm3, %v1220_v16, 4286644096  ;;  %v1261_v9 = vmax.bf16 %v1259_v50, %v1253_v18  ;;  %vm5727_vm11 = vmmov %vm5719_vm2 }
 0x142   : > { %v1271_v14 = vsel %vm5727_vm11, %v1224_v46, 4286644096  ;;  %v4303_v16 = vmax.f32 %v4000_v51, %v5728_v21  ;;  %vm5729_vm6 = vmmov %vm5719_vm2  ;;  %v1265_v33 = vmax.bf16 %v1263_v29, %v1257_v6  ;;  %v5734_v51 = vrot.slane %v4013_v59, 4 }
 0x143   : > { %v1275_v32 = vsel %vm5729_vm6, %v1226_v44, 4286644096  ;;  %vm5730_vm14 = vmmov %vm5719_vm2  ;;  %v1269_v24 = vmax.bf16 %v1267_v36, %v1261_v9  ;;  %v5736_v29 = vsel %vm3996_vm5, %v2829_v19, 4286644096  ;;  %v5740_v19 = vsel %vm4020_vm9, %v2876_v26, 4286644096 }
 0x144   : > { %v1279_v23 = vsel %vm5730_vm14, %v1228_v3, 4286644096  ;;  %vm5731_vm10 = vmmov %vm5719_vm2  ;;  %v4318_v17 = vmax.f32 %v4013_v59, %v5734_v51  ;;  %v5735_v3 = vsel %vm3984_vm0, %v4083_v4, 4286644096  ;;  %vm644_vm14 = vcmp.eq.s32.totalorder %v3897_v63, 1  ;;  %v5772_v51 = vld [vmem:[#allocation37_spill] sm:$0xff] }
 0x145   : > { %v1283_v1 = vsel %vm5731_vm10, %v1230_v43, 4286644096  ;;  %vm5732_vm12 = vmmov %vm5719_vm2  ;;  %v1304_v44 = vsel %vm5719_vm2, %v5735_v3, 4286644096  ;;  %vm677_vm10 = vcmp.eq.s32.totalorder %v3905_v0, 1  ;;  %v1273_v10 = vmax.bf16 %v1271_v14, %v1265_v33  ;;  %v5779_v63 = vld [vmem:[#allocation34_spill] sm:$0xff] }
 0x146   : > { %v1287_v18 = vsel %vm5732_vm12, %v1232_v38, 4286644096  ;;  %vm5733_vm3 = vmmov %vm5719_vm2  ;;  %v5738_v38 = vsel %vm4009_vm7, %v2851_v22, 4286644096  ;;  %v1277_v59 = vmax.bf16 %v1275_v32, %v1269_v24  ;;  %v5742_v22 = vsel %vm4034_vm15, %v2896_v30, 4286644096 }
 0x147   : > { %v1291_v46 = vsel %vm5733_vm3, %v1234_v42, 4286644096  ;;  %vm5737_vm11 = vmmov %vm5719_vm2  ;;  %v5744_v36 = vsel %vm4047_vm4, %v2917_v35, 4286644096  ;;  %v5746_v26 = vsel %vm4059_vm8, %v5694_v49, 4286644096  ;;  %v1281_v6 = vmax.bf16 %v1279_v23, %v1273_v10 }
 0x148   : > { %v1307_v43 = vsel %vm5737_vm11, %v5736_v29, 4286644096  ;;  %vm5739_vm6 = vmmov %vm5719_vm2  ;;  %v1285_v9 = vmax.bf16 %v1283_v1, %v1277_v59  ;;  %vm5748_vm15 = vnez %v5664_v58  ;;  %vm5753_vm8 = vnez %v5669_v61  ;;  %v5776_v59 = vld [vmem:[#allocation28_spill] sm:$0xff] }
 0x149   : > { %v1310_v42 = vsel %vm5739_vm6, %v5738_v38, 4286644096  ;;  %vm5741_vm5 = vmmov %vm5719_vm2  ;;  %v5749_v30 = vsel %vm5748_vm15, %v5536_v40, 4286644096  ;;  %v5754_v49 = vsel %vm5753_vm8, %v5542_v20, 4286644096  ;;  %v1289_v32 = vmax.bf16 %v1287_v18, %v1281_v6 }
 0x14a   : > { %v1312_v50 = vmax.bf16 %v1310_v42, %v1304_v44  ;;  %v1314_v47 = vsel %vm5741_vm5, %v5740_v19, 4286644096  ;;  %vm5743_vm7 = vmmov %vm5719_vm2  ;;  %v1293_v58 = vmax.bf16 %v1291_v46, %v1285_v9  ;;  %vm5756_vm11 = vnez %v5675_v27  ;;  %v5780_v6 = vld [vmem:[#allocation49_spill] sm:$0xff] }
 0x14b   : > { %v1316_v28 = vmax.bf16 %v1314_v47, %v1307_v43  ;;  %v1318_v31 = vsel %vm5743_vm7, %v5742_v22, 4286644096  ;;  %vm5745_vm0 = vmmov %vm5719_vm2  ;;  %v5757_v40 = vsel %vm5756_vm11, %v5544_v12, 4286644096  ;;  %vm710_vm5 = vcmp.eq.s32.totalorder %v3923_v15, 1  ;;  %v5777_v22 = vld [vmem:[#allocation27_spill] sm:$0xff] }
 0x14c   : > { %v1322_v39 = vsel %vm5745_vm0, %v5744_v36, 4286644096  ;;  %vm5747_vm9 = vmmov %vm5745_vm0  ;;  %v1320_v13 = vmax.bf16 %v1318_v31, %v1312_v50  ;;  %v5759_v61 = vrot.slane %v4069_v11, 1  ;;  %vm5760_vm7 = vnez %v5699_v62 }
 0x14d   : > { %v1326_v55 = vsel %vm5747_vm9, %v5746_v26, 4286644096  ;;  %vm5750_vm12 = vmmov %vm5745_vm0  ;;  %v1324_v14 = vmax.bf16 %v1322_v39, %v1316_v28  ;;  %v1237_v33 = vsel %vm4257_vm1, %v3259_v52, 4286644096  ;;  %vm5764_vm15 = vnez %v5686_v8 }
 0x14e   : > { %v1330_v57 = vsel %vm5750_vm12, %v5749_v30, 4286644096  ;;  %vm5751_vm4 = vmmov %vm5745_vm0  ;;  %v1328_v23 = vmax.bf16 %v1326_v55, %v1320_v13  ;;  %v1020_v20 = vmax.f32 %v4069_v11, %v5759_v61  ;;  %v1239_v11 = vsel %vm4274_vm13, %v3262_v60, 4286644096  ;;  %v5770_v60 = vld [vmem:[#allocation30_spill] sm:$0xff] }
 0x14f   : > { %v1295_v35 = vsel %vm5751_vm4, %v1236_v37, 4286644096  ;;  %vm5752_vm3 = vmmov %vm5745_vm0  ;;  %v1235_v37 = vsel %vm5760_vm7, %v3224_v45, 4286644096  ;;  %v5765_v45 = vsel %vm5764_vm15, %v3157_v41, 4286644096  ;;  %vm5767_vm4 = vnez %v5693_v56 }
 0x150   : > { %v1299_v53 = vsel %vm5752_vm3, %v1238_v7, 4286644096  ;;  %vm5755_vm2 = vmmov %vm5745_vm0  ;;  %v1332_v7 = vmax.bf16 %v1330_v57, %v1324_v14  ;;  %v5768_v34 = vsel %vm5767_vm4, %v3160_v48, 4286644096  ;;  %v738_v54 = vpack.i.bf16 %v5770_v60, %v5770_v60  ;;  %v5781_v57 = vld [vmem:[#allocation41_spill] sm:$0xff]  ;;  %v5789_v61 = vld [vmem:[#allocation42_spill] sm:$0xff] }
 0x151   : > { %v1334_v21 = vsel %vm5755_vm2, %v5754_v49, 4286644096  ;;  %vm5758_vm6 = vmmov %vm5745_vm0  ;;  %vm5761_vm0 = vnez %v5680_v2  ;;  %v1297_v2 = vmax.bf16 %v1295_v35, %v1289_v32  ;;  %v1301_v24 = vmax.bf16 %v1299_v53, %v1293_v58  ;;  %v5783_v53 = vld [vmem:[#allocation43_spill] sm:$0xff]  ;;  %v5785_v49 = vld [vmem:[#allocation45_spill] sm:$0xff] }
 0x152   : > { %v1338_v1 = vsel %vm5758_vm6, %v5757_v40, 4286644096  ;;  %v5762_v12 = vsel %vm5761_vm0, %v3090_v25, 4286644096  ;;  %vm5763_vm9 = vmmov %vm5755_vm2  ;;  %v1336_v62 = vmax.bf16 %v1334_v21, %v1328_v23  ;;  %v1071_v8 = vrot.slane %v4303_v16, 2  ;;  %v5787_v23 = vld [vmem:[#allocation46_spill] sm:$0xff] }
 0x153   : > { %v1342_v27 = vsel %vm5763_vm9, %v5762_v12, 4286644096  ;;  %vm5766_vm12 = vmmov %vm5755_vm2  ;;  %v1340_v18 = vmax.bf16 %v1338_v1, %v1332_v7  ;;  %v5773_v3 = vrot.slane %v5772_v51, 1  ;;  %v1052_v48 = vstv %s1051_s16  ;;  %v5793_v7 = vld [vmem:[#allocation47_spill] sm:$0xff] }
 0x154   : > { %v1346_v25 = vsel %vm5766_vm12, %v5765_v45, 4286644096  ;;  %vm5769_vm1 = vmmov %vm5755_vm2  ;;  %v1344_v41 = vmax.bf16 %v1342_v27, %v1336_v62  ;;  %v1021_v43 = vpack.i.bf16 %v1020_v20, %v1020_v20  ;;  %v1098_v38 = vrot.slane %v4318_v17, 2  ;;  %v5795_v62 = vld [vmem:[#allocation48_spill] sm:$0xff] }
 0x155   : > { %v1350_v52 = vsel %vm5769_vm1, %v5768_v34, 4286644096  ;;  %vm5771_vm13 = vmmov %vm5769_vm1  ;;  %v1047_v56 = vmax.f32 %v5772_v51, %v5773_v3  ;;  %v1348_v44 = vmax.bf16 %v1346_v25, %v1340_v18  ;;  %v645_v50 = vsel %vm644_vm14, 0.0, %v5776_v59 }
 0x156   : > { %v1354_v46 = vsel %vm5771_vm13, %v1235_v37, 4286644096  ;;  %vm5774_vm3 = vmmov %vm5769_vm1  ;;  %v1352_v42 = vmax.bf16 %v1350_v52, %v1344_v41  ;;  %v678_v19 = vsel %vm677_vm10, 0.0, %v4283_v5  ;;  %v1302_v47 = vmax.bf16 %v1301_v24, %v1297_v2  ;;  %v5791_v37 = vld [vmem:[#allocation44_spill] sm:$0xff] }
 0x157   : > { %v1358_v29 = vsel %vm5774_vm3, %v1237_v33, 4286644096  ;;  %vm5775_vm8 = vmmov %vm5769_vm1  ;;  %v1356_v28 = vmax.bf16 %v1354_v46, %v1348_v44  ;;  %v5778_v31 = vpack.i.bf16 %v5777_v22, %v5777_v22  ;;  %v739_v39 = vunpack.c.l.bf16 %v738_v54 }
 0x158   : > { %v1362_v10 = vsel %vm5775_vm8, %v1239_v11, 4286644096  ;;  %v4441_v26 = vmax.f32 %v4303_v16, %v1071_v8  ;;  %v1360_v55 = vmax.bf16 %v1358_v29, %v1352_v42  ;;  %vm743_vm14 = vcmp.eq.s32.totalorder %v5779_v63, 1 }
 0x159   : > { %v706_v36 = vunpack.c.l.bf16 %v5778_v31  ;;  %vm1026_vm2 = vcmp.eq.s32.totalorder %v5780_v6, 1  ;;  %v1048_v0 = vpack.i.bf16 %v1047_v56, %v1047_v56  ;;  %v1364_v5 = vmax.bf16 %v1362_v10, %v1356_v28 }
 0x15a   : > { %v4446_v9 = vadd.f32 %v678_v19, %v645_v50  ;;  %v1022_v13 = vunpack.c.l.bf16 %v1021_v43  ;;  %vm1053_vm10 = vcmp.eq.s32.totalorder %v1052_v48, 1  ;;  %v4449_v30 = vmax.f32 %v4318_v17, %v1098_v38 }
 0x15b   : > { %v1365_v16 = vmax.bf16 %v1364_v5, %v1360_v55  ;;  %vm5782_vm11 = vnez %v5781_v57  ;;  %vm5784_vm6 = vnez %v5783_v53  ;;  %vm5786_vm7 = vnez %v5785_v49  ;;  %v2270_v57 = vld [vmem:[%s2649_s28 + $0x70] sm:$0xf] }
 0x15c   : > { %v1366_v35 = vsel %vm5782_vm11, %v1302_v47, 4286644096  ;;  %v1393_v14 = vsel %vm5784_vm6, %v1302_v47, 4286644096  ;;  %v1420_v21 = vsel %vm5786_vm7, %v1302_v47, 4286644096  ;;  %vm5788_vm0 = vnez %v5787_v23 }
 0x15d   : > { %v4463_v32 = vsel %vm710_vm5, 0.0, %v706_v36  ;;  %v4465_v17 = vsel %vm743_vm14, 0.0, %v739_v39  ;;  %v1073_v58 = vrot.slane %v4441_v26, 1  ;;  %v1447_v40 = vsel %vm5788_vm0, %v1302_v47, 4286644096 }
 0x15e   : > { %v1049_v1 = vunpack.c.l.bf16 %v1048_v0  ;;  %vm5790_vm9 = vnez %v5789_v61  ;;  %vm5792_vm15 = vnez %v5791_v37  ;;  %vm5794_vm5 = vnez %v5793_v7 }
 0x15f   : > { %v1367_v20 = vsel %vm5790_vm9, %v1365_v16, 4286644096  ;;  %v1394_v15 = vsel %vm5792_vm15, %v1365_v16, 4286644096  ;;  %v1421_v12 = vsel %vm5794_vm5, %v1365_v16, 4286644096  ;;  %vm5796_vm12 = vnez %v5795_v62 }
 0x160   : > { %v2038_v27 = vcombine.low %v1366_v35, %v1367_v20  ;;  %v2039_v33 = vcombine.low %v1393_v14, %v1394_v15  ;;  %v2040_v11 = vcombine.low %v1420_v21, %v1421_v12  ;;  %v1448_v45 = vsel %vm5796_vm12, %v1365_v16, 4286644096  ;;  %v5833_v21 = vld [vmem:[#allocation36_spill] sm:$0xff]  ;;  %v5834_v20 = vld [vmem:[#allocation50_spill] sm:$0xff]  ;;  %v4649_v12 = vld [vmem:[%s2649_s28 + $0xc] sm:$0xf] }
 0x161   : > { %v4484_v25 = vsel %vm1026_vm2, 0.0, %v1022_v13  ;;  %v1100_v2 = vrot.slane %v4449_v30, 1  ;;  %v2041_v24 = vcombine.low %v1447_v40, %v1448_v45  ;;  %v4488_v18 = vstv %s6033_s6  ;;  %v4799_v40 = vld [vmem:[%s2649_s28 + $0x5c] sm:$0xf]  ;;  %v2267_v62 = vld [vmem:[%s2649_s28 + $0x60] sm:$0xf] }
 0x162   : > { %vm5797_vm4 = vcmask 261120   ;;  %v4494_v54 = vstv %s6035_s11  ;;  %v4497_v3 = vsel %vm1053_vm10, 0.0, %v1049_v1  ;;  %vm5801_vm5 = vcmp.le.s32.totalorder %v4488_v18, 0  ;;  %v4776_v1 = vld [vmem:[%s2649_s28 + $0x4c] sm:$0xf]  ;;  %s1860_s6 = sshll.u32 %s165_s0, 4  ;;  %s5107_s6 = int_to_ptr.vmem [resolvable:$true] %s1860_s6 }
 0x163   : > { %v1374_v34 = vsel %vm5797_vm4, %v2038_v27, 4286644096  ;;  %vm5798_vm1 = vmmov %vm5797_vm4  ;;  %vm1507_vm10 = vcmp.gt.s32.totalorder %v4494_v54, 0  ;;  %vm1509_vm2 = vcmp.gt.s32.totalorder %v4494_v54, 2  ;;  %vm5805_vm8 = vcmp.gt.s32.totalorder %v4494_v54, 1  ;;  %s2327_s5 = scalar_lea.vmem %s5107_s6, 128 }
 0x164   : > { %v1401_v52 = vsel %vm5798_vm1, %v2039_v33, 4286644096  ;;  %vm5799_vm13 = vmmov %vm5798_vm1  ;;  %v1376_v8 = vunpack.i.l.bf16 %v1374_v34  ;;  %v1377_v41 = vunpack.i.h.bf16 %v1374_v34  ;;  %vm5806_vm14 = vcmp.le.s32.totalorder %v4488_v18, 1  ;;  %v5839_v33 = vld [vmem:[#allocation51_spill] sm:$0xff]  ;;  %p2328_p10 = scmp.ne.s32.totalorder %s5107_s6, %s2327_s5 }
 0x165   : > { %v1428_v60 = vsel %vm5799_vm13, %v2040_v11, 4286644096  ;;  %v1403_v46 = vunpack.i.l.bf16 %v1401_v52  ;;  %v1404_v51 = vunpack.i.h.bf16 %v1401_v52  ;;  %vm5800_vm3 = vmmov %vm5798_vm1  ;;  %vm5814_vm12 = vcmp.le.s32.totalorder %v4488_v18, 3  ;;  %v5844_v52 = vld [vmem:[#allocation52_spill] sm:$0xff] }
 0x166   : > { %v1430_v56 = vunpack.i.l.bf16 %v1428_v60  ;;  %v1431_v44 = vunpack.i.h.bf16 %v1428_v60  ;;  %v1455_v29 = vsel %vm5800_vm3, %v2041_v24, 4286644096  ;;  %v1378_v42 = vmax.f32 %v1376_v8, %v1377_v41  ;;  %vm4516_vm15 = vmand %vm5801_vm5, %vm1507_vm10  ;;  %v4677_v8 = vld [vmem:[%s2649_s28 + $0x1c] sm:$0xf]  ;;  %v2259_v41 = vld [vmem:[%s2649_s28 + $0x40] sm:$0xf]  ;;  %p2329_p11 = pnand %p2328_p10, %p5956_p2 }
 0x167   : > { %v1457_v43 = vunpack.i.l.bf16 %v1455_v29  ;;  %v1458_v38 = vunpack.i.h.bf16 %v1455_v29  ;;  %v1405_v10 = vmax.f32 %v1403_v46, %v1404_v51  ;;  %vm4536_vm5 = vmand %vm5806_vm14, %vm5805_vm8  ;;  %vm5810_vm8 = vcmp.le.s32.totalorder %v4488_v18, 2  ;;  %v2257_v51 = vld [vmem:[%s2649_s28 + $0x38] sm:$0xf]  ;;  %v4762_v11 = vld [vmem:[%s2649_s28 + $0x44] sm:$0xf] }
 0x168   : > { %v1432_v48 = vmax.f32 %v1430_v56, %v1431_v44  ;;  %v1379_v19 = vrot.slane %v1378_v42, 4  ;;  %vm4556_vm14 = vmand %vm5810_vm8, %vm1509_vm2  ;;  %vm5813_vm10 = vcmp.gt.s32.totalorder %v4494_v54, 3  ;;  %vm5817_vm4 = vcmp.gt.s32.totalorder %v4494_v54, 4  ;;  %v5849_v44 = vld [vmem:[#allocation53_spill] sm:$0xff]  ;;  %v2263_v46 = vld [vmem:[%s2649_s28 + $0x50] sm:$0xf]  ;;  %p2330_p0 = pneg %p2329_p11 }
 0x169   : > { %v1459_v59 = vmax.f32 %v1457_v43, %v1458_v38  ;;  %v1406_v47 = vrot.slane %v1405_v10, 4  ;;  %vm4568_vm9 = vmand %vm5814_vm12, %vm5813_vm10  ;;  %vm5818_vm1 = vcmp.le.s32.totalorder %v4488_v18, 4  ;;  %vm5821_vm3 = vcmp.gt.s32.totalorder %v4494_v54, 5  ;;  %v4696_v43 = vld [vmem:[%s2649_s28 + $0x24] sm:$0xf] }
 0x16a   : > { %v1433_v22 = vrot.slane %v1432_v48, 4  ;;  %vm4580_vm0 = vmand %vm5818_vm1, %vm5817_vm4  ;;  %v4586_v63 = vmax.f32 %v1378_v42, %v1379_v19  ;;  %vm5822_vm8 = vcmp.le.s32.totalorder %v4488_v18, 5  ;;  %vm5825_vm10 = vcmp.gt.s32.totalorder %v4494_v54, 6  ;;  %v4718_v19 = vld [vmem:[%s2649_s28 + $0x2c] sm:$0xf] }
 0x16b   : > { %v1460_v31 = vrot.slane %v1459_v59, 4  ;;  %v4588_v6 = vmax.f32 %v1405_v10, %v1406_v47  ;;  %vm4597_vm4 = vmand %vm5822_vm8, %vm5821_vm3  ;;  %vm5826_vm3 = vcmp.le.s32.totalorder %v4488_v18, 6  ;;  %v712_v35 = vadd.f32 %v4463_v32, %v4446_v9  ;;  %v4785_v24 = vld [vmem:[%s2649_s28 + $0x54] sm:$0xf]  ;;  %v2265_v9 = vld [vmem:[%s2649_s28 + $0x58] sm:$0xf] }
 0x16c   : > { %v4603_v5 = vmax.f32 %v1432_v48, %v1433_v22  ;;  %vm4614_vm8 = vmand %vm5826_vm3, %vm5825_vm10  ;;  %vm5829_vm2 = vcmp.gt.s32.totalorder %v4494_v54, 7  ;;  %vm5830_vm7 = vcmp.le.s32.totalorder %v4488_v18, 7  ;;  %v5831_v14 = vmov 0  ;;  %v5854_v48 = vld [vmem:[#allocation54_spill] sm:$0xff] }
 0x16d   : > { %v4605_v13 = vmax.f32 %v1459_v59, %v1460_v31  ;;  %vm4624_vm1 = vmand %vm5830_vm7, %vm5829_vm2  ;;  %v1074_v32 = vmax.f32 %v4441_v26, %v1073_v58  ;;  %vm5835_vm7 = vcmp.gt.s32.totalorder %v4494_v54, 8  ;;  %vm5836_vm2 = vcmp.le.s32.totalorder %v4488_v18, 8  ;;  %v4658_v58 = vld [vmem:[%s2649_s28 + $0x14] sm:$0xf]  ;;  %v2255_v22 = vld [vmem:[%s2649_s28 + $0x30] sm:$0xf] }
 0x16e   : > { %v5832_v14 = vsel %vm4624_vm1, 4294967295, %v5831_v14  ;;  %vm4644_vm10 = vmand %vm5836_vm2, %vm5835_vm7  ;;  %v5837_v15 = vmov 0  ;;  %v1576_v26 = vsel %vm4556_vm14, %v5839_v33, 4286644096  ;;  %vm5840_vm3 = vcmp.gt.s32.totalorder %v4494_v54, 9 }
 0x16f   : > { %v5838_v15 = vsel %vm4644_vm10, 4294967295, %v5837_v15  ;;  %vm5841_vm7 = vcmp.le.s32.totalorder %v4488_v18, 9  ;;  %v5842_v34 = vmov 0  ;;  %v1578_v60 = vsel %vm4568_vm9, %v5844_v52, 4286644096 }
 0x170   : > { %vm4669_vm2 = vmand %vm5841_vm7, %vm5840_vm3  ;;  %vm5845_vm3 = vcmp.gt.s32.totalorder %v4494_v54, 10  ;;  %vm5846_vm7 = vcmp.le.s32.totalorder %v4488_v18, 10  ;;  %v5847_v56 = vmov 0  ;;  %v1580_v29 = vsel %vm4580_vm0, %v5849_v44, 4286644096 }
 0x171   : > { %v5843_v34 = vsel %vm4669_vm2, 4294967295, %v5842_v34  ;;  %vm4688_vm13 = vmand %vm5846_vm7, %vm5845_vm3  ;;  %v4704_v42 = vstv %s1078_s26  ;;  %vm5850_vm3 = vcmp.gt.s32.totalorder %v4494_v54, 11  ;;  %vm5851_vm7 = vcmp.le.s32.totalorder %v4488_v18, 11  ;;  %v4735_v44 = vld [vmem:[%s2649_s28 + $0x34] sm:$0xf]  ;;  %s2458_s26 = smov [#allocation8]  }
 0x172   : > { %v5848_v56 = vsel %vm4688_vm13, 4294967295, %v5847_v56  ;;  %vm4710_vm12 = vmand %vm5851_vm7, %vm5850_vm3  ;;  %v5852_v10 = vmov 0  ;;  %v1582_v59 = vsel %vm4597_vm4, %v5854_v48, 4286644096  ;;  %v1584_v31 = vsel %vm4614_vm8, %v2255_v22, 4286644096 }
 0x173   : > { %v5853_v10 = vsel %vm4710_vm12, 4294967295, %v5852_v10  ;;  %v1075_v33 = vpack.i.bf16 %v1074_v32, %v1074_v32  ;;  %vm5855_vm3 = vcmp.gt.s32.totalorder %v4494_v54, 12  ;;  %vm5856_vm7 = vcmp.le.s32.totalorder %v4488_v18, 12  ;;  %v4744_v22 = vld [vmem:[%s2649_s28 + $0x3c] sm:$0xf] }
 0x174   : > { %vm4730_vm6 = vmand %vm5856_vm7, %vm5855_vm3  ;;  %v5857_v52 = vmov 0  ;;  %v1586_v32 = vsel %vm4624_vm1, %v2257_v51, 4286644096  ;;  %v745_v38 = vadd.f32 %v4465_v17, %v712_v35  ;;  %vm5859_vm3 = vcmp.gt.s32.totalorder %v4494_v54, 13  ;;  %v2261_v35 = vld [vmem:[%s2649_s28 + $0x48] sm:$0xf] }
 0x175   : > { %v5858_v52 = vsel %vm4730_vm6, 4294967295, %v5857_v52  ;;  %vm5860_vm7 = vcmp.le.s32.totalorder %v4488_v18, 13  ;;  %v5861_v48 = vmov 0  ;;  %v1588_v51 = vsel %vm4644_vm10, %v2259_v41, 4286644096 }
 0x176   : > { %vm4754_vm11 = vmand %vm5860_vm7, %vm5859_vm3  ;;  %v1590_v47 = vsel %vm4669_vm2, %v2261_v35, 4286644096  ;;  %v4773_v27 = vstv %s1105_s20  ;;  %v1592_v17 = vsel %vm4688_vm13, %v2263_v46, 4286644096  ;;  %v4793_v45 = vmax.f32 %v4449_v30, %v1100_v2  ;;  %v4818_v2 = vld [vmem:[%s2649_s28 + $0x64] sm:$0xf] }
 0x177   : > { %v5862_v48 = vsel %vm4754_vm11, 4294967295, %v5861_v48  ;;  %v1594_v41 = vsel %vm4710_vm12, %v2265_v9, 4286644096  ;;  %v1596_v7 = vsel %vm4730_vm6, %v2267_v62, 4286644096  ;;  %v4807_v35 = vunpack.c.l.bf16 %v1075_v33  ;;  %s2331_s20 = sshll.u32 %s2458_s26, 4  ;;  %s2332_s20 = int_to_ptr.vmem [resolvable:$false] %s2331_s20 }
 0x178   : > { %vm5863_vm3 = vcmp.gt.s32.totalorder %v4494_v54, 14  ;;  %vm5864_vm7 = vcmp.le.s32.totalorder %v4488_v18, 14  ;;  %v2269_v46 = vld [vmem:[%s2649_s28 + $0x68] sm:$0xf]  ;;  %v5867_v33 = vsel %vm4516_vm15, %v5833_v21, 4286644096  ;;  %v4832_v61 = vadd.f32 %v4484_v25, %v745_v38  ;;  %p2334_p6 = scmp.lt.s32.totalorder %s5107_s6, %s2332_s20 }
 0x179   : > { %vm4813_vm13 = vmand %vm5864_vm7, %vm5863_vm3  ;;  %v1598_v62 = vsel %vm4754_vm11, %v2269_v46, 4286644096  ;;  %vm5868_vm12 = vcmask 257024   ;;  %vm5869_vm3 = vcmp.gt.s32.totalorder %v4494_v54, 15  ;;  %vm5870_vm7 = vcmp.le.s32.totalorder %v4488_v18, 15  ;;  %s2333_s9 = scalar_lea.vmem %s2332_s20, 256 }
 0x17a   : > { %v1605_v37 = vsel %vm5868_vm12, %v5867_v33, 4286644096  ;;  %vm4838_vm2 = vmand %vm5870_vm7, %vm5869_vm3  ;;  %v5873_v46 = vsel %vm4536_vm5, %v5834_v20, 4286644096  ;;  %v5879_v49 = vrot.slane %v4586_v63, 2  ;;  %v1102_v9 = vpack.i.bf16 %v4793_v45, %v4793_v45 }
 0x17b   : > { %vm5874_vm6 = vmmov %vm5868_vm12  ;;  %v1600_v20 = vsel %vm4813_vm13, %v2270_v57, 4286644096  ;;  %v5896_v36 = vsel %vm4580_vm0, %v4696_v43, 4286644096  ;;  %vm5902_vm0 = vnez %v5832_v14  ;;  %v5926_v45 = vrot.slane %v4605_v13, 2 }
 0x17c   : > { %v1608_v21 = vsel %vm5874_vm6, %v5873_v46, 4286644096  ;;  %vm5875_vm11 = vmmov %vm5874_vm6  ;;  %v4854_v53 = vmax.f32 %v4586_v63, %v5879_v49  ;;  %v5903_v0 = vsel %vm5902_vm0, %v4744_v22, 4286644096  ;;  %vm5921_vm0 = vnez %v5858_v52 }
 0x17d   : > { %v1611_v23 = vsel %vm5875_vm11, %v1576_v26, 4286644096  ;;  %vm5876_vm12 = vmmov %vm5874_vm6  ;;  %v5922_v30 = vsel %vm5921_vm0, %v4818_v2, 4286644096 }
 0x17e   : > { %v1615_v33 = vsel %vm5876_vm12, %v1578_v60, 4286644096  ;;  %v1613_v25 = vmax.bf16 %v1611_v23, %v1605_v37  ;;  %vm5877_vm10 = vmmov %vm5874_vm6  ;;  %v2271_v60 = vld [vmem:[%s2649_s28 + $0x78] sm:$0xf] }
 0x17f   : > { %v1617_v38 = vmax.bf16 %v1615_v33, %v1608_v21  ;;  %v1619_v54 = vsel %vm5877_vm10, %v1580_v29, 4286644096  ;;  %vm5878_vm1 = vmmov %vm5874_vm6  ;;  %v1602_v23 = vsel %vm4838_vm2, %v2271_v60, 4286644096  ;;  %v5882_v21 = vrot.slane %v4588_v6, 2 }
 0x180   : > { %v1623_v18 = vsel %vm5878_vm1, %v1582_v59, 4286644096  ;;  %vm5880_vm6 = vmmov %vm5878_vm1  ;;  %v1621_v37 = vmax.bf16 %v1619_v54, %v1613_v25  ;;  %v1635_v59 = vsel %vm5878_vm1, %v1588_v51, 4286644096  ;;  %v5888_v51 = vrot.slane %v4603_v5, 2 }
 0x181   : > { %v1627_v46 = vsel %vm5880_vm6, %v1584_v31, 4286644096  ;;  %vm5881_vm11 = vmmov %vm5878_vm1  ;;  %v1625_v29 = vmax.bf16 %v1623_v18, %v1617_v38  ;;  %v4868_v49 = vmax.f32 %v4588_v6, %v5882_v21  ;;  %v5889_v6 = vsel %vm4516_vm15, %v4083_v4, 4286644096 }
 0x182   : > { %v1631_v26 = vsel %vm5881_vm11, %v1586_v32, 4286644096  ;;  %vm5883_vm10 = vmmov %vm5878_vm1  ;;  %v1629_v32 = vmax.bf16 %v1627_v46, %v1621_v37  ;;  %v4878_v54 = vmax.f32 %v4603_v5, %v5888_v51  ;;  %v5894_v4 = vsel %vm4568_vm9, %v4677_v8, 4286644096 }
 0x183   : > { %v1639_v63 = vsel %vm5883_vm10, %v1590_v47, 4286644096  ;;  %vm5884_vm3 = vmmov %vm5878_vm1  ;;  %v1633_v33 = vmax.bf16 %v1631_v26, %v1625_v29  ;;  %v5898_v46 = vsel %vm4597_vm4, %v4718_v19, 4286644096  ;;  %v5900_v8 = vsel %vm4614_vm8, %v4735_v44, 4286644096 }
 0x184   : > { %v1643_v57 = vsel %vm5884_vm3, %v1592_v17, 4286644096  ;;  %vm5885_vm7 = vmmov %vm5878_vm1  ;;  %v5891_v17 = vsel %vm4536_vm5, %v4649_v12, 4286644096  ;;  %vm1080_vm3 = vcmp.eq.s32.totalorder %v4704_v42, 1  ;;  %v1637_v5 = vmax.bf16 %v1635_v59, %v1629_v32 }
 0x185   : > { %v1647_v31 = vsel %vm5885_vm7, %v1594_v41, 4286644096  ;;  %vm5886_vm12 = vmmov %vm5878_vm1  ;;  %v1671_v41 = vsel %vm5878_vm1, %v5891_v17, 4286644096  ;;  %v1641_v50 = vmax.bf16 %v1639_v63, %v1633_v33  ;;  %v1410_v17 = vrot.slane %v4868_v49, 1 }
 0x186   : > { %v1651_v25 = vsel %vm5886_vm12, %v1596_v7, 4286644096  ;;  %vm5887_vm6 = vmmov %vm5878_vm1  ;;  %v5892_v7 = vsel %vm4556_vm14, %v4658_v58, 4286644096  ;;  %v1645_v43 = vmax.bf16 %v1643_v57, %v1637_v5  ;;  %vm5907_vm12 = vnez %v5838_v15  ;;  %v2272_v15 = vld [vmem:[%s2649_s28 + $0x6c] sm:$0xf] }
 0x187   : > { %v1655_v38 = vsel %vm5887_vm6, %v1598_v62, 4286644096  ;;  %vm5890_vm11 = vmmov %vm5878_vm1  ;;  %v1649_v26 = vmax.bf16 %v1647_v31, %v1641_v50  ;;  %v5908_v29 = vsel %vm5907_vm12, %v4762_v11, 4286644096  ;;  %v2273_v31 = vld [vmem:[%s2649_s28 + $0x74] sm:$0xf]  ;;  %v1463_v5 = vmax.f32 %v4605_v13, %v5926_v45 }
 0x188   : > { %v1668_v47 = vsel %vm5890_vm11, %v5889_v6, 4286644096  ;;  %vm5893_vm10 = vmmov %vm5878_vm1  ;;  %v1653_v22 = vmax.bf16 %v1651_v25, %v1645_v43  ;;  %vm5910_vm11 = vnez %v5843_v34  ;;  %v1601_v32 = vsel %vm4813_vm13, %v2273_v31, 4286644096 }
 0x189   : > { %v1674_v62 = vsel %vm5893_vm10, %v5892_v7, 4286644096  ;;  %vm5895_vm15 = vmmov %vm5878_vm1  ;;  %v1657_v59 = vmax.bf16 %v1655_v38, %v1649_v26  ;;  %v5911_v63 = vsel %vm5910_vm11, %v4776_v1, 4286644096  ;;  %vm5913_vm10 = vnez %v5862_v48  ;;  %v2274_v48 = vld [vmem:[%s2649_s28 + $0x7c] sm:$0xf] }
 0x18a   : > { %v1676_v18 = vmax.bf16 %v1674_v62, %v1668_v47  ;;  %v1678_v28 = vsel %vm5895_vm15, %v5894_v4, 4286644096  ;;  %vm5897_vm5 = vmmov %vm5878_vm1  ;;  %v1702_v57 = vsel %vm5878_vm1, %v5911_v63, 4286644096  ;;  %v1599_v11 = vsel %vm5913_vm10, %v2272_v15, 4286644096 }
 0x18b   : > { %v1680_v12 = vmax.bf16 %v1678_v28, %v1671_v41  ;;  %v1682_v58 = vsel %vm5897_vm5, %v5896_v36, 4286644096  ;;  %vm5899_vm14 = vmmov %vm5878_vm1  ;;  %vm5914_vm15 = vnez %v5848_v56  ;;  %v1603_v33 = vsel %vm4838_vm2, %v2274_v48, 4286644096  ;;  %s1388_s28 = scalar_select %p4942_p8, 1, 0 }
 0x18c   : > { %v1686_v39 = vsel %vm5899_vm14, %v5898_v46, 4286644096  ;;  %vm5901_vm9 = vmmov %vm5878_vm1  ;;  %v1684_v60 = vmax.bf16 %v1682_v58, %v1676_v18  ;;  %v5915_v34 = vsel %vm5914_vm15, %v4785_v24, 4286644096  ;;  %vm5918_vm14 = vnez %v5853_v10  ;;  %v5943_v15 = vld [vmem:[#allocation48_spill] sm:$0xff]  ;;  %p2335_p8 = scmp.lt.s32.totalorder %s2333_s9, %s2327_s5 }
 0x18d   : > { %v1690_v55 = vsel %vm5901_vm9, %v5900_v8, 4286644096  ;;  %vm5904_vm4 = vmmov %vm5878_vm1  ;;  %v1688_v37 = vmax.bf16 %v1686_v39, %v1680_v12  ;;  %v5919_v24 = vsel %vm5918_vm14, %v4799_v40, 4286644096  ;;  %v1055_v40 = vadd.f32 %v4497_v3, %v4832_v61 }
 0x18e   : > { %v1694_v19 = vsel %vm5904_vm4, %v5903_v0, 4286644096  ;;  %vm5905_vm7 = vmmov %vm5878_vm1  ;;  %v1692_v21 = vmax.bf16 %v1690_v55, %v1684_v60  ;;  %v1437_v62 = vrot.slane %v4878_v54, 1  ;;  %v1103_v4 = vunpack.c.l.bf16 %v1102_v9  ;;  %v5928_v55 = vld [vmem:[#allocation41_spill] sm:$0xff]  ;;  %p2336_p1 = por %p2335_p8, %p2334_p6 }
 0x18f   : > { %v1659_v16 = vsel %vm5905_vm7, %v1600_v20, 4286644096  ;;  %vm5906_vm8 = vmmov %vm5878_vm1  ;;  %v1383_v20 = vrot.slane %v4854_v53, 1  ;;  %v1411_v28 = vmax.f32 %v4868_v49, %v1410_v17  ;;  %v1389_v13 = vstv %s1388_s28  ;;  %v5930_v49 = vld [vmem:[#allocation43_spill] sm:$0xff] }
 0x190   : > { %v1663_v44 = vsel %vm5906_vm8, %v1602_v23, 4286644096  ;;  %vm5909_vm6 = vmmov %vm5878_vm1  ;;  %v1696_v23 = vmax.bf16 %v1694_v19, %v1688_v37  ;;  %v1661_v38 = vmax.bf16 %v1659_v16, %v1653_v22  ;;  %vm1107_vm8 = vcmp.eq.s32.totalorder %v4773_v27, 1  ;;  %v5932_v27 = vld [vmem:[#allocation45_spill] sm:$0xff]  ;;  %v5934_v16 = vld [vmem:[#allocation46_spill] sm:$0xff]  ;;  %p2337_p5 = pnand %p2336_p1, %p2330_p0 }
 0x191   : > { %v1698_v14 = vsel %vm5909_vm6, %v5908_v29, 4286644096  ;;  %vm5916_vm5 = vmmov %vm5878_vm1  ;;  %v1665_v51 = vmax.bf16 %v1663_v44, %v1657_v59  ;;  %v1384_v7 = vmax.f32 %v4854_v53, %v1383_v20  ;;  %v1081_v53 = vsel %vm1080_vm3, 0.0, %v4807_v35  ;;  %v5937_v37 = vld [vmem:[#allocation42_spill] sm:$0xff]  ;;  %v5941_v59 = vld [vmem:[#allocation47_spill] sm:$0xff] }
 0x192   : > { %v1706_v1 = vsel %vm5916_vm5, %v5915_v34, 4286644096  ;;  %v1700_v56 = vmax.bf16 %v1698_v14, %v1692_v21  ;;  %vm5920_vm9 = vmmov %vm5878_vm1  ;;  %v1704_v6 = vmax.bf16 %v1702_v57, %v1696_v23  ;;  %v1082_v46 = vadd.f32 %v1081_v53, %v1055_v40  ;;  %v5939_v14 = vld [vmem:[#allocation44_spill] sm:$0xff] }
 0x193   : > { %v1710_v25 = vsel %vm5920_vm9, %v5919_v24, 4286644096  ;;  %vm5923_vm13 = vmmov %vm5878_vm1  ;;  %v1666_v61 = vmax.bf16 %v1665_v51, %v1661_v38  ;;  %v1385_v36 = vpack.i.bf16 %v1384_v7, %v1384_v7  ;;  %v1416_v39 = vstv %s1415_s15 }
 0x194   : > { %v1714_v47 = vsel %vm5923_vm13, %v5922_v30, 4286644096  ;;  %v1708_v41 = vmax.bf16 %v1706_v1, %v1700_v56  ;;  %vm5924_vm2 = vmmov %vm5878_vm1  ;;  %v1712_v52 = vmax.bf16 %v1710_v25, %v1704_v6  ;;  %v1438_v42 = vmax.f32 %v4878_v54, %v1437_v62 }
 0x195   : > { %v1718_v10 = vsel %vm5924_vm2, %v1599_v11, 4286644096  ;;  %vm5925_vm4 = vmmov %vm5878_vm1  ;;  %v1464_v35 = vrot.slane %v1463_v5, 1  ;;  %vm5929_vm3 = vnez %v5928_v55  ;;  %vm5931_vm12 = vnez %v5930_v49 }
 0x196   : > { %v1722_v2 = vsel %vm5925_vm4, %v1601_v32, 4286644096  ;;  %v1716_v50 = vmax.bf16 %v1714_v47, %v1708_v41  ;;  %vm5927_vm7 = vmmov %vm5878_vm1  ;;  %v1720_v3 = vmax.bf16 %v1718_v10, %v1712_v52  ;;  %v1730_v43 = vsel %vm5929_vm3, %v1666_v61, 4286644096 }
 0x197   : > { %v1726_v18 = vsel %vm5927_vm7, %v1603_v33, 4286644096  ;;  %v1757_v26 = vsel %vm5931_vm12, %v1666_v61, 4286644096  ;;  %vm5933_vm6 = vnez %v5932_v27  ;;  %v1108_v0 = vsel %vm1107_vm8, 0.0, %v1103_v4 }
 0x198   : > { %v1724_v12 = vmax.bf16 %v1722_v2, %v1716_v50  ;;  %v1728_v58 = vmax.bf16 %v1726_v18, %v1720_v3  ;;  %v1784_v60 = vsel %vm5933_vm6, %v1666_v61, 4286644096  ;;  %vm1390_vm11 = vcmp.eq.s32.totalorder %v1389_v13, 1 }
 0x199   : > { %v1412_v19 = vpack.i.bf16 %v1411_v28, %v1411_v28  ;;  %vm5935_vm1 = vnez %v5934_v16  ;;  %v1386_v44 = vunpack.c.l.bf16 %v1385_v36  ;;  %vm5938_vm10 = vnez %v5937_v37 }
 0x19a   : > { %v1729_v8 = vmax.bf16 %v1728_v58, %v1724_v12  ;;  %v1811_v54 = vsel %vm5935_vm1, %v1666_v61, 4286644096  ;;  %vm5940_vm15 = vnez %v5939_v14  ;;  %vm5942_vm5 = vnez %v5941_v59 }
 0x19b   : > { %vm5944_vm14 = vnez %v5943_v15  ;;  %v1109_v23 = vadd.f32 %v1108_v0, %v1082_v46  ;;  %v1439_v34 = vpack.i.bf16 %v1438_v42, %v1438_v42  ;;  %v1465_v1 = vmax.f32 %v1463_v5, %v1464_v35 }
 0x19c   : > { %v1731_v29 = vsel %vm5938_vm10, %v1729_v8, 4286644096  ;;  %v1758_v22 = vsel %vm5940_vm15, %v1729_v8, 4286644096  ;;  %v1785_v21 = vsel %vm5942_vm5, %v1729_v8, 4286644096  ;;  %v1413_v32 = vunpack.c.l.bf16 %v1412_v19 }
 0x19d   : > { %v2052_v63 = vcombine.low %v1730_v43, %v1731_v29  ;;  %v2053_v57 = vcombine.low %v1757_v26, %v1758_v22  ;;  %v2054_v20 = vcombine.low %v1784_v60, %v1785_v21  ;;  %v1812_v11 = vsel %vm5944_vm14, %v1729_v8, 4286644096 }
 0x19e   : > { %v2055_v31 = vcombine.low %v1811_v54, %v1812_v11  ;;  %vm5946_vm9 = vcmask 261120   ;;  %v1391_v6 = vsel %vm1390_vm11, 0.0, %v1386_v44  ;;  %vm1417_vm4 = vcmp.eq.s32.totalorder %v1416_v39, 1 }
 0x19f   : > { %v1738_v48 = vsel %vm5946_vm9, %v2052_v63, 4286644096  ;;  %vm5947_vm0 = vmmov %vm5946_vm9  ;;  %v1443_v52 = vstv %s1442_s19  ;;  %v1392_v5 = vadd.f32 %v1391_v6, %v1109_v23  ;;  %v1440_v50 = vunpack.c.l.bf16 %v1439_v34 }
 0x1a0   : > { %v1765_v33 = vsel %vm5947_vm0, %v2053_v57, 4286644096  ;;  %vm5948_vm13 = vmmov %vm5947_vm0  ;;  %v1740_v24 = vunpack.i.l.bf16 %v1738_v48  ;;  %v1741_v25 = vunpack.i.h.bf16 %v1738_v48  ;;  %v1466_v18 = vpack.i.bf16 %v1465_v1, %v1465_v1 }
 0x1a1   : > { %v1792_v56 = vsel %vm5948_vm13, %v2054_v20, 4286644096  ;;  %v1767_v38 = vunpack.i.l.bf16 %v1765_v33  ;;  %v1768_v51 = vunpack.i.h.bf16 %v1765_v33  ;;  %vm5949_vm2 = vmmov %vm5947_vm0  ;;  %v1418_v61 = vsel %vm1417_vm4, 0.0, %v1413_v32 }
 0x1a2   : > { %v1794_v30 = vunpack.i.l.bf16 %v1792_v56  ;;  %v1795_v47 = vunpack.i.h.bf16 %v1792_v56  ;;  %v1819_v9 = vsel %vm5949_vm2, %v2055_v31, 4286644096  ;;  %v1742_v17 = vmax.f32 %v1740_v24, %v1741_v25  ;;  %vm5955_vm10 = vmmov %vm5947_vm0 }
 0x1a3   : > { %v1769_v41 = vmax.f32 %v1767_v38, %v1768_v51  ;;  %v1821_v10 = vunpack.i.l.bf16 %v1819_v9  ;;  %v1822_v40 = vunpack.i.h.bf16 %v1819_v9  ;;  %vm1444_vm7 = vcmp.eq.s32.totalorder %v1443_v52, 1  ;;  %v5954_v9 = vld [vmem:[#allocation26_spill] sm:$0xff] }
 0x1a4   : > { %v1796_v7 = vmax.f32 %v1794_v30, %v1795_v47  ;;  %v1743_v2 = vrot.slane %v1742_v17, 4  ;;  %v1470_v36 = vstv %s1469_s29  ;;  %v1419_v39 = vadd.f32 %v1418_v61, %v1392_v5 }
 0x1a5   : > { %v1770_v62 = vrot.slane %v1769_v41, 4  ;;  %v1823_v45 = vmax.f32 %v1821_v10, %v1822_v40  ;;  %v1467_v42 = vunpack.c.l.bf16 %v1466_v18  ;;  %v1445_v8 = vsel %vm1444_vm7, 0.0, %v1440_v50 }
 0x1a6   : > { %v1797_v53 = vrot.slane %v1796_v7, 4  ;;  %v1744_v3 = vmax.f32 %v1742_v17, %v1743_v2  ;;  %vm1471_vm8 = vcmp.eq.s32.totalorder %v1470_v36, 1  ;;  %v1446_v19 = vadd.f32 %v1445_v8, %v1419_v39  ;;  %v1841_v17 = vld [vmem:[%s165_s0] sm:$0xff] }
 0x1a7   : > { %v1771_v4 = vmax.f32 %v1769_v41, %v1770_v62  ;;  %v1824_v28 = vrot.slane %v1823_v45, 4  ;;  %v1753_v16 = vstv %s1752_s30  ;;  %v1780_v54 = vstv %s1779_s10 }
 0x1a8   : > { %v1798_v12 = vmax.f32 %v1796_v7, %v1797_v53  ;;  %v1745_v13 = vrot.slane %v1744_v3, 2  ;;  %v1472_v37 = vsel %vm1471_vm8, 0.0, %v1467_v42  ;;  %v1807_v57 = vstv %s1806_s25 }
 0x1a9   : > { %v1772_v58 = vrot.slane %v1771_v4, 2  ;;  %v1825_v46 = vmax.f32 %v1823_v45, %v1824_v28  ;;  %v1473_v15 = vadd.f32 %v1472_v37, %v1446_v19  ;;  %vm1754_vm3 = vcmp.eq.s32.totalorder %v1753_v16, 1 }
 0x1aa   : > { %v1799_v35 = vrot.slane %v1798_v12, 2  ;;  %v1746_v55 = vmax.f32 %v1744_v3, %v1745_v13  ;;  %vm1781_vm12 = vcmp.eq.s32.totalorder %v1780_v54, 1  ;;  %v1834_v31 = vstv %s1833_s21 }
 0x1ab   : > { %v1773_v43 = vmax.f32 %v1771_v4, %v1772_v58  ;;  %v1826_v49 = vrot.slane %v1825_v46, 2  ;;  %vm1808_vm6 = vcmp.eq.s32.totalorder %v1807_v57, 1  ;;  %vm1835_vm11 = vcmp.eq.s32.totalorder %v1834_v31, 1 }
 0x1ac   : > { %v1800_v26 = vmax.f32 %v1798_v12, %v1799_v35  ;;  %v1747_v27 = vrot.slane %v1746_v55, 1  ;;  %v1839_v30 = vstv %s2435_s4  ;;  %s1847_s4 = scalar_lea.sflag [#allocation7], %s163_s18 }
 0x1ad   : > { %v1774_v60 = vrot.slane %v1773_v43, 1  ;;  %v1827_v0 = vmax.f32 %v1825_v46, %v1826_v49  ;;  %vm1840_vm1 = vcmp.eq.s32.totalorder %v5954_v9, %v1839_v30 }
 0x1ae   : > { %v1801_v44 = vrot.slane %v1800_v26, 1  ;;  %v1748_v29 = vmax.f32 %v1746_v55, %v1747_v27 }
 0x1af   : > { %v1775_v14 = vmax.f32 %v1773_v43, %v1774_v60  ;;  %v1828_v22 = vrot.slane %v1827_v0, 1 }
 0x1b0   : > { %v1802_v59 = vmax.f32 %v1800_v26, %v1801_v44  ;;  %v1749_v21 = vpack.i.bf16 %v1748_v29, %v1748_v29 }
 0x1b1   : > { %v1776_v63 = vpack.i.bf16 %v1775_v14, %v1775_v14  ;;  %v1829_v20 = vmax.f32 %v1827_v0, %v1828_v22 }
 0x1b2   : > { %v1803_v11 = vpack.i.bf16 %v1802_v59, %v1802_v59  ;;  %v1750_v23 = vunpack.c.l.bf16 %v1749_v21 }
 0x1b3   : > { %v1777_v34 = vunpack.c.l.bf16 %v1776_v63  ;;  %v1830_v1 = vpack.i.bf16 %v1829_v20, %v1829_v20 }
 0x1b4   : > { %v1804_v32 = vunpack.c.l.bf16 %v1803_v11  ;;  %v1755_v48 = vsel %vm1754_vm3, 0.0, %v1750_v23 }
 0x1b5   : > { %v1782_v33 = vsel %vm1781_vm12, 0.0, %v1777_v34  ;;  %v1831_v56 = vunpack.c.l.bf16 %v1830_v1  ;;  %v1756_v24 = vadd.f32 %v1755_v48, %v1473_v15 }
 0x1b6   : > { %v1809_v25 = vsel %vm1808_vm6, 0.0, %v1804_v32 }
 0x1b7   : > { %v1783_v38 = vadd.f32 %v1782_v33, %v1756_v24  ;;  %v1836_v51 = vsel %vm1835_vm11, 0.0, %v1831_v56 }
 0x1b9   : > { %v1810_v6 = vadd.f32 %v1809_v25, %v1783_v38 }
 0x1bb   : > { %v1837_v47 = vadd.f32 %v1836_v51, %v1810_v6 }
 0x1bd   : > { %v1838_v41 = vmul.f32 0.0625, %v1837_v47 }
 0x1bf   : > { %v1844_v10 = vsel %vm1840_vm1, %v1838_v41, %v1841_v17 }
 0x1c0   : > { %1845 = vst.msk [vmem:[%s165_s0] sm:$0xff] %vm5955_vm10, %v1844_v10 }
 0x1c1   : > { %2340 = shalt.err (!%p2337_p5)
}
 0x1c2   : > { %s2341_s13 = scalar_lea.hbm %s5105_s8, 128  ;;  %s2345_s16 = scalar_lea.hbm %s5170_s3, 256 }
 0x1c3   : > { %p2342_p13 = scmp.ne.s32.totalorder %s5105_s8, %s2341_s13  ;;  %p2346_p12 = scmp.lt.u32.totalorder %s5105_s8, %s5170_s3 }
 0x1c4   : > { %p2347_p3 = scmp.lt.u32.totalorder %s2345_s16, %s2341_s13  ;;  %p2349_p10 = scmp.lt.u32.totalorder %s2341_s13, %s5105_s8 }
 0x1c5   : > { %p2343_p4 = pnand %p2342_p13, %p5956_p2 }
 0x1c6   : > { %p2348_p9 = por %p2347_p3, %p2346_p12 }
 0x1c7   : > { %p2344_p7 = pneg %p2343_p4 }
 0x1c8   : > { %p2350_p11 = por %p2349_p10, %p2348_p9 }
 0x1ca   : > { %p2351_p0 = pnand %p2350_p11, %p2344_p7 }
 0x1cc   : > { %2354 = shalt.err (!%p2351_p0)
}
 0x1cd   : > { %2137 = dma.vmem_to_hbm [thread:$0]  (%p5956_p2), %s5107_s6, 128, %s5105_s8, %s1847_s4  }
 0x1ce PF: > { %s5957_s27 = sld [smem:[#allocation20_spill]]  ;;  %s5958_s29 = sld [smem:[#allocation14_spill]] }
 0x1cf   : > { %s5959_s22 = sld [smem:[#allocation24_spill]] }
 0x1d4   : > { %p2150_p6 = scmp.ge.s32.totalorder %s5957_s27, 2  ;;  %s1872_s30 = sand.u32 1, %s5958_s29  }
 0x1d5   : > { %p5960_p8 = scmp.ne.s32.totalorder %s5959_s22, 0  ;;  %s1873_s2 = scalar_lea.sflag [#allocation7], %s1872_s30 }
 0x1d7   : > { %p2146_p1 = pnand %p2150_p6, %p5960_p8 }
 0x1d9   : > { %2406 = dma.done.wait (!%p2146_p1), %s1873_s2, 128  }
 0x1da   : > { %2408 = vsyncadd (!%p2146_p1), %s1873_s2, 4294967168  ;;  %s27_s8 = sadd.s32 1, %s5957_s27   ;;  %s5961_s10 = sld [smem:[#allocation15_spill]] }
 0x1db   : > { %p24_p5 = scmp.ge.s32.totalorder %s27_s8, 18   ;;  %s5962_s27 = sld [smem:[#allocation23_spill]] }
 0x1dc   : > { %s5963_s28 = sld [smem:[#allocation16_spill]]  ;;  %s5964_s29 = sld [smem:[#allocation17_spill]] }
 0x1dd   : > { %s5965_s30 = sld [smem:[#allocation25_spill]]  ;;  %s5966_s4 = sld [smem:[#allocation18_spill]] }
 0x1de   : > { %s5967_s5 = sld [smem:[#allocation19_spill]]  ;;  %s5968_s6 = sld [smem:[#allocation21_spill]] }
 0x1df   : > { %s5969_s7 = sld [smem:[#allocation22_spill]]  ;;  %s5970_s0 = smov %s2415_s1 }
 0x1e0   : > { %s5971_s1 = smov %s5961_s10  ;;  %26 = sbr.rel (!%p24_p5) target bundleno = 31 (0x1f), region = 69 }
 0x1e7   :  { %1878 = vsyncpa [#allocation6], 1 }
 0x1e8   :  { %1880 = vsyncpa [#allocation6 + $0x1], 1 }
 0x1e9   :  { %1881 = vsyncpa [#allocation7], 1 }
 0x1ea   :  { %1883 = vsyncpa [#allocation7 + $0x1], 1 }

</bundles_post_ra>
